<compile_context>
chip_gen: v7x
topology: tpu7x:2x2x1
jax: 0.10.0
libtpu: 0.0.40
codegen_flags: <defaults>
</compile_context>

<pallas_src>
import functools
import itertools

import numpy as np
import jax
import jax.numpy as jnp
from jax.experimental import pallas as pl
from jax.experimental.pallas import tpu as pltpu

# ----------------------------- configuration -------------------------------
DIM = 32              # embedding dim C
NUM_HEADS = 2
WINDOW = 7            # window_size; H == W == WINDOW -> single-window path
H = W = WINDOW
N = WINDOW * WINDOW   # tokens per window (== L)
L = N
B = 2                 # batch
KEY_DIM = DIM // NUM_HEADS          # head_dim; attn_ratio = 1 => d == key_dim
D = KEY_DIM
DH = D * NUM_HEADS                  # == DIM
MLP_HIDDEN = int(DIM * 4.0)
SCALE = KEY_DIM ** -0.5
EPS = 1e-5

_SQRT_2_OVER_PI = 0.7978845608028654


def _gelu_tanh(x):
    # tanh GELU (Mosaic-friendly); |err| vs torch's exact erf GELU < 1e-3,
    # well inside the 2e-2 parity tolerance.
    return 0.5 * x * (1.0 + jnp.tanh(_SQRT_2_OVER_PI * (x + 0.044715 * x * x * x)))


def _gelu_exact(x):
    # exact (erf) GELU, used only by the pure-JAX reference
    return 0.5 * x * (1.0 + jax.lax.erf(x * 0.7071067811865476))


# --------------------------- fused block kernel -----------------------------
def block_kernel(x_ref, ln1g_ref, ln1b_ref, wqkv_ref, bqkv_ref, ab_ref,
                 wproj_ref, bproj_ref, shift_ref, convw_ref, bns_ref, bnb_ref,
                 ln2g_ref, ln2b_ref, w1_ref, b1_ref, w2_ref, b2_ref,
                 o_ref, attn_ref=None, *, n_imgs=1):
    # loop-invariant small params loaded once (hoisted out of the image loop)
    ln1g = ln1g_ref[...]
    ln1b = ln1b_ref[...]
    ln2g = ln2g_ref[...]
    ln2b = ln2b_ref[...]
    bproj = bproj_ref[...]
    bscale = bns_ref[...]
    bbias = bnb_ref[...]
    b1 = b1_ref[...]
    b2 = b2_ref[...]
    w1 = w1_ref[...]                                   # (C, HID)  bf16
    w2 = w2_ref[...]                                   # (HID, C)  bf16
    w9 = convw_ref[...]                                # (9, 1, C) f32

    for g in range(n_imgs):                            # static unroll (G <= 2)
        x = x_ref[g]                                   # (L, C) f32

        # ----------------------------- LayerNorm 1 --------------------------
        mu = jnp.mean(x, axis=-1, keepdims=True)
        var = jnp.mean((x - mu) ** 2, axis=-1, keepdims=True)
        xn = ((x - mu) * jax.lax.rsqrt(var + EPS)) * ln1g + ln1b
        xnb = xn.astype(jnp.bfloat16)

        # ---- attention: per-head QKV matmuls, softmax, per-head proj+sum ---
        proj = None
        for h in range(NUM_HEADS):
            q = jnp.dot(xnb, wqkv_ref[3 * h + 0],
                        preferred_element_type=jnp.float32) + bqkv_ref[3 * h + 0]
            k = jnp.dot(xnb, wqkv_ref[3 * h + 1],
                        preferred_element_type=jnp.float32) + bqkv_ref[3 * h + 1]
            v = jnp.dot(xnb, wqkv_ref[3 * h + 2],
                        preferred_element_type=jnp.float32) + bqkv_ref[3 * h + 2]
            # scores: contract last axes (no explicit k.T relayout)
            s = jax.lax.dot_general(q.astype(jnp.bfloat16), k.astype(jnp.bfloat16),
                                    (((1,), (1,)), ((), ())),
                                    preferred_element_type=jnp.float32)
            s = s * SCALE + ab_ref[h]
            s = s - jnp.max(s, axis=-1, keepdims=True)
            e = jnp.exp(s)
            p = e * pl.reciprocal(jnp.sum(e, axis=-1, keepdims=True), approx=True)
            if attn_ref is not None:                    # optional output (gated)
                attn_ref[g, h] = p
            oh = jnp.dot(p.astype(jnp.bfloat16), v.astype(jnp.bfloat16),
                         preferred_element_type=jnp.float32)          # (L, D)
            ph = jnp.dot(oh.astype(jnp.bfloat16), wproj_ref[h],
                         preferred_element_type=jnp.float32)          # (L, C)
            proj = ph if proj is None else proj + ph
        xa = x + proj + bproj                                          # (L, C)

        # ---- depthwise 3x3 conv + fused eval-mode BN, entirely in vregs ----
        # tap j = (ky*3 + kx): shift_ref[j] is a constant (L, L) 0/1 matrix
        # selecting each token's (dy, dx) neighbour (zero rows at the border).
        acc = xa * w9[4]                                # centre tap (identity)
        for j in range(9):
            if j == 4:
                continue
            tap = jnp.dot(shift_ref[j], xa, preferred_element_type=jnp.float32)
            acc = acc + tap * w9[j]
        yl = acc * bscale + bbias                       # (L, C) conv+BN tokens

        # ------------------------ LayerNorm 2 + MLP -------------------------
        mu2 = jnp.mean(yl, axis=-1, keepdims=True)
        var2 = jnp.mean((yl - mu2) ** 2, axis=-1, keepdims=True)
        zn = ((yl - mu2) * jax.lax.rsqrt(var2 + EPS)) * ln2g + ln2b
        hid = _gelu_tanh(jnp.dot(zn.astype(jnp.bfloat16), w1,
                                 preferred_element_type=jnp.float32) + b1)
        out = yl + jnp.dot(hid.astype(jnp.bfloat16), w2,
                           preferred_element_type=jnp.float32) + b2
        o_ref[g] = out


# --------------------------------- wrapper -----------------------------------
def _images_per_step():
    """v7x has 2 TensorCores -> one image per grid step; single-TC v5e/v6e
    process the whole batch in one step (saves per-step fixed overhead)."""
    try:
        kind = jax.devices()[0].device_kind.lower().replace(" ", "")
    except Exception:
        return B
    if "v7" in kind or "tpu7" in kind:
        return 1
    return B


def tinyvit_block(x, p, *, images_per_step=None, return_attn=True):
    """x: (B, L, C) float32, hw_size == (WINDOW, WINDOW). Returns (x, attn)."""
    g = images_per_step if images_per_step is not None else _images_per_step()
    assert B % g == 0
    kern = functools.partial(block_kernel, n_imgs=g)

    in_specs = [
        pl.BlockSpec((g, L, DIM), lambda b: (b, 0, 0)),                    # x
        pl.BlockSpec((1, DIM), lambda b: (0, 0)),                          # ln1_g
        pl.BlockSpec((1, DIM), lambda b: (0, 0)),                          # ln1_b
        pl.BlockSpec((3 * NUM_HEADS, DIM, KEY_DIM), lambda b: (0, 0, 0)),  # wqkv_s
        pl.BlockSpec((3 * NUM_HEADS, 1, KEY_DIM), lambda b: (0, 0, 0)),    # bqkv_s
        pl.BlockSpec((NUM_HEADS, N, N), lambda b: (0, 0, 0)),              # ab
        pl.BlockSpec((NUM_HEADS, KEY_DIM, DIM), lambda b: (0, 0, 0)),      # wproj_s
        pl.BlockSpec((1, DIM), lambda b: (0, 0)),                          # bproj
        pl.BlockSpec((9, L, L), lambda b: (0, 0, 0)),                      # shift mats
        pl.BlockSpec((9, 1, DIM), lambda b: (0, 0, 0)),                    # conv w9
        pl.BlockSpec((1, DIM), lambda b: (0, 0)),                          # bn_scale
        pl.BlockSpec((1, DIM), lambda b: (0, 0)),                          # bn_bias
        pl.BlockSpec((1, DIM), lambda b: (0, 0)),                          # ln2_g
        pl.BlockSpec((1, DIM), lambda b: (0, 0)),                          # ln2_b
        pl.BlockSpec((DIM, MLP_HIDDEN), lambda b: (0, 0)),                 # w1
        pl.BlockSpec((1, MLP_HIDDEN), lambda b: (0, 0)),                   # b1
        pl.BlockSpec((MLP_HIDDEN, DIM), lambda b: (0, 0)),                 # w2
        pl.BlockSpec((1, DIM), lambda b: (0, 0)),                          # b2
    ]

    if return_attn:
        out_shape = (jax.ShapeDtypeStruct((B, L, DIM), jnp.float32),
                     jax.ShapeDtypeStruct((B, NUM_HEADS, N, N), jnp.float32))
        out_specs = (pl.BlockSpec((g, L, DIM), lambda b: (b, 0, 0)),
                     pl.BlockSpec((g, NUM_HEADS, N, N), lambda b: (b, 0, 0, 0)))
    else:
        out_shape = jax.ShapeDtypeStruct((B, L, DIM), jnp.float32)
        out_specs = pl.BlockSpec((g, L, DIM), lambda b: (b, 0, 0))

    call = pl.pallas_call(
        kern,
        out_shape=out_shape,
        grid_spec=pltpu.PrefetchScalarGridSpec(
            num_scalar_prefetch=0,
            grid=(B // g,),
            in_specs=in_specs,
            out_specs=out_specs,
        ),
        compiler_params=pltpu.CompilerParams(
            dimension_semantics=("parallel",)),
    )
    args = (x, p["ln1_g"], p["ln1_b"], p["wqkv_s"], p["bqkv_s"], p["ab"],
            p["wproj_s"], p["bproj"], p["shift_m"], p["conv_w9"],
            p["bn_scale"], p["bn_bias"], p["ln2_g"], p["ln2_b"],
            p["w1_b"], p["b1"], p["w2_b"], p["b2"])
    if return_attn:
        out, attn = call(*args)
        return out, attn
    return call(*args), None


# ------------------------- parameter construction ---------------------------
def make_params():
    # attention-bias index table, exactly as in Attention.__init__
    points = list(itertools.product(range(WINDOW), range(WINDOW)))
    offsets, idxs = {}, []
    for p1 in points:
        for p2 in points:
            off = (abs(p1[0] - p2[0]), abs(p1[1] - p2[1]))
            if off not in offsets:
                offsets[off] = len(offsets)
            idxs.append(offsets[off])
    idxs = np.array(idxs, np.int32).reshape(N, N)

    key = jax.random.PRNGKey(0)
    ks = jax.random.split(key, 20)

    def rn(k, shape, s=0.1):
        return s * jax.random.normal(k, shape, jnp.float32)

    attention_biases = rn(ks[0], (NUM_HEADS, len(offsets)))
    ab = attention_biases[:, jnp.asarray(idxs)]            # (heads, N, N)

    bn_w = 1.0 + rn(ks[1], (DIM,))
    bn_b = rn(ks[2], (DIM,))
    bn_mean = rn(ks[3], (DIM,))
    bn_var = 1.0 + 0.1 * jnp.abs(jax.random.normal(ks[4], (DIM,), jnp.float32))
    bn_scale = bn_w / jnp.sqrt(bn_var + EPS)
    bn_bias = bn_b - bn_mean * bn_scale

    # qkv Linear in PyTorch layout (per-head [q|k|v] features), pre-transposed
    wqkv = rn(ks[7], (DIM, 3 * DIM))                       # (in, out)
    bqkv = rn(ks[8], (1, 3 * DIM))
    # per-head / per-tensor split: j = h*3 + t, t in {0:q, 1:k, 2:v}
    wqkv_s = jnp.stack([wqkv[:, h * 3 * KEY_DIM + t * KEY_DIM:
                               h * 3 * KEY_DIM + (t + 1) * KEY_DIM]
                        for h in range(NUM_HEADS) for t in range(3)])   # (6,C,D)
    bqkv_s = jnp.stack([bqkv[:, h * 3 * KEY_DIM + t * KEY_DIM:
                               h * 3 * KEY_DIM + (t + 1) * KEY_DIM]
                        for h in range(NUM_HEADS) for t in range(3)])   # (6,1,D)

    wproj = rn(ks[9], (DH, DIM))                           # Linear(dh, dim), pre-T
    bproj = rn(ks[10], (1, DIM))
    wproj_s = jnp.stack([wproj[h * KEY_DIM:(h + 1) * KEY_DIM]
                         for h in range(NUM_HEADS)])        # (heads, D, C)

    conv_w = rn(ks[11], (3, 3, DIM))                       # (kh, kw, C)

    # constant 0/1 shift matrices for the 9 depthwise-conv taps (border = 0)
    shift_m = np.zeros((9, L, L), np.float32)
    for ky in range(3):
        for kx in range(3):
            j = ky * 3 + kx
            dy, dx = ky - 1, kx - 1
            for y in range(H):
                for xcol in range(W):
                    sy, sx = y + dy, xcol + dx
                    if 0 <= sy < H and 0 <= sx < W:
                        shift_m[j, y * W + xcol, sy * W + sx] = 1.0
    shift_m = jnp.asarray(shift_m)

    w1 = rn(ks[14], (DIM, MLP_HIDDEN))
    b1 = rn(ks[15], (1, MLP_HIDDEN))
    w2 = rn(ks[16], (MLP_HIDDEN, DIM))
    b2 = rn(ks[17], (1, DIM))

    return dict(
        # reference (f32, PyTorch-like) layouts
        ln1_g=1.0 + rn(ks[5], (1, DIM)),
        ln1_b=rn(ks[6], (1, DIM)),
        wqkv=wqkv, bqkv=bqkv, ab=ab, wproj=wproj, bproj=bproj,
        conv_w=conv_w,
        bn_scale=bn_scale.reshape(1, DIM), bn_bias=bn_bias.reshape(1, DIM),
        ln2_g=1.0 + rn(ks[12], (1, DIM)),
        ln2_b=rn(ks[13], (1, DIM)),
        w1=w1, b1=b1, w2=w2, b2=b2,
        # kernel layouts (per-head split, bf16 matmul weights, shift matrices)
        wqkv_s=wqkv_s.astype(jnp.bfloat16),
        bqkv_s=bqkv_s,
        wproj_s=wproj_s.astype(jnp.bfloat16),
        shift_m=shift_m,
        conv_w9=conv_w.reshape(9, 1, DIM),
        w1_b=w1.astype(jnp.bfloat16),
        w2_b=w2.astype(jnp.bfloat16),
    )


# ------------------------- pure-JAX reference (check) -----------------------
def reference(x, p):
    def ln(v, gamma, beta):
        mu = v.mean(-1, keepdims=True)
        var = ((v - mu) ** 2).mean(-1, keepdims=True)
        return (v - mu) / jnp.sqrt(var + EPS) * gamma + beta

    xn = ln(x, p["ln1_g"], p["ln1_b"])
    qkv = xn @ p["wqkv"] + p["bqkv"]
    qkv = qkv.reshape(B, N, NUM_HEADS, 3 * KEY_DIM)
    q = qkv[..., :KEY_DIM].transpose(0, 2, 1, 3)
    k = qkv[..., KEY_DIM:2 * KEY_DIM].transpose(0, 2, 1, 3)
    v = qkv[..., 2 * KEY_DIM:].transpose(0, 2, 1, 3)
    s = jnp.einsum("bhnd,bhmd->bhnm", q, k) * SCALE + p["ab"][None]
    attn = jax.nn.softmax(s, axis=-1)
    o = jnp.einsum("bhnm,bhmd->bhnd", attn, v).transpose(0, 2, 1, 3)
    o = o.reshape(B, N, DH)
    xa = x + (o @ p["wproj"] + p["bproj"])

    y = xa.reshape(B, H, W, DIM)
    yp = jnp.pad(y, ((0, 0), (1, 1), (1, 1), (0, 0)))
    acc = jnp.zeros((B, H, W, DIM), jnp.float32)
    for ky in range(3):
        for kx in range(3):
            acc = acc + yp[:, ky:ky + H, kx:kx + W, :] * p["conv_w"][ky, kx]
    yc = acc * p["bn_scale"] + p["bn_bias"]
    yl = yc.reshape(B, L, DIM)

    zn = ln(yl, p["ln2_g"], p["ln2_b"])
    hdn = _gelu_exact(zn @ p["w1"] + p["b1"])
    out = yl + hdn @ p["w2"] + p["b2"]
    return out, attn


# ----------------------------------- main ------------------------------------
if __name__ == "__main__":
    params = make_params()
    x = jax.random.normal(jax.random.PRNGKey(0), (B, L, DIM), jnp.float32)

    out, attn = jax.jit(tinyvit_block)(x, params)
    out = jax.block_until_ready(out)
    attn = jax.block_until_ready(attn)

    ref_out, ref_attn = reference(x, params)
    assert out.shape == (B, L, DIM) and attn.shape == (B, NUM_HEADS, N, N)
    assert np.allclose(np.asarray(out), np.asarray(ref_out), atol=2e-2, rtol=2e-2)
    assert np.allclose(np.asarray(attn), np.asarray(ref_attn), atol=2e-2, rtol=2e-2)

    print("KERNEL_OK")
</pallas_src>

<mosaic_0001>
module attributes {stable_mosaic.version = 11 : i64} {
  func.func @block_kernel(%arg0: i32, %arg1: memref<2x49x32xf32, #tpu.memory_space<vmem>>, %arg2: memref<1x32xf32, #tpu.memory_space<vmem>>, %arg3: memref<1x32xf32, #tpu.memory_space<vmem>>, %arg4: memref<6x32x16xbf16, #tpu.memory_space<vmem>>, %arg5: memref<6x1x16xf32, #tpu.memory_space<vmem>>, %arg6: memref<2x49x49xf32, #tpu.memory_space<vmem>>, %arg7: memref<2x16x32xbf16, #tpu.memory_space<vmem>>, %arg8: memref<1x32xf32, #tpu.memory_space<vmem>>, %arg9: memref<9x49x49xf32, #tpu.memory_space<vmem>>, %arg10: memref<9x1x32xf32, #tpu.memory_space<vmem>>, %arg11: memref<1x32xf32, #tpu.memory_space<vmem>>, %arg12: memref<1x32xf32, #tpu.memory_space<vmem>>, %arg13: memref<1x32xf32, #tpu.memory_space<vmem>>, %arg14: memref<1x32xf32, #tpu.memory_space<vmem>>, %arg15: memref<32x128xbf16, #tpu.memory_space<vmem>>, %arg16: memref<1x128xf32, #tpu.memory_space<vmem>>, %arg17: memref<128x32xbf16, #tpu.memory_space<vmem>>, %arg18: memref<1x32xf32, #tpu.memory_space<vmem>>, %arg19: memref<2x49x32xf32, #tpu.memory_space<vmem>>, %arg20: memref<2x2x49x49xf32, #tpu.memory_space<vmem>>) attributes {dimension_semantics = [#tpu.dimension_semantics<parallel>], iteration_bounds = array<i64: 1>, scalar_prefetch = 0 : i64, scratch_operands = 0 : i64, tpu.core_type = #tpu.core_type<tc>, window_params = [{transform_indices = @transform_0, window_bounds = array<i64: 2, 49, 32>}, {pipeline_mode = #tpu.pipeline_mode<synchronous>, transform_indices = @transform_1, window_bounds = array<i64: 1, 32>}, {pipeline_mode = #tpu.pipeline_mode<synchronous>, transform_indices = @transform_2, window_bounds = array<i64: 1, 32>}, {pipeline_mode = #tpu.pipeline_mode<synchronous>, transform_indices = @transform_3, window_bounds = array<i64: 6, 32, 16>}, {pipeline_mode = #tpu.pipeline_mode<synchronous>, transform_indices = @transform_4, window_bounds = array<i64: 6, 1, 16>}, {pipeline_mode = #tpu.pipeline_mode<synchronous>, transform_indices = @transform_5, window_bounds = array<i64: 2, 49, 49>}, {pipeline_mode = #tpu.pipeline_mode<synchronous>, transform_indices = @transform_6, window_bounds = array<i64: 2, 16, 32>}, {pipeline_mode = #tpu.pipeline_mode<synchronous>, transform_indices = @transform_7, window_bounds = array<i64: 1, 32>}, {pipeline_mode = #tpu.pipeline_mode<synchronous>, transform_indices = @transform_8, window_bounds = array<i64: 9, 49, 49>}, {pipeline_mode = #tpu.pipeline_mode<synchronous>, transform_indices = @transform_9, window_bounds = array<i64: 9, 1, 32>}, {pipeline_mode = #tpu.pipeline_mode<synchronous>, transform_indices = @transform_10, window_bounds = array<i64: 1, 32>}, {pipeline_mode = #tpu.pipeline_mode<synchronous>, transform_indices = @transform_11, window_bounds = array<i64: 1, 32>}, {pipeline_mode = #tpu.pipeline_mode<synchronous>, transform_indices = @transform_12, window_bounds = array<i64: 1, 32>}, {pipeline_mode = #tpu.pipeline_mode<synchronous>, transform_indices = @transform_13, window_bounds = array<i64: 1, 32>}, {pipeline_mode = #tpu.pipeline_mode<synchronous>, transform_indices = @transform_14, window_bounds = array<i64: 32, 128>}, {pipeline_mode = #tpu.pipeline_mode<synchronous>, transform_indices = @transform_15, window_bounds = array<i64: 1, 128>}, {pipeline_mode = #tpu.pipeline_mode<synchronous>, transform_indices = @transform_16, window_bounds = array<i64: 128, 32>}, {pipeline_mode = #tpu.pipeline_mode<synchronous>, transform_indices = @transform_17, window_bounds = array<i64: 1, 32>}, {transform_indices = @transform_18, window_bounds = array<i64: 2, 49, 32>}, {transform_indices = @transform_19, window_bounds = array<i64: 2, 2, 49, 49>}]} {
    %c0 = arith.constant 0 : index
    %c0_0 = arith.constant 0 : index
    %0 = vector.load %arg2[%c0, %c0_0] : memref<1x32xf32, #tpu.memory_space<vmem>>, vector<1x32xf32>
    %c0_1 = arith.constant 0 : index
    %c0_2 = arith.constant 0 : index
    %1 = vector.load %arg3[%c0_1, %c0_2] : memref<1x32xf32, #tpu.memory_space<vmem>>, vector<1x32xf32>
    %c0_3 = arith.constant 0 : index
    %c0_4 = arith.constant 0 : index
    %2 = vector.load %arg13[%c0_3, %c0_4] : memref<1x32xf32, #tpu.memory_space<vmem>>, vector<1x32xf32>
    %c0_5 = arith.constant 0 : index
    %c0_6 = arith.constant 0 : index
    %3 = vector.load %arg14[%c0_5, %c0_6] : memref<1x32xf32, #tpu.memory_space<vmem>>, vector<1x32xf32>
    %c0_7 = arith.constant 0 : index
    %c0_8 = arith.constant 0 : index
    %4 = vector.load %arg8[%c0_7, %c0_8] : memref<1x32xf32, #tpu.memory_space<vmem>>, vector<1x32xf32>
    %c0_9 = arith.constant 0 : index
    %c0_10 = arith.constant 0 : index
    %5 = vector.load %arg11[%c0_9, %c0_10] : memref<1x32xf32, #tpu.memory_space<vmem>>, vector<1x32xf32>
    %c0_11 = arith.constant 0 : index
    %c0_12 = arith.constant 0 : index
    %6 = vector.load %arg12[%c0_11, %c0_12] : memref<1x32xf32, #tpu.memory_space<vmem>>, vector<1x32xf32>
    %c0_13 = arith.constant 0 : index
    %c0_14 = arith.constant 0 : index
    %7 = vector.load %arg16[%c0_13, %c0_14] : memref<1x128xf32, #tpu.memory_space<vmem>>, vector<1x128xf32>
    %c0_15 = arith.constant 0 : index
    %c0_16 = arith.constant 0 : index
    %8 = vector.load %arg18[%c0_15, %c0_16] : memref<1x32xf32, #tpu.memory_space<vmem>>, vector<1x32xf32>
    %c0_17 = arith.constant 0 : index
    %c0_18 = arith.constant 0 : index
    %9 = vector.load %arg15[%c0_17, %c0_18] : memref<32x128xbf16, #tpu.memory_space<vmem>>, vector<32x128xbf16>
    %c0_19 = arith.constant 0 : index
    %c0_20 = arith.constant 0 : index
    %10 = vector.load %arg17[%c0_19, %c0_20] : memref<128x32xbf16, #tpu.memory_space<vmem>>, vector<128x32xbf16>
    %c0_21 = arith.constant 0 : index
    %c0_22 = arith.constant 0 : index
    %c0_23 = arith.constant 0 : index
    %11 = vector.load %arg10[%c0_21, %c0_22, %c0_23] : memref<9x1x32xf32, #tpu.memory_space<vmem>>, vector<9x1x32xf32>
    %c0_24 = arith.constant 0 : index
    %c0_25 = arith.constant 0 : index
    %c0_26 = arith.constant 0 : index
    %12 = vector.load %arg1[%c0_24, %c0_25, %c0_26] : memref<2x49x32xf32, #tpu.memory_space<vmem>>, vector<1x49x32xf32>
    %13 = vector.shape_cast %12 : vector<1x49x32xf32> to vector<49x32xf32>
    %cst = arith.constant dense<0.000000e+00> : vector<49xf32>
    %14 = vector.multi_reduction <add>, %13, %cst [1] : vector<49x32xf32> to vector<49xf32>
    %15 = vector.shape_cast %14 : vector<49xf32> to vector<49x1xf32>
    %cst_27 = arith.constant 3.200000e+01 : f32
    %16 = vector.broadcast %cst_27 : f32 to vector<49x1xf32>
    %17 = arith.divf %15, %16 : vector<49x1xf32>
    %18 = vector.broadcast %17 : vector<49x1xf32> to vector<49x32xf32>
    %19 = arith.subf %13, %18 : vector<49x32xf32>
    %20 = arith.mulf %19, %19 : vector<49x32xf32>
    %cst_28 = arith.constant dense<0.000000e+00> : vector<49xf32>
    %21 = vector.multi_reduction <add>, %20, %cst_28 [1] : vector<49x32xf32> to vector<49xf32>
    %22 = vector.shape_cast %21 : vector<49xf32> to vector<49x1xf32>
    %cst_29 = arith.constant 3.200000e+01 : f32
    %23 = vector.broadcast %cst_29 : f32 to vector<49x1xf32>
    %24 = arith.divf %22, %23 : vector<49x1xf32>
    %25 = vector.broadcast %17 : vector<49x1xf32> to vector<49x32xf32>
    %26 = arith.subf %13, %25 : vector<49x32xf32>
    %cst_30 = arith.constant 9.99999974E-6 : f32
    %27 = vector.broadcast %cst_30 : f32 to vector<49x1xf32>
    %28 = arith.addf %24, %27 : vector<49x1xf32>
    %29 = math.rsqrt %28 : vector<49x1xf32>
    %30 = vector.broadcast %29 : vector<49x1xf32> to vector<49x32xf32>
    %31 = arith.mulf %26, %30 : vector<49x32xf32>
    %32 = vector.broadcast %0 : vector<1x32xf32> to vector<49x32xf32>
    %33 = arith.mulf %31, %32 : vector<49x32xf32>
    %34 = vector.broadcast %1 : vector<1x32xf32> to vector<49x32xf32>
    %35 = arith.addf %33, %34 : vector<49x32xf32>
    %36 = arith.truncf %35 : vector<49x32xf32> to vector<49x32xbf16>
    %c0_31 = arith.constant 0 : index
    %c0_32 = arith.constant 0 : index
    %c0_33 = arith.constant 0 : index
    %37 = vector.load %arg4[%c0_31, %c0_32, %c0_33] : memref<6x32x16xbf16, #tpu.memory_space<vmem>>, vector<1x32x16xbf16>
    %38 = vector.shape_cast %37 : vector<1x32x16xbf16> to vector<32x16xbf16>
    %cst_34 = arith.constant dense<0.000000e+00> : vector<49x16xf32>
    %39 = tpu.matmul %36, %38, %cst_34 {dimension_numbers = #tpu.dot_dimension_numbers<[1], [0], [0], [1], [0, 0, 1, 1], [], []>} : vector<49x32xbf16>, vector<32x16xbf16>, vector<49x16xf32> -> vector<49x16xf32>
    %c0_35 = arith.constant 0 : index
    %c0_36 = arith.constant 0 : index
    %c0_37 = arith.constant 0 : index
    %40 = vector.load %arg5[%c0_35, %c0_36, %c0_37] : memref<6x1x16xf32, #tpu.memory_space<vmem>>, vector<1x1x16xf32>
    %41 = vector.shape_cast %40 : vector<1x1x16xf32> to vector<1x16xf32>
    %42 = vector.broadcast %41 : vector<1x16xf32> to vector<49x16xf32>
    %43 = arith.addf %39, %42 : vector<49x16xf32>
    %c1 = arith.constant 1 : index
    %c0_38 = arith.constant 0 : index
    %c0_39 = arith.constant 0 : index
    %44 = vector.load %arg4[%c1, %c0_38, %c0_39] : memref<6x32x16xbf16, #tpu.memory_space<vmem>>, vector<1x32x16xbf16>
    %45 = vector.shape_cast %44 : vector<1x32x16xbf16> to vector<32x16xbf16>
    %cst_40 = arith.constant dense<0.000000e+00> : vector<49x16xf32>
    %46 = tpu.matmul %36, %45, %cst_40 {dimension_numbers = #tpu.dot_dimension_numbers<[1], [0], [0], [1], [0, 0, 1, 1], [], []>} : vector<49x32xbf16>, vector<32x16xbf16>, vector<49x16xf32> -> vector<49x16xf32>
    %c1_41 = arith.constant 1 : index
    %c0_42 = arith.constant 0 : index
    %c0_43 = arith.constant 0 : index
    %47 = vector.load %arg5[%c1_41, %c0_42, %c0_43] : memref<6x1x16xf32, #tpu.memory_space<vmem>>, vector<1x1x16xf32>
    %48 = vector.shape_cast %47 : vector<1x1x16xf32> to vector<1x16xf32>
    %49 = vector.broadcast %48 : vector<1x16xf32> to vector<49x16xf32>
    %50 = arith.addf %46, %49 : vector<49x16xf32>
    %c2 = arith.constant 2 : index
    %c0_44 = arith.constant 0 : index
    %c0_45 = arith.constant 0 : index
    %51 = vector.load %arg4[%c2, %c0_44, %c0_45] : memref<6x32x16xbf16, #tpu.memory_space<vmem>>, vector<1x32x16xbf16>
    %52 = vector.shape_cast %51 : vector<1x32x16xbf16> to vector<32x16xbf16>
    %cst_46 = arith.constant dense<0.000000e+00> : vector<49x16xf32>
    %53 = tpu.matmul %36, %52, %cst_46 {dimension_numbers = #tpu.dot_dimension_numbers<[1], [0], [0], [1], [0, 0, 1, 1], [], []>} : vector<49x32xbf16>, vector<32x16xbf16>, vector<49x16xf32> -> vector<49x16xf32>
    %c2_47 = arith.constant 2 : index
    %c0_48 = arith.constant 0 : index
    %c0_49 = arith.constant 0 : index
    %54 = vector.load %arg5[%c2_47, %c0_48, %c0_49] : memref<6x1x16xf32, #tpu.memory_space<vmem>>, vector<1x1x16xf32>
    %55 = vector.shape_cast %54 : vector<1x1x16xf32> to vector<1x16xf32>
    %56 = vector.broadcast %55 : vector<1x16xf32> to vector<49x16xf32>
    %57 = arith.addf %53, %56 : vector<49x16xf32>
    %58 = arith.truncf %43 : vector<49x16xf32> to vector<49x16xbf16>
    %59 = arith.truncf %50 : vector<49x16xf32> to vector<49x16xbf16>
    %cst_50 = arith.constant dense<0.000000e+00> : vector<49x49xf32>
    %60 = tpu.matmul %58, %59, %cst_50 {dimension_numbers = #tpu.dot_dimension_numbers<[1], [1], [0], [0], [0, 0, 1, 0], [], []>} : vector<49x16xbf16>, vector<49x16xbf16>, vector<49x49xf32> -> vector<49x49xf32>
    %cst_51 = arith.constant 2.500000e-01 : f32
    %61 = vector.broadcast %cst_51 : f32 to vector<49x49xf32>
    %62 = arith.mulf %60, %61 : vector<49x49xf32>
    %c0_52 = arith.constant 0 : index
    %c0_53 = arith.constant 0 : index
    %c0_54 = arith.constant 0 : index
    %63 = vector.load %arg6[%c0_52, %c0_53, %c0_54] : memref<2x49x49xf32, #tpu.memory_space<vmem>>, vector<1x49x49xf32>
    %64 = vector.shape_cast %63 : vector<1x49x49xf32> to vector<49x49xf32>
    %65 = arith.addf %62, %64 : vector<49x49xf32>
    %cst_55 = arith.constant dense<0xFF800000> : vector<49xf32>
    %66 = vector.multi_reduction <maximumf>, %65, %cst_55 [1] : vector<49x49xf32> to vector<49xf32>
    %67 = vector.shape_cast %66 : vector<49xf32> to vector<49x1xf32>
    %68 = vector.broadcast %67 : vector<49x1xf32> to vector<49x49xf32>
    %69 = arith.subf %65, %68 : vector<49x49xf32>
    %70 = math.exp %69 : vector<49x49xf32>
    %cst_56 = arith.constant dense<0.000000e+00> : vector<49xf32>
    %71 = vector.multi_reduction <add>, %70, %cst_56 [1] : vector<49x49xf32> to vector<49xf32>
    %72 = vector.shape_cast %71 : vector<49xf32> to vector<49x1xf32>
    %73 = tpu.reciprocal %72 {approx = true} : vector<49x1xf32> -> vector<49x1xf32>
    %74 = vector.broadcast %73 : vector<49x1xf32> to vector<49x49xf32>
    %75 = arith.mulf %70, %74 : vector<49x49xf32>
    %c0_57 = arith.constant 0 : index
    %c0_58 = arith.constant 0 : index
    %c0_59 = arith.constant 0 : index
    %c0_60 = arith.constant 0 : index
    %76 = vector.load %arg20[%c0_57, %c0_58, %c0_59, %c0_60] : memref<2x2x49x49xf32, #tpu.memory_space<vmem>>, vector<1x1x49x49xf32>
    %77 = vector.shape_cast %76 : vector<1x1x49x49xf32> to vector<49x49xf32>
    %78 = vector.shape_cast %75 : vector<49x49xf32> to vector<1x1x49x49xf32>
    tpu.vector_store %arg20[%c0_57, %c0_58, %c0_59, %c0_60], %78 {strides = array<i32>} : memref<2x2x49x49xf32, #tpu.memory_space<vmem>>, vector<1x1x49x49xf32>,
    %79 = arith.truncf %75 : vector<49x49xf32> to vector<49x49xbf16>
    %80 = arith.truncf %57 : vector<49x16xf32> to vector<49x16xbf16>
    %cst_61 = arith.constant dense<0.000000e+00> : vector<49x16xf32>
    %81 = tpu.matmul %79, %80, %cst_61 {dimension_numbers = #tpu.dot_dimension_numbers<[1], [0], [0], [1], [0, 0, 1, 1], [], []>} : vector<49x49xbf16>, vector<49x16xbf16>, vector<49x16xf32> -> vector<49x16xf32>
    %82 = arith.truncf %81 : vector<49x16xf32> to vector<49x16xbf16>
    %c0_62 = arith.constant 0 : index
    %c0_63 = arith.constant 0 : index
    %c0_64 = arith.constant 0 : index
    %83 = vector.load %arg7[%c0_62, %c0_63, %c0_64] : memref<2x16x32xbf16, #tpu.memory_space<vmem>>, vector<1x16x32xbf16>
    %84 = vector.shape_cast %83 : vector<1x16x32xbf16> to vector<16x32xbf16>
    %cst_65 = arith.constant dense<0.000000e+00> : vector<49x32xf32>
    %85 = tpu.matmul %82, %84, %cst_65 {dimension_numbers = #tpu.dot_dimension_numbers<[1], [0], [0], [1], [0, 0, 1, 1], [], []>} : vector<49x16xbf16>, vector<16x32xbf16>, vector<49x32xf32> -> vector<49x32xf32>
    %c3 = arith.constant 3 : index
    %c0_66 = arith.constant 0 : index
    %c0_67 = arith.constant 0 : index
    %86 = vector.load %arg4[%c3, %c0_66, %c0_67] : memref<6x32x16xbf16, #tpu.memory_space<vmem>>, vector<1x32x16xbf16>
    %87 = vector.shape_cast %86 : vector<1x32x16xbf16> to vector<32x16xbf16>
    %cst_68 = arith.constant dense<0.000000e+00> : vector<49x16xf32>
    %88 = tpu.matmul %36, %87, %cst_68 {dimension_numbers = #tpu.dot_dimension_numbers<[1], [0], [0], [1], [0, 0, 1, 1], [], []>} : vector<49x32xbf16>, vector<32x16xbf16>, vector<49x16xf32> -> vector<49x16xf32>
    %c3_69 = arith.constant 3 : index
    %c0_70 = arith.constant 0 : index
    %c0_71 = arith.constant 0 : index
    %89 = vector.load %arg5[%c3_69, %c0_70, %c0_71] : memref<6x1x16xf32, #tpu.memory_space<vmem>>, vector<1x1x16xf32>
    %90 = vector.shape_cast %89 : vector<1x1x16xf32> to vector<1x16xf32>
    %91 = vector.broadcast %90 : vector<1x16xf32> to vector<49x16xf32>
    %92 = arith.addf %88, %91 : vector<49x16xf32>
    %c4 = arith.constant 4 : index
    %c0_72 = arith.constant 0 : index
    %c0_73 = arith.constant 0 : index
    %93 = vector.load %arg4[%c4, %c0_72, %c0_73] : memref<6x32x16xbf16, #tpu.memory_space<vmem>>, vector<1x32x16xbf16>
    %94 = vector.shape_cast %93 : vector<1x32x16xbf16> to vector<32x16xbf16>
    %cst_74 = arith.constant dense<0.000000e+00> : vector<49x16xf32>
    %95 = tpu.matmul %36, %94, %cst_74 {dimension_numbers = #tpu.dot_dimension_numbers<[1], [0], [0], [1], [0, 0, 1, 1], [], []>} : vector<49x32xbf16>, vector<32x16xbf16>, vector<49x16xf32> -> vector<49x16xf32>
    %c4_75 = arith.constant 4 : index
    %c0_76 = arith.constant 0 : index
    %c0_77 = arith.constant 0 : index
    %96 = vector.load %arg5[%c4_75, %c0_76, %c0_77] : memref<6x1x16xf32, #tpu.memory_space<vmem>>, vector<1x1x16xf32>
    %97 = vector.shape_cast %96 : vector<1x1x16xf32> to vector<1x16xf32>
    %98 = vector.broadcast %97 : vector<1x16xf32> to vector<49x16xf32>
    %99 = arith.addf %95, %98 : vector<49x16xf32>
    %c5 = arith.constant 5 : index
    %c0_78 = arith.constant 0 : index
    %c0_79 = arith.constant 0 : index
    %100 = vector.load %arg4[%c5, %c0_78, %c0_79] : memref<6x32x16xbf16, #tpu.memory_space<vmem>>, vector<1x32x16xbf16>
    %101 = vector.shape_cast %100 : vector<1x32x16xbf16> to vector<32x16xbf16>
    %cst_80 = arith.constant dense<0.000000e+00> : vector<49x16xf32>
    %102 = tpu.matmul %36, %101, %cst_80 {dimension_numbers = #tpu.dot_dimension_numbers<[1], [0], [0], [1], [0, 0, 1, 1], [], []>} : vector<49x32xbf16>, vector<32x16xbf16>, vector<49x16xf32> -> vector<49x16xf32>
    %c5_81 = arith.constant 5 : index
    %c0_82 = arith.constant 0 : index
    %c0_83 = arith.constant 0 : index
    %103 = vector.load %arg5[%c5_81, %c0_82, %c0_83] : memref<6x1x16xf32, #tpu.memory_space<vmem>>, vector<1x1x16xf32>
    %104 = vector.shape_cast %103 : vector<1x1x16xf32> to vector<1x16xf32>
    %105 = vector.broadcast %104 : vector<1x16xf32> to vector<49x16xf32>
    %106 = arith.addf %102, %105 : vector<49x16xf32>
    %107 = arith.truncf %92 : vector<49x16xf32> to vector<49x16xbf16>
    %108 = arith.truncf %99 : vector<49x16xf32> to vector<49x16xbf16>
    %cst_84 = arith.constant dense<0.000000e+00> : vector<49x49xf32>
    %109 = tpu.matmul %107, %108, %cst_84 {dimension_numbers = #tpu.dot_dimension_numbers<[1], [1], [0], [0], [0, 0, 1, 0], [], []>} : vector<49x16xbf16>, vector<49x16xbf16>, vector<49x49xf32> -> vector<49x49xf32>
    %cst_85 = arith.constant 2.500000e-01 : f32
    %110 = vector.broadcast %cst_85 : f32 to vector<49x49xf32>
    %111 = arith.mulf %109, %110 : vector<49x49xf32>
    %c1_86 = arith.constant 1 : index
    %c0_87 = arith.constant 0 : index
    %c0_88 = arith.constant 0 : index
    %112 = vector.load %arg6[%c1_86, %c0_87, %c0_88] : memref<2x49x49xf32, #tpu.memory_space<vmem>>, vector<1x49x49xf32>
    %113 = vector.shape_cast %112 : vector<1x49x49xf32> to vector<49x49xf32>
    %114 = arith.addf %111, %113 : vector<49x49xf32>
    %cst_89 = arith.constant dense<0xFF800000> : vector<49xf32>
    %115 = vector.multi_reduction <maximumf>, %114, %cst_89 [1] : vector<49x49xf32> to vector<49xf32>
    %116 = vector.shape_cast %115 : vector<49xf32> to vector<49x1xf32>
    %117 = vector.broadcast %116 : vector<49x1xf32> to vector<49x49xf32>
    %118 = arith.subf %114, %117 : vector<49x49xf32>
    %119 = math.exp %118 : vector<49x49xf32>
    %cst_90 = arith.constant dense<0.000000e+00> : vector<49xf32>
    %120 = vector.multi_reduction <add>, %119, %cst_90 [1] : vector<49x49xf32> to vector<49xf32>
    %121 = vector.shape_cast %120 : vector<49xf32> to vector<49x1xf32>
    %122 = tpu.reciprocal %121 {approx = true} : vector<49x1xf32> -> vector<49x1xf32>
    %123 = vector.broadcast %122 : vector<49x1xf32> to vector<49x49xf32>
    %124 = arith.mulf %119, %123 : vector<49x49xf32>
    %c0_91 = arith.constant 0 : index
    %c1_92 = arith.constant 1 : index
    %c0_93 = arith.constant 0 : index
    %c0_94 = arith.constant 0 : index
    %125 = vector.load %arg20[%c0_91, %c1_92, %c0_93, %c0_94] : memref<2x2x49x49xf32, #tpu.memory_space<vmem>>, vector<1x1x49x49xf32>
    %126 = vector.shape_cast %125 : vector<1x1x49x49xf32> to vector<49x49xf32>
    %127 = vector.shape_cast %124 : vector<49x49xf32> to vector<1x1x49x49xf32>
    tpu.vector_store %arg20[%c0_91, %c1_92, %c0_93, %c0_94], %127 {strides = array<i32>} : memref<2x2x49x49xf32, #tpu.memory_space<vmem>>, vector<1x1x49x49xf32>,
    %128 = arith.truncf %124 : vector<49x49xf32> to vector<49x49xbf16>
    %129 = arith.truncf %106 : vector<49x16xf32> to vector<49x16xbf16>
    %cst_95 = arith.constant dense<0.000000e+00> : vector<49x16xf32>
    %130 = tpu.matmul %128, %129, %cst_95 {dimension_numbers = #tpu.dot_dimension_numbers<[1], [0], [0], [1], [0, 0, 1, 1], [], []>} : vector<49x49xbf16>, vector<49x16xbf16>, vector<49x16xf32> -> vector<49x16xf32>
    %131 = arith.truncf %130 : vector<49x16xf32> to vector<49x16xbf16>
    %c1_96 = arith.constant 1 : index
    %c0_97 = arith.constant 0 : index
    %c0_98 = arith.constant 0 : index
    %132 = vector.load %arg7[%c1_96, %c0_97, %c0_98] : memref<2x16x32xbf16, #tpu.memory_space<vmem>>, vector<1x16x32xbf16>
    %133 = vector.shape_cast %132 : vector<1x16x32xbf16> to vector<16x32xbf16>
    %cst_99 = arith.constant dense<0.000000e+00> : vector<49x32xf32>
    %134 = tpu.matmul %131, %133, %cst_99 {dimension_numbers = #tpu.dot_dimension_numbers<[1], [0], [0], [1], [0, 0, 1, 1], [], []>} : vector<49x16xbf16>, vector<16x32xbf16>, vector<49x32xf32> -> vector<49x32xf32>
    %135 = arith.addf %85, %134 : vector<49x32xf32>
    %136 = arith.addf %13, %135 : vector<49x32xf32>
    %137 = vector.broadcast %4 : vector<1x32xf32> to vector<49x32xf32>
    %138 = arith.addf %136, %137 : vector<49x32xf32>
    %139 = vector.extract_strided_slice %11 {offsets = [4, 0, 0], sizes = [1, 1, 32], strides = [1, 1, 1]} : vector<9x1x32xf32> to vector<1x1x32xf32>
    %140 = vector.shape_cast %139 : vector<1x1x32xf32> to vector<1x32xf32>
    %141 = vector.broadcast %140 : vector<1x32xf32> to vector<49x32xf32>
    %142 = arith.mulf %138, %141 : vector<49x32xf32>
    %c0_100 = arith.constant 0 : index
    %c0_101 = arith.constant 0 : index
    %c0_102 = arith.constant 0 : index
    %143 = vector.load %arg9[%c0_100, %c0_101, %c0_102] : memref<9x49x49xf32, #tpu.memory_space<vmem>>, vector<1x49x49xf32>
    %144 = vector.shape_cast %143 : vector<1x49x49xf32> to vector<49x49xf32>
    %cst_103 = arith.constant dense<0.000000e+00> : vector<49x32xf32>
    %145 = tpu.matmul %144, %138, %cst_103 {dimension_numbers = #tpu.dot_dimension_numbers<[1], [0], [0], [1], [0, 0, 1, 1], [], []>} : vector<49x49xf32>, vector<49x32xf32>, vector<49x32xf32> -> vector<49x32xf32>
    %146 = vector.extract_strided_slice %11 {offsets = [0, 0, 0], sizes = [1, 1, 32], strides = [1, 1, 1]} : vector<9x1x32xf32> to vector<1x1x32xf32>
    %147 = vector.shape_cast %146 : vector<1x1x32xf32> to vector<1x32xf32>
    %148 = vector.broadcast %147 : vector<1x32xf32> to vector<49x32xf32>
    %149 = arith.mulf %145, %148 : vector<49x32xf32>
    %150 = arith.addf %142, %149 : vector<49x32xf32>
    %c1_104 = arith.constant 1 : index
    %c0_105 = arith.constant 0 : index
    %c0_106 = arith.constant 0 : index
    %151 = vector.load %arg9[%c1_104, %c0_105, %c0_106] : memref<9x49x49xf32, #tpu.memory_space<vmem>>, vector<1x49x49xf32>
    %152 = vector.shape_cast %151 : vector<1x49x49xf32> to vector<49x49xf32>
    %cst_107 = arith.constant dense<0.000000e+00> : vector<49x32xf32>
    %153 = tpu.matmul %152, %138, %cst_107 {dimension_numbers = #tpu.dot_dimension_numbers<[1], [0], [0], [1], [0, 0, 1, 1], [], []>} : vector<49x49xf32>, vector<49x32xf32>, vector<49x32xf32> -> vector<49x32xf32>
    %154 = vector.extract_strided_slice %11 {offsets = [1, 0, 0], sizes = [1, 1, 32], strides = [1, 1, 1]} : vector<9x1x32xf32> to vector<1x1x32xf32>
    %155 = vector.shape_cast %154 : vector<1x1x32xf32> to vector<1x32xf32>
    %156 = vector.broadcast %155 : vector<1x32xf32> to vector<49x32xf32>
    %157 = arith.mulf %153, %156 : vector<49x32xf32>
    %158 = arith.addf %150, %157 : vector<49x32xf32>
    %c2_108 = arith.constant 2 : index
    %c0_109 = arith.constant 0 : index
    %c0_110 = arith.constant 0 : index
    %159 = vector.load %arg9[%c2_108, %c0_109, %c0_110] : memref<9x49x49xf32, #tpu.memory_space<vmem>>, vector<1x49x49xf32>
    %160 = vector.shape_cast %159 : vector<1x49x49xf32> to vector<49x49xf32>
    %cst_111 = arith.constant dense<0.000000e+00> : vector<49x32xf32>
    %161 = tpu.matmul %160, %138, %cst_111 {dimension_numbers = #tpu.dot_dimension_numbers<[1], [0], [0], [1], [0, 0, 1, 1], [], []>} : vector<49x49xf32>, vector<49x32xf32>, vector<49x32xf32> -> vector<49x32xf32>
    %162 = vector.extract_strided_slice %11 {offsets = [2, 0, 0], sizes = [1, 1, 32], strides = [1, 1, 1]} : vector<9x1x32xf32> to vector<1x1x32xf32>
    %163 = vector.shape_cast %162 : vector<1x1x32xf32> to vector<1x32xf32>
    %164 = vector.broadcast %163 : vector<1x32xf32> to vector<49x32xf32>
    %165 = arith.mulf %161, %164 : vector<49x32xf32>
    %166 = arith.addf %158, %165 : vector<49x32xf32>
    %c3_112 = arith.constant 3 : index
    %c0_113 = arith.constant 0 : index
    %c0_114 = arith.constant 0 : index
    %167 = vector.load %arg9[%c3_112, %c0_113, %c0_114] : memref<9x49x49xf32, #tpu.memory_space<vmem>>, vector<1x49x49xf32>
    %168 = vector.shape_cast %167 : vector<1x49x49xf32> to vector<49x49xf32>
    %cst_115 = arith.constant dense<0.000000e+00> : vector<49x32xf32>
    %169 = tpu.matmul %168, %138, %cst_115 {dimension_numbers = #tpu.dot_dimension_numbers<[1], [0], [0], [1], [0, 0, 1, 1], [], []>} : vector<49x49xf32>, vector<49x32xf32>, vector<49x32xf32> -> vector<49x32xf32>
    %170 = vector.extract_strided_slice %11 {offsets = [3, 0, 0], sizes = [1, 1, 32], strides = [1, 1, 1]} : vector<9x1x32xf32> to vector<1x1x32xf32>
    %171 = vector.shape_cast %170 : vector<1x1x32xf32> to vector<1x32xf32>
    %172 = vector.broadcast %171 : vector<1x32xf32> to vector<49x32xf32>
    %173 = arith.mulf %169, %172 : vector<49x32xf32>
    %174 = arith.addf %166, %173 : vector<49x32xf32>
    %c5_116 = arith.constant 5 : index
    %c0_117 = arith.constant 0 : index
    %c0_118 = arith.constant 0 : index
    %175 = vector.load %arg9[%c5_116, %c0_117, %c0_118] : memref<9x49x49xf32, #tpu.memory_space<vmem>>, vector<1x49x49xf32>
    %176 = vector.shape_cast %175 : vector<1x49x49xf32> to vector<49x49xf32>
    %cst_119 = arith.constant dense<0.000000e+00> : vector<49x32xf32>
    %177 = tpu.matmul %176, %138, %cst_119 {dimension_numbers = #tpu.dot_dimension_numbers<[1], [0], [0], [1], [0, 0, 1, 1], [], []>} : vector<49x49xf32>, vector<49x32xf32>, vector<49x32xf32> -> vector<49x32xf32>
    %178 = vector.extract_strided_slice %11 {offsets = [5, 0, 0], sizes = [1, 1, 32], strides = [1, 1, 1]} : vector<9x1x32xf32> to vector<1x1x32xf32>
    %179 = vector.shape_cast %178 : vector<1x1x32xf32> to vector<1x32xf32>
    %180 = vector.broadcast %179 : vector<1x32xf32> to vector<49x32xf32>
    %181 = arith.mulf %177, %180 : vector<49x32xf32>
    %182 = arith.addf %174, %181 : vector<49x32xf32>
    %c6 = arith.constant 6 : index
    %c0_120 = arith.constant 0 : index
    %c0_121 = arith.constant 0 : index
    %183 = vector.load %arg9[%c6, %c0_120, %c0_121] : memref<9x49x49xf32, #tpu.memory_space<vmem>>, vector<1x49x49xf32>
    %184 = vector.shape_cast %183 : vector<1x49x49xf32> to vector<49x49xf32>
    %cst_122 = arith.constant dense<0.000000e+00> : vector<49x32xf32>
    %185 = tpu.matmul %184, %138, %cst_122 {dimension_numbers = #tpu.dot_dimension_numbers<[1], [0], [0], [1], [0, 0, 1, 1], [], []>} : vector<49x49xf32>, vector<49x32xf32>, vector<49x32xf32> -> vector<49x32xf32>
    %186 = vector.extract_strided_slice %11 {offsets = [6, 0, 0], sizes = [1, 1, 32], strides = [1, 1, 1]} : vector<9x1x32xf32> to vector<1x1x32xf32>
    %187 = vector.shape_cast %186 : vector<1x1x32xf32> to vector<1x32xf32>
    %188 = vector.broadcast %187 : vector<1x32xf32> to vector<49x32xf32>
    %189 = arith.mulf %185, %188 : vector<49x32xf32>
    %190 = arith.addf %182, %189 : vector<49x32xf32>
    %c7 = arith.constant 7 : index
    %c0_123 = arith.constant 0 : index
    %c0_124 = arith.constant 0 : index
    %191 = vector.load %arg9[%c7, %c0_123, %c0_124] : memref<9x49x49xf32, #tpu.memory_space<vmem>>, vector<1x49x49xf32>
    %192 = vector.shape_cast %191 : vector<1x49x49xf32> to vector<49x49xf32>
    %cst_125 = arith.constant dense<0.000000e+00> : vector<49x32xf32>
    %193 = tpu.matmul %192, %138, %cst_125 {dimension_numbers = #tpu.dot_dimension_numbers<[1], [0], [0], [1], [0, 0, 1, 1], [], []>} : vector<49x49xf32>, vector<49x32xf32>, vector<49x32xf32> -> vector<49x32xf32>
    %194 = vector.extract_strided_slice %11 {offsets = [7, 0, 0], sizes = [1, 1, 32], strides = [1, 1, 1]} : vector<9x1x32xf32> to vector<1x1x32xf32>
    %195 = vector.shape_cast %194 : vector<1x1x32xf32> to vector<1x32xf32>
    %196 = vector.broadcast %195 : vector<1x32xf32> to vector<49x32xf32>
    %197 = arith.mulf %193, %196 : vector<49x32xf32>
    %198 = arith.addf %190, %197 : vector<49x32xf32>
    %c8 = arith.constant 8 : index
    %c0_126 = arith.constant 0 : index
    %c0_127 = arith.constant 0 : index
    %199 = vector.load %arg9[%c8, %c0_126, %c0_127] : memref<9x49x49xf32, #tpu.memory_space<vmem>>, vector<1x49x49xf32>
    %200 = vector.shape_cast %199 : vector<1x49x49xf32> to vector<49x49xf32>
    %cst_128 = arith.constant dense<0.000000e+00> : vector<49x32xf32>
    %201 = tpu.matmul %200, %138, %cst_128 {dimension_numbers = #tpu.dot_dimension_numbers<[1], [0], [0], [1], [0, 0, 1, 1], [], []>} : vector<49x49xf32>, vector<49x32xf32>, vector<49x32xf32> -> vector<49x32xf32>
    %202 = vector.extract_strided_slice %11 {offsets = [8, 0, 0], sizes = [1, 1, 32], strides = [1, 1, 1]} : vector<9x1x32xf32> to vector<1x1x32xf32>
    %203 = vector.shape_cast %202 : vector<1x1x32xf32> to vector<1x32xf32>
    %204 = vector.broadcast %203 : vector<1x32xf32> to vector<49x32xf32>
    %205 = arith.mulf %201, %204 : vector<49x32xf32>
    %206 = arith.addf %198, %205 : vector<49x32xf32>
    %207 = vector.broadcast %5 : vector<1x32xf32> to vector<49x32xf32>
    %208 = arith.mulf %206, %207 : vector<49x32xf32>
    %209 = vector.broadcast %6 : vector<1x32xf32> to vector<49x32xf32>
    %210 = arith.addf %208, %209 : vector<49x32xf32>
    %cst_129 = arith.constant dense<0.000000e+00> : vector<49xf32>
    %211 = vector.multi_reduction <add>, %210, %cst_129 [1] : vector<49x32xf32> to vector<49xf32>
    %212 = vector.shape_cast %211 : vector<49xf32> to vector<49x1xf32>
    %cst_130 = arith.constant 3.200000e+01 : f32
    %213 = vector.broadcast %cst_130 : f32 to vector<49x1xf32>
    %214 = arith.divf %212, %213 : vector<49x1xf32>
    %215 = vector.broadcast %214 : vector<49x1xf32> to vector<49x32xf32>
    %216 = arith.subf %210, %215 : vector<49x32xf32>
    %217 = arith.mulf %216, %216 : vector<49x32xf32>
    %cst_131 = arith.constant dense<0.000000e+00> : vector<49xf32>
    %218 = vector.multi_reduction <add>, %217, %cst_131 [1] : vector<49x32xf32> to vector<49xf32>
    %219 = vector.shape_cast %218 : vector<49xf32> to vector<49x1xf32>
    %cst_132 = arith.constant 3.200000e+01 : f32
    %220 = vector.broadcast %cst_132 : f32 to vector<49x1xf32>
    %221 = arith.divf %219, %220 : vector<49x1xf32>
    %222 = vector.broadcast %214 : vector<49x1xf32> to vector<49x32xf32>
    %223 = arith.subf %210, %222 : vector<49x32xf32>
    %cst_133 = arith.constant 9.99999974E-6 : f32
    %224 = vector.broadcast %cst_133 : f32 to vector<49x1xf32>
    %225 = arith.addf %221, %224 : vector<49x1xf32>
    %226 = math.rsqrt %225 : vector<49x1xf32>
    %227 = vector.broadcast %226 : vector<49x1xf32> to vector<49x32xf32>
    %228 = arith.mulf %223, %227 : vector<49x32xf32>
    %229 = vector.broadcast %2 : vector<1x32xf32> to vector<49x32xf32>
    %230 = arith.mulf %228, %229 : vector<49x32xf32>
    %231 = vector.broadcast %3 : vector<1x32xf32> to vector<49x32xf32>
    %232 = arith.addf %230, %231 : vector<49x32xf32>
    %233 = arith.truncf %232 : vector<49x32xf32> to vector<49x32xbf16>
    %cst_134 = arith.constant dense<0.000000e+00> : vector<49x128xf32>
    %234 = tpu.matmul %233, %9, %cst_134 {dimension_numbers = #tpu.dot_dimension_numbers<[1], [0], [0], [1], [0, 0, 1, 1], [], []>} : vector<49x32xbf16>, vector<32x128xbf16>, vector<49x128xf32> -> vector<49x128xf32>
    %235 = vector.broadcast %7 : vector<1x128xf32> to vector<49x128xf32>
    %236 = arith.addf %234, %235 : vector<49x128xf32>
    %cst_135 = arith.constant 5.000000e-01 : f32
    %237 = vector.broadcast %cst_135 : f32 to vector<49x128xf32>
    %238 = arith.mulf %237, %236 : vector<49x128xf32>
    %cst_136 = arith.constant 4.471500e-02 : f32
    %239 = vector.broadcast %cst_136 : f32 to vector<49x128xf32>
    %240 = arith.mulf %239, %236 : vector<49x128xf32>
    %241 = arith.mulf %240, %236 : vector<49x128xf32>
    %242 = arith.mulf %241, %236 : vector<49x128xf32>
    %243 = arith.addf %236, %242 : vector<49x128xf32>
    %cst_137 = arith.constant 0.797884583 : f32
    %244 = vector.broadcast %cst_137 : f32 to vector<49x128xf32>
    %245 = arith.mulf %244, %243 : vector<49x128xf32>
    %246 = math.tanh %245 : vector<49x128xf32>
    %cst_138 = arith.constant 1.000000e+00 : f32
    %247 = vector.broadcast %cst_138 : f32 to vector<49x128xf32>
    %248 = arith.addf %247, %246 : vector<49x128xf32>
    %249 = arith.mulf %238, %248 : vector<49x128xf32>
    %250 = arith.truncf %249 : vector<49x128xf32> to vector<49x128xbf16>
    %cst_139 = arith.constant dense<0.000000e+00> : vector<49x32xf32>
    %251 = tpu.matmul %250, %10, %cst_139 {dimension_numbers = #tpu.dot_dimension_numbers<[1], [0], [0], [1], [0, 0, 1, 1], [], []>} : vector<49x128xbf16>, vector<128x32xbf16>, vector<49x32xf32> -> vector<49x32xf32>
    %252 = arith.addf %210, %251 : vector<49x32xf32>
    %253 = vector.broadcast %8 : vector<1x32xf32> to vector<49x32xf32>
    %254 = arith.addf %252, %253 : vector<49x32xf32>
    %c0_140 = arith.constant 0 : index
    %c0_141 = arith.constant 0 : index
    %c0_142 = arith.constant 0 : index
    %255 = vector.load %arg19[%c0_140, %c0_141, %c0_142] : memref<2x49x32xf32, #tpu.memory_space<vmem>>, vector<1x49x32xf32>
    %256 = vector.shape_cast %255 : vector<1x49x32xf32> to vector<49x32xf32>
    %257 = vector.shape_cast %254 : vector<49x32xf32> to vector<1x49x32xf32>
    tpu.vector_store %arg19[%c0_140, %c0_141, %c0_142], %257 {strides = array<i32>} : memref<2x49x32xf32, #tpu.memory_space<vmem>>, vector<1x49x32xf32>,
    %c1_143 = arith.constant 1 : index
    %c0_144 = arith.constant 0 : index
    %c0_145 = arith.constant 0 : index
    %258 = vector.load %arg1[%c1_143, %c0_144, %c0_145] : memref<2x49x32xf32, #tpu.memory_space<vmem>>, vector<1x49x32xf32>
    %259 = vector.shape_cast %258 : vector<1x49x32xf32> to vector<49x32xf32>
    %cst_146 = arith.constant dense<0.000000e+00> : vector<49xf32>
    %260 = vector.multi_reduction <add>, %259, %cst_146 [1] : vector<49x32xf32> to vector<49xf32>
    %261 = vector.shape_cast %260 : vector<49xf32> to vector<49x1xf32>
    %cst_147 = arith.constant 3.200000e+01 : f32
    %262 = vector.broadcast %cst_147 : f32 to vector<49x1xf32>
    %263 = arith.divf %261, %262 : vector<49x1xf32>
    %264 = vector.broadcast %263 : vector<49x1xf32> to vector<49x32xf32>
    %265 = arith.subf %259, %264 : vector<49x32xf32>
    %266 = arith.mulf %265, %265 : vector<49x32xf32>
    %cst_148 = arith.constant dense<0.000000e+00> : vector<49xf32>
    %267 = vector.multi_reduction <add>, %266, %cst_148 [1] : vector<49x32xf32> to vector<49xf32>
    %268 = vector.shape_cast %267 : vector<49xf32> to vector<49x1xf32>
    %cst_149 = arith.constant 3.200000e+01 : f32
    %269 = vector.broadcast %cst_149 : f32 to vector<49x1xf32>
    %270 = arith.divf %268, %269 : vector<49x1xf32>
    %271 = vector.broadcast %263 : vector<49x1xf32> to vector<49x32xf32>
    %272 = arith.subf %259, %271 : vector<49x32xf32>
    %cst_150 = arith.constant 9.99999974E-6 : f32
    %273 = vector.broadcast %cst_150 : f32 to vector<49x1xf32>
    %274 = arith.addf %270, %273 : vector<49x1xf32>
    %275 = math.rsqrt %274 : vector<49x1xf32>
    %276 = vector.broadcast %275 : vector<49x1xf32> to vector<49x32xf32>
    %277 = arith.mulf %272, %276 : vector<49x32xf32>
    %278 = vector.broadcast %0 : vector<1x32xf32> to vector<49x32xf32>
    %279 = arith.mulf %277, %278 : vector<49x32xf32>
    %280 = vector.broadcast %1 : vector<1x32xf32> to vector<49x32xf32>
    %281 = arith.addf %279, %280 : vector<49x32xf32>
    %282 = arith.truncf %281 : vector<49x32xf32> to vector<49x32xbf16>
    %c0_151 = arith.constant 0 : index
    %c0_152 = arith.constant 0 : index
    %c0_153 = arith.constant 0 : index
    %283 = vector.load %arg4[%c0_151, %c0_152, %c0_153] : memref<6x32x16xbf16, #tpu.memory_space<vmem>>, vector<1x32x16xbf16>
    %284 = vector.shape_cast %283 : vector<1x32x16xbf16> to vector<32x16xbf16>
    %cst_154 = arith.constant dense<0.000000e+00> : vector<49x16xf32>
    %285 = tpu.matmul %282, %284, %cst_154 {dimension_numbers = #tpu.dot_dimension_numbers<[1], [0], [0], [1], [0, 0, 1, 1], [], []>} : vector<49x32xbf16>, vector<32x16xbf16>, vector<49x16xf32> -> vector<49x16xf32>
    %c0_155 = arith.constant 0 : index
    %c0_156 = arith.constant 0 : index
    %c0_157 = arith.constant 0 : index
    %286 = vector.load %arg5[%c0_155, %c0_156, %c0_157] : memref<6x1x16xf32, #tpu.memory_space<vmem>>, vector<1x1x16xf32>
    %287 = vector.shape_cast %286 : vector<1x1x16xf32> to vector<1x16xf32>
    %288 = vector.broadcast %287 : vector<1x16xf32> to vector<49x16xf32>
    %289 = arith.addf %285, %288 : vector<49x16xf32>
    %c1_158 = arith.constant 1 : index
    %c0_159 = arith.constant 0 : index
    %c0_160 = arith.constant 0 : index
    %290 = vector.load %arg4[%c1_158, %c0_159, %c0_160] : memref<6x32x16xbf16, #tpu.memory_space<vmem>>, vector<1x32x16xbf16>
    %291 = vector.shape_cast %290 : vector<1x32x16xbf16> to vector<32x16xbf16>
    %cst_161 = arith.constant dense<0.000000e+00> : vector<49x16xf32>
    %292 = tpu.matmul %282, %291, %cst_161 {dimension_numbers = #tpu.dot_dimension_numbers<[1], [0], [0], [1], [0, 0, 1, 1], [], []>} : vector<49x32xbf16>, vector<32x16xbf16>, vector<49x16xf32> -> vector<49x16xf32>
    %c1_162 = arith.constant 1 : index
    %c0_163 = arith.constant 0 : index
    %c0_164 = arith.constant 0 : index
    %293 = vector.load %arg5[%c1_162, %c0_163, %c0_164] : memref<6x1x16xf32, #tpu.memory_space<vmem>>, vector<1x1x16xf32>
    %294 = vector.shape_cast %293 : vector<1x1x16xf32> to vector<1x16xf32>
    %295 = vector.broadcast %294 : vector<1x16xf32> to vector<49x16xf32>
    %296 = arith.addf %292, %295 : vector<49x16xf32>
    %c2_165 = arith.constant 2 : index
    %c0_166 = arith.constant 0 : index
    %c0_167 = arith.constant 0 : index
    %297 = vector.load %arg4[%c2_165, %c0_166, %c0_167] : memref<6x32x16xbf16, #tpu.memory_space<vmem>>, vector<1x32x16xbf16>
    %298 = vector.shape_cast %297 : vector<1x32x16xbf16> to vector<32x16xbf16>
    %cst_168 = arith.constant dense<0.000000e+00> : vector<49x16xf32>
    %299 = tpu.matmul %282, %298, %cst_168 {dimension_numbers = #tpu.dot_dimension_numbers<[1], [0], [0], [1], [0, 0, 1, 1], [], []>} : vector<49x32xbf16>, vector<32x16xbf16>, vector<49x16xf32> -> vector<49x16xf32>
    %c2_169 = arith.constant 2 : index
    %c0_170 = arith.constant 0 : index
    %c0_171 = arith.constant 0 : index
    %300 = vector.load %arg5[%c2_169, %c0_170, %c0_171] : memref<6x1x16xf32, #tpu.memory_space<vmem>>, vector<1x1x16xf32>
    %301 = vector.shape_cast %300 : vector<1x1x16xf32> to vector<1x16xf32>
    %302 = vector.broadcast %301 : vector<1x16xf32> to vector<49x16xf32>
    %303 = arith.addf %299, %302 : vector<49x16xf32>
    %304 = arith.truncf %289 : vector<49x16xf32> to vector<49x16xbf16>
    %305 = arith.truncf %296 : vector<49x16xf32> to vector<49x16xbf16>
    %cst_172 = arith.constant dense<0.000000e+00> : vector<49x49xf32>
    %306 = tpu.matmul %304, %305, %cst_172 {dimension_numbers = #tpu.dot_dimension_numbers<[1], [1], [0], [0], [0, 0, 1, 0], [], []>} : vector<49x16xbf16>, vector<49x16xbf16>, vector<49x49xf32> -> vector<49x49xf32>
    %cst_173 = arith.constant 2.500000e-01 : f32
    %307 = vector.broadcast %cst_173 : f32 to vector<49x49xf32>
    %308 = arith.mulf %306, %307 : vector<49x49xf32>
    %c0_174 = arith.constant 0 : index
    %c0_175 = arith.constant 0 : index
    %c0_176 = arith.constant 0 : index
    %309 = vector.load %arg6[%c0_174, %c0_175, %c0_176] : memref<2x49x49xf32, #tpu.memory_space<vmem>>, vector<1x49x49xf32>
    %310 = vector.shape_cast %309 : vector<1x49x49xf32> to vector<49x49xf32>
    %311 = arith.addf %308, %310 : vector<49x49xf32>
    %cst_177 = arith.constant dense<0xFF800000> : vector<49xf32>
    %312 = vector.multi_reduction <maximumf>, %311, %cst_177 [1] : vector<49x49xf32> to vector<49xf32>
    %313 = vector.shape_cast %312 : vector<49xf32> to vector<49x1xf32>
    %314 = vector.broadcast %313 : vector<49x1xf32> to vector<49x49xf32>
    %315 = arith.subf %311, %314 : vector<49x49xf32>
    %316 = math.exp %315 : vector<49x49xf32>
    %cst_178 = arith.constant dense<0.000000e+00> : vector<49xf32>
    %317 = vector.multi_reduction <add>, %316, %cst_178 [1] : vector<49x49xf32> to vector<49xf32>
    %318 = vector.shape_cast %317 : vector<49xf32> to vector<49x1xf32>
    %319 = tpu.reciprocal %318 {approx = true} : vector<49x1xf32> -> vector<49x1xf32>
    %320 = vector.broadcast %319 : vector<49x1xf32> to vector<49x49xf32>
    %321 = arith.mulf %316, %320 : vector<49x49xf32>
    %c1_179 = arith.constant 1 : index
    %c0_180 = arith.constant 0 : index
    %c0_181 = arith.constant 0 : index
    %c0_182 = arith.constant 0 : index
    %322 = vector.load %arg20[%c1_179, %c0_180, %c0_181, %c0_182] : memref<2x2x49x49xf32, #tpu.memory_space<vmem>>, vector<1x1x49x49xf32>
    %323 = vector.shape_cast %322 : vector<1x1x49x49xf32> to vector<49x49xf32>
    %324 = vector.shape_cast %321 : vector<49x49xf32> to vector<1x1x49x49xf32>
    tpu.vector_store %arg20[%c1_179, %c0_180, %c0_181, %c0_182], %324 {strides = array<i32>} : memref<2x2x49x49xf32, #tpu.memory_space<vmem>>, vector<1x1x49x49xf32>,
    %325 = arith.truncf %321 : vector<49x49xf32> to vector<49x49xbf16>
    %326 = arith.truncf %303 : vector<49x16xf32> to vector<49x16xbf16>
    %cst_183 = arith.constant dense<0.000000e+00> : vector<49x16xf32>
    %327 = tpu.matmul %325, %326, %cst_183 {dimension_numbers = #tpu.dot_dimension_numbers<[1], [0], [0], [1], [0, 0, 1, 1], [], []>} : vector<49x49xbf16>, vector<49x16xbf16>, vector<49x16xf32> -> vector<49x16xf32>
    %328 = arith.truncf %327 : vector<49x16xf32> to vector<49x16xbf16>
    %c0_184 = arith.constant 0 : index
    %c0_185 = arith.constant 0 : index
    %c0_186 = arith.constant 0 : index
    %329 = vector.load %arg7[%c0_184, %c0_185, %c0_186] : memref<2x16x32xbf16, #tpu.memory_space<vmem>>, vector<1x16x32xbf16>
    %330 = vector.shape_cast %329 : vector<1x16x32xbf16> to vector<16x32xbf16>
    %cst_187 = arith.constant dense<0.000000e+00> : vector<49x32xf32>
    %331 = tpu.matmul %328, %330, %cst_187 {dimension_numbers = #tpu.dot_dimension_numbers<[1], [0], [0], [1], [0, 0, 1, 1], [], []>} : vector<49x16xbf16>, vector<16x32xbf16>, vector<49x32xf32> -> vector<49x32xf32>
    %c3_188 = arith.constant 3 : index
    %c0_189 = arith.constant 0 : index
    %c0_190 = arith.constant 0 : index
    %332 = vector.load %arg4[%c3_188, %c0_189, %c0_190] : memref<6x32x16xbf16, #tpu.memory_space<vmem>>, vector<1x32x16xbf16>
    %333 = vector.shape_cast %332 : vector<1x32x16xbf16> to vector<32x16xbf16>
    %cst_191 = arith.constant dense<0.000000e+00> : vector<49x16xf32>
    %334 = tpu.matmul %282, %333, %cst_191 {dimension_numbers = #tpu.dot_dimension_numbers<[1], [0], [0], [1], [0, 0, 1, 1], [], []>} : vector<49x32xbf16>, vector<32x16xbf16>, vector<49x16xf32> -> vector<49x16xf32>
    %c3_192 = arith.constant 3 : index
    %c0_193 = arith.constant 0 : index
    %c0_194 = arith.constant 0 : index
    %335 = vector.load %arg5[%c3_192, %c0_193, %c0_194] : memref<6x1x16xf32, #tpu.memory_space<vmem>>, vector<1x1x16xf32>
    %336 = vector.shape_cast %335 : vector<1x1x16xf32> to vector<1x16xf32>
    %337 = vector.broadcast %336 : vector<1x16xf32> to vector<49x16xf32>
    %338 = arith.addf %334, %337 : vector<49x16xf32>
    %c4_195 = arith.constant 4 : index
    %c0_196 = arith.constant 0 : index
    %c0_197 = arith.constant 0 : index
    %339 = vector.load %arg4[%c4_195, %c0_196, %c0_197] : memref<6x32x16xbf16, #tpu.memory_space<vmem>>, vector<1x32x16xbf16>
    %340 = vector.shape_cast %339 : vector<1x32x16xbf16> to vector<32x16xbf16>
    %cst_198 = arith.constant dense<0.000000e+00> : vector<49x16xf32>
    %341 = tpu.matmul %282, %340, %cst_198 {dimension_numbers = #tpu.dot_dimension_numbers<[1], [0], [0], [1], [0, 0, 1, 1], [], []>} : vector<49x32xbf16>, vector<32x16xbf16>, vector<49x16xf32> -> vector<49x16xf32>
    %c4_199 = arith.constant 4 : index
    %c0_200 = arith.constant 0 : index
    %c0_201 = arith.constant 0 : index
    %342 = vector.load %arg5[%c4_199, %c0_200, %c0_201] : memref<6x1x16xf32, #tpu.memory_space<vmem>>, vector<1x1x16xf32>
    %343 = vector.shape_cast %342 : vector<1x1x16xf32> to vector<1x16xf32>
    %344 = vector.broadcast %343 : vector<1x16xf32> to vector<49x16xf32>
    %345 = arith.addf %341, %344 : vector<49x16xf32>
    %c5_202 = arith.constant 5 : index
    %c0_203 = arith.constant 0 : index
    %c0_204 = arith.constant 0 : index
    %346 = vector.load %arg4[%c5_202, %c0_203, %c0_204] : memref<6x32x16xbf16, #tpu.memory_space<vmem>>, vector<1x32x16xbf16>
    %347 = vector.shape_cast %346 : vector<1x32x16xbf16> to vector<32x16xbf16>
    %cst_205 = arith.constant dense<0.000000e+00> : vector<49x16xf32>
    %348 = tpu.matmul %282, %347, %cst_205 {dimension_numbers = #tpu.dot_dimension_numbers<[1], [0], [0], [1], [0, 0, 1, 1], [], []>} : vector<49x32xbf16>, vector<32x16xbf16>, vector<49x16xf32> -> vector<49x16xf32>
    %c5_206 = arith.constant 5 : index
    %c0_207 = arith.constant 0 : index
    %c0_208 = arith.constant 0 : index
    %349 = vector.load %arg5[%c5_206, %c0_207, %c0_208] : memref<6x1x16xf32, #tpu.memory_space<vmem>>, vector<1x1x16xf32>
    %350 = vector.shape_cast %349 : vector<1x1x16xf32> to vector<1x16xf32>
    %351 = vector.broadcast %350 : vector<1x16xf32> to vector<49x16xf32>
    %352 = arith.addf %348, %351 : vector<49x16xf32>
    %353 = arith.truncf %338 : vector<49x16xf32> to vector<49x16xbf16>
    %354 = arith.truncf %345 : vector<49x16xf32> to vector<49x16xbf16>
    %cst_209 = arith.constant dense<0.000000e+00> : vector<49x49xf32>
    %355 = tpu.matmul %353, %354, %cst_209 {dimension_numbers = #tpu.dot_dimension_numbers<[1], [1], [0], [0], [0, 0, 1, 0], [], []>} : vector<49x16xbf16>, vector<49x16xbf16>, vector<49x49xf32> -> vector<49x49xf32>
    %cst_210 = arith.constant 2.500000e-01 : f32
    %356 = vector.broadcast %cst_210 : f32 to vector<49x49xf32>
    %357 = arith.mulf %355, %356 : vector<49x49xf32>
    %c1_211 = arith.constant 1 : index
    %c0_212 = arith.constant 0 : index
    %c0_213 = arith.constant 0 : index
    %358 = vector.load %arg6[%c1_211, %c0_212, %c0_213] : memref<2x49x49xf32, #tpu.memory_space<vmem>>, vector<1x49x49xf32>
    %359 = vector.shape_cast %358 : vector<1x49x49xf32> to vector<49x49xf32>
    %360 = arith.addf %357, %359 : vector<49x49xf32>
    %cst_214 = arith.constant dense<0xFF800000> : vector<49xf32>
    %361 = vector.multi_reduction <maximumf>, %360, %cst_214 [1] : vector<49x49xf32> to vector<49xf32>
    %362 = vector.shape_cast %361 : vector<49xf32> to vector<49x1xf32>
    %363 = vector.broadcast %362 : vector<49x1xf32> to vector<49x49xf32>
    %364 = arith.subf %360, %363 : vector<49x49xf32>
    %365 = math.exp %364 : vector<49x49xf32>
    %cst_215 = arith.constant dense<0.000000e+00> : vector<49xf32>
    %366 = vector.multi_reduction <add>, %365, %cst_215 [1] : vector<49x49xf32> to vector<49xf32>
    %367 = vector.shape_cast %366 : vector<49xf32> to vector<49x1xf32>
    %368 = tpu.reciprocal %367 {approx = true} : vector<49x1xf32> -> vector<49x1xf32>
    %369 = vector.broadcast %368 : vector<49x1xf32> to vector<49x49xf32>
    %370 = arith.mulf %365, %369 : vector<49x49xf32>
    %c1_216 = arith.constant 1 : index
    %c1_217 = arith.constant 1 : index
    %c0_218 = arith.constant 0 : index
    %c0_219 = arith.constant 0 : index
    %371 = vector.load %arg20[%c1_216, %c1_217, %c0_218, %c0_219] : memref<2x2x49x49xf32, #tpu.memory_space<vmem>>, vector<1x1x49x49xf32>
    %372 = vector.shape_cast %371 : vector<1x1x49x49xf32> to vector<49x49xf32>
    %373 = vector.shape_cast %370 : vector<49x49xf32> to vector<1x1x49x49xf32>
    tpu.vector_store %arg20[%c1_216, %c1_217, %c0_218, %c0_219], %373 {strides = array<i32>} : memref<2x2x49x49xf32, #tpu.memory_space<vmem>>, vector<1x1x49x49xf32>,
    %374 = arith.truncf %370 : vector<49x49xf32> to vector<49x49xbf16>
    %375 = arith.truncf %352 : vector<49x16xf32> to vector<49x16xbf16>
    %cst_220 = arith.constant dense<0.000000e+00> : vector<49x16xf32>
    %376 = tpu.matmul %374, %375, %cst_220 {dimension_numbers = #tpu.dot_dimension_numbers<[1], [0], [0], [1], [0, 0, 1, 1], [], []>} : vector<49x49xbf16>, vector<49x16xbf16>, vector<49x16xf32> -> vector<49x16xf32>
    %377 = arith.truncf %376 : vector<49x16xf32> to vector<49x16xbf16>
    %c1_221 = arith.constant 1 : index
    %c0_222 = arith.constant 0 : index
    %c0_223 = arith.constant 0 : index
    %378 = vector.load %arg7[%c1_221, %c0_222, %c0_223] : memref<2x16x32xbf16, #tpu.memory_space<vmem>>, vector<1x16x32xbf16>
    %379 = vector.shape_cast %378 : vector<1x16x32xbf16> to vector<16x32xbf16>
    %cst_224 = arith.constant dense<0.000000e+00> : vector<49x32xf32>
    %380 = tpu.matmul %377, %379, %cst_224 {dimension_numbers = #tpu.dot_dimension_numbers<[1], [0], [0], [1], [0, 0, 1, 1], [], []>} : vector<49x16xbf16>, vector<16x32xbf16>, vector<49x32xf32> -> vector<49x32xf32>
    %381 = arith.addf %331, %380 : vector<49x32xf32>
    %382 = arith.addf %259, %381 : vector<49x32xf32>
    %383 = vector.broadcast %4 : vector<1x32xf32> to vector<49x32xf32>
    %384 = arith.addf %382, %383 : vector<49x32xf32>
    %385 = vector.extract_strided_slice %11 {offsets = [4, 0, 0], sizes = [1, 1, 32], strides = [1, 1, 1]} : vector<9x1x32xf32> to vector<1x1x32xf32>
    %386 = vector.shape_cast %385 : vector<1x1x32xf32> to vector<1x32xf32>
    %387 = vector.broadcast %386 : vector<1x32xf32> to vector<49x32xf32>
    %388 = arith.mulf %384, %387 : vector<49x32xf32>
    %c0_225 = arith.constant 0 : index
    %c0_226 = arith.constant 0 : index
    %c0_227 = arith.constant 0 : index
    %389 = vector.load %arg9[%c0_225, %c0_226, %c0_227] : memref<9x49x49xf32, #tpu.memory_space<vmem>>, vector<1x49x49xf32>
    %390 = vector.shape_cast %389 : vector<1x49x49xf32> to vector<49x49xf32>
    %cst_228 = arith.constant dense<0.000000e+00> : vector<49x32xf32>
    %391 = tpu.matmul %390, %384, %cst_228 {dimension_numbers = #tpu.dot_dimension_numbers<[1], [0], [0], [1], [0, 0, 1, 1], [], []>} : vector<49x49xf32>, vector<49x32xf32>, vector<49x32xf32> -> vector<49x32xf32>
    %392 = vector.extract_strided_slice %11 {offsets = [0, 0, 0], sizes = [1, 1, 32], strides = [1, 1, 1]} : vector<9x1x32xf32> to vector<1x1x32xf32>
    %393 = vector.shape_cast %392 : vector<1x1x32xf32> to vector<1x32xf32>
    %394 = vector.broadcast %393 : vector<1x32xf32> to vector<49x32xf32>
    %395 = arith.mulf %391, %394 : vector<49x32xf32>
    %396 = arith.addf %388, %395 : vector<49x32xf32>
    %c1_229 = arith.constant 1 : index
    %c0_230 = arith.constant 0 : index
    %c0_231 = arith.constant 0 : index
    %397 = vector.load %arg9[%c1_229, %c0_230, %c0_231] : memref<9x49x49xf32, #tpu.memory_space<vmem>>, vector<1x49x49xf32>
    %398 = vector.shape_cast %397 : vector<1x49x49xf32> to vector<49x49xf32>
    %cst_232 = arith.constant dense<0.000000e+00> : vector<49x32xf32>
    %399 = tpu.matmul %398, %384, %cst_232 {dimension_numbers = #tpu.dot_dimension_numbers<[1], [0], [0], [1], [0, 0, 1, 1], [], []>} : vector<49x49xf32>, vector<49x32xf32>, vector<49x32xf32> -> vector<49x32xf32>
    %400 = vector.extract_strided_slice %11 {offsets = [1, 0, 0], sizes = [1, 1, 32], strides = [1, 1, 1]} : vector<9x1x32xf32> to vector<1x1x32xf32>
    %401 = vector.shape_cast %400 : vector<1x1x32xf32> to vector<1x32xf32>
    %402 = vector.broadcast %401 : vector<1x32xf32> to vector<49x32xf32>
    %403 = arith.mulf %399, %402 : vector<49x32xf32>
    %404 = arith.addf %396, %403 : vector<49x32xf32>
    %c2_233 = arith.constant 2 : index
    %c0_234 = arith.constant 0 : index
    %c0_235 = arith.constant 0 : index
    %405 = vector.load %arg9[%c2_233, %c0_234, %c0_235] : memref<9x49x49xf32, #tpu.memory_space<vmem>>, vector<1x49x49xf32>
    %406 = vector.shape_cast %405 : vector<1x49x49xf32> to vector<49x49xf32>
    %cst_236 = arith.constant dense<0.000000e+00> : vector<49x32xf32>
    %407 = tpu.matmul %406, %384, %cst_236 {dimension_numbers = #tpu.dot_dimension_numbers<[1], [0], [0], [1], [0, 0, 1, 1], [], []>} : vector<49x49xf32>, vector<49x32xf32>, vector<49x32xf32> -> vector<49x32xf32>
    %408 = vector.extract_strided_slice %11 {offsets = [2, 0, 0], sizes = [1, 1, 32], strides = [1, 1, 1]} : vector<9x1x32xf32> to vector<1x1x32xf32>
    %409 = vector.shape_cast %408 : vector<1x1x32xf32> to vector<1x32xf32>
    %410 = vector.broadcast %409 : vector<1x32xf32> to vector<49x32xf32>
    %411 = arith.mulf %407, %410 : vector<49x32xf32>
    %412 = arith.addf %404, %411 : vector<49x32xf32>
    %c3_237 = arith.constant 3 : index
    %c0_238 = arith.constant 0 : index
    %c0_239 = arith.constant 0 : index
    %413 = vector.load %arg9[%c3_237, %c0_238, %c0_239] : memref<9x49x49xf32, #tpu.memory_space<vmem>>, vector<1x49x49xf32>
    %414 = vector.shape_cast %413 : vector<1x49x49xf32> to vector<49x49xf32>
    %cst_240 = arith.constant dense<0.000000e+00> : vector<49x32xf32>
    %415 = tpu.matmul %414, %384, %cst_240 {dimension_numbers = #tpu.dot_dimension_numbers<[1], [0], [0], [1], [0, 0, 1, 1], [], []>} : vector<49x49xf32>, vector<49x32xf32>, vector<49x32xf32> -> vector<49x32xf32>
    %416 = vector.extract_strided_slice %11 {offsets = [3, 0, 0], sizes = [1, 1, 32], strides = [1, 1, 1]} : vector<9x1x32xf32> to vector<1x1x32xf32>
    %417 = vector.shape_cast %416 : vector<1x1x32xf32> to vector<1x32xf32>
    %418 = vector.broadcast %417 : vector<1x32xf32> to vector<49x32xf32>
    %419 = arith.mulf %415, %418 : vector<49x32xf32>
    %420 = arith.addf %412, %419 : vector<49x32xf32>
    %c5_241 = arith.constant 5 : index
    %c0_242 = arith.constant 0 : index
    %c0_243 = arith.constant 0 : index
    %421 = vector.load %arg9[%c5_241, %c0_242, %c0_243] : memref<9x49x49xf32, #tpu.memory_space<vmem>>, vector<1x49x49xf32>
    %422 = vector.shape_cast %421 : vector<1x49x49xf32> to vector<49x49xf32>
    %cst_244 = arith.constant dense<0.000000e+00> : vector<49x32xf32>
    %423 = tpu.matmul %422, %384, %cst_244 {dimension_numbers = #tpu.dot_dimension_numbers<[1], [0], [0], [1], [0, 0, 1, 1], [], []>} : vector<49x49xf32>, vector<49x32xf32>, vector<49x32xf32> -> vector<49x32xf32>
    %424 = vector.extract_strided_slice %11 {offsets = [5, 0, 0], sizes = [1, 1, 32], strides = [1, 1, 1]} : vector<9x1x32xf32> to vector<1x1x32xf32>
    %425 = vector.shape_cast %424 : vector<1x1x32xf32> to vector<1x32xf32>
    %426 = vector.broadcast %425 : vector<1x32xf32> to vector<49x32xf32>
    %427 = arith.mulf %423, %426 : vector<49x32xf32>
    %428 = arith.addf %420, %427 : vector<49x32xf32>
    %c6_245 = arith.constant 6 : index
    %c0_246 = arith.constant 0 : index
    %c0_247 = arith.constant 0 : index
    %429 = vector.load %arg9[%c6_245, %c0_246, %c0_247] : memref<9x49x49xf32, #tpu.memory_space<vmem>>, vector<1x49x49xf32>
    %430 = vector.shape_cast %429 : vector<1x49x49xf32> to vector<49x49xf32>
    %cst_248 = arith.constant dense<0.000000e+00> : vector<49x32xf32>
    %431 = tpu.matmul %430, %384, %cst_248 {dimension_numbers = #tpu.dot_dimension_numbers<[1], [0], [0], [1], [0, 0, 1, 1], [], []>} : vector<49x49xf32>, vector<49x32xf32>, vector<49x32xf32> -> vector<49x32xf32>
    %432 = vector.extract_strided_slice %11 {offsets = [6, 0, 0], sizes = [1, 1, 32], strides = [1, 1, 1]} : vector<9x1x32xf32> to vector<1x1x32xf32>
    %433 = vector.shape_cast %432 : vector<1x1x32xf32> to vector<1x32xf32>
    %434 = vector.broadcast %433 : vector<1x32xf32> to vector<49x32xf32>
    %435 = arith.mulf %431, %434 : vector<49x32xf32>
    %436 = arith.addf %428, %435 : vector<49x32xf32>
    %c7_249 = arith.constant 7 : index
    %c0_250 = arith.constant 0 : index
    %c0_251 = arith.constant 0 : index
    %437 = vector.load %arg9[%c7_249, %c0_250, %c0_251] : memref<9x49x49xf32, #tpu.memory_space<vmem>>, vector<1x49x49xf32>
    %438 = vector.shape_cast %437 : vector<1x49x49xf32> to vector<49x49xf32>
    %cst_252 = arith.constant dense<0.000000e+00> : vector<49x32xf32>
    %439 = tpu.matmul %438, %384, %cst_252 {dimension_numbers = #tpu.dot_dimension_numbers<[1], [0], [0], [1], [0, 0, 1, 1], [], []>} : vector<49x49xf32>, vector<49x32xf32>, vector<49x32xf32> -> vector<49x32xf32>
    %440 = vector.extract_strided_slice %11 {offsets = [7, 0, 0], sizes = [1, 1, 32], strides = [1, 1, 1]} : vector<9x1x32xf32> to vector<1x1x32xf32>
    %441 = vector.shape_cast %440 : vector<1x1x32xf32> to vector<1x32xf32>
    %442 = vector.broadcast %441 : vector<1x32xf32> to vector<49x32xf32>
    %443 = arith.mulf %439, %442 : vector<49x32xf32>
    %444 = arith.addf %436, %443 : vector<49x32xf32>
    %c8_253 = arith.constant 8 : index
    %c0_254 = arith.constant 0 : index
    %c0_255 = arith.constant 0 : index
    %445 = vector.load %arg9[%c8_253, %c0_254, %c0_255] : memref<9x49x49xf32, #tpu.memory_space<vmem>>, vector<1x49x49xf32>
    %446 = vector.shape_cast %445 : vector<1x49x49xf32> to vector<49x49xf32>
    %cst_256 = arith.constant dense<0.000000e+00> : vector<49x32xf32>
    %447 = tpu.matmul %446, %384, %cst_256 {dimension_numbers = #tpu.dot_dimension_numbers<[1], [0], [0], [1], [0, 0, 1, 1], [], []>} : vector<49x49xf32>, vector<49x32xf32>, vector<49x32xf32> -> vector<49x32xf32>
    %448 = vector.extract_strided_slice %11 {offsets = [8, 0, 0], sizes = [1, 1, 32], strides = [1, 1, 1]} : vector<9x1x32xf32> to vector<1x1x32xf32>
    %449 = vector.shape_cast %448 : vector<1x1x32xf32> to vector<1x32xf32>
    %450 = vector.broadcast %449 : vector<1x32xf32> to vector<49x32xf32>
    %451 = arith.mulf %447, %450 : vector<49x32xf32>
    %452 = arith.addf %444, %451 : vector<49x32xf32>
    %453 = vector.broadcast %5 : vector<1x32xf32> to vector<49x32xf32>
    %454 = arith.mulf %452, %453 : vector<49x32xf32>
    %455 = vector.broadcast %6 : vector<1x32xf32> to vector<49x32xf32>
    %456 = arith.addf %454, %455 : vector<49x32xf32>
    %cst_257 = arith.constant dense<0.000000e+00> : vector<49xf32>
    %457 = vector.multi_reduction <add>, %456, %cst_257 [1] : vector<49x32xf32> to vector<49xf32>
    %458 = vector.shape_cast %457 : vector<49xf32> to vector<49x1xf32>
    %cst_258 = arith.constant 3.200000e+01 : f32
    %459 = vector.broadcast %cst_258 : f32 to vector<49x1xf32>
    %460 = arith.divf %458, %459 : vector<49x1xf32>
    %461 = vector.broadcast %460 : vector<49x1xf32> to vector<49x32xf32>
    %462 = arith.subf %456, %461 : vector<49x32xf32>
    %463 = arith.mulf %462, %462 : vector<49x32xf32>
    %cst_259 = arith.constant dense<0.000000e+00> : vector<49xf32>
    %464 = vector.multi_reduction <add>, %463, %cst_259 [1] : vector<49x32xf32> to vector<49xf32>
    %465 = vector.shape_cast %464 : vector<49xf32> to vector<49x1xf32>
    %cst_260 = arith.constant 3.200000e+01 : f32
    %466 = vector.broadcast %cst_260 : f32 to vector<49x1xf32>
    %467 = arith.divf %465, %466 : vector<49x1xf32>
    %468 = vector.broadcast %460 : vector<49x1xf32> to vector<49x32xf32>
    %469 = arith.subf %456, %468 : vector<49x32xf32>
    %cst_261 = arith.constant 9.99999974E-6 : f32
    %470 = vector.broadcast %cst_261 : f32 to vector<49x1xf32>
    %471 = arith.addf %467, %470 : vector<49x1xf32>
    %472 = math.rsqrt %471 : vector<49x1xf32>
    %473 = vector.broadcast %472 : vector<49x1xf32> to vector<49x32xf32>
    %474 = arith.mulf %469, %473 : vector<49x32xf32>
    %475 = vector.broadcast %2 : vector<1x32xf32> to vector<49x32xf32>
    %476 = arith.mulf %474, %475 : vector<49x32xf32>
    %477 = vector.broadcast %3 : vector<1x32xf32> to vector<49x32xf32>
    %478 = arith.addf %476, %477 : vector<49x32xf32>
    %479 = arith.truncf %478 : vector<49x32xf32> to vector<49x32xbf16>
    %cst_262 = arith.constant dense<0.000000e+00> : vector<49x128xf32>
    %480 = tpu.matmul %479, %9, %cst_262 {dimension_numbers = #tpu.dot_dimension_numbers<[1], [0], [0], [1], [0, 0, 1, 1], [], []>} : vector<49x32xbf16>, vector<32x128xbf16>, vector<49x128xf32> -> vector<49x128xf32>
    %481 = vector.broadcast %7 : vector<1x128xf32> to vector<49x128xf32>
    %482 = arith.addf %480, %481 : vector<49x128xf32>
    %cst_263 = arith.constant 5.000000e-01 : f32
    %483 = vector.broadcast %cst_263 : f32 to vector<49x128xf32>
    %484 = arith.mulf %483, %482 : vector<49x128xf32>
    %cst_264 = arith.constant 4.471500e-02 : f32
    %485 = vector.broadcast %cst_264 : f32 to vector<49x128xf32>
    %486 = arith.mulf %485, %482 : vector<49x128xf32>
    %487 = arith.mulf %486, %482 : vector<49x128xf32>
    %488 = arith.mulf %487, %482 : vector<49x128xf32>
    %489 = arith.addf %482, %488 : vector<49x128xf32>
    %cst_265 = arith.constant 0.797884583 : f32
    %490 = vector.broadcast %cst_265 : f32 to vector<49x128xf32>
    %491 = arith.mulf %490, %489 : vector<49x128xf32>
    %492 = math.tanh %491 : vector<49x128xf32>
    %cst_266 = arith.constant 1.000000e+00 : f32
    %493 = vector.broadcast %cst_266 : f32 to vector<49x128xf32>
    %494 = arith.addf %493, %492 : vector<49x128xf32>
    %495 = arith.mulf %484, %494 : vector<49x128xf32>
    %496 = arith.truncf %495 : vector<49x128xf32> to vector<49x128xbf16>
    %cst_267 = arith.constant dense<0.000000e+00> : vector<49x32xf32>
    %497 = tpu.matmul %496, %10, %cst_267 {dimension_numbers = #tpu.dot_dimension_numbers<[1], [0], [0], [1], [0, 0, 1, 1], [], []>} : vector<49x128xbf16>, vector<128x32xbf16>, vector<49x32xf32> -> vector<49x32xf32>
    %498 = arith.addf %456, %497 : vector<49x32xf32>
    %499 = vector.broadcast %8 : vector<1x32xf32> to vector<49x32xf32>
    %500 = arith.addf %498, %499 : vector<49x32xf32>
    %c1_268 = arith.constant 1 : index
    %c0_269 = arith.constant 0 : index
    %c0_270 = arith.constant 0 : index
    %501 = vector.load %arg19[%c1_268, %c0_269, %c0_270] : memref<2x49x32xf32, #tpu.memory_space<vmem>>, vector<1x49x32xf32>
    %502 = vector.shape_cast %501 : vector<1x49x32xf32> to vector<49x32xf32>
    %503 = vector.shape_cast %500 : vector<49x32xf32> to vector<1x49x32xf32>
    tpu.vector_store %arg19[%c1_268, %c0_269, %c0_270], %503 {strides = array<i32>} : memref<2x49x32xf32, #tpu.memory_space<vmem>>, vector<1x49x32xf32>,
    return
  }
  func.func @transform_0(%arg0: i32) -> (i32, i32, i32) {
    %c0_i32 = arith.constant 0 : i32
    %c0_i32_0 = arith.constant 0 : i32
    %c0_i32_1 = arith.constant 0 : i32
    return %arg0, %c0_i32, %c0_i32_0 : i32, i32, i32
  }
  func.func @transform_1(%arg0: i32) -> (i32, i32) {
    %c0_i32 = arith.constant 0 : i32
    %c0_i32_0 = arith.constant 0 : i32
    %c0_i32_1 = arith.constant 0 : i32
    return %c0_i32, %c0_i32_0 : i32, i32
  }
  func.func @transform_2(%arg0: i32) -> (i32, i32) {
    %c0_i32 = arith.constant 0 : i32
    %c0_i32_0 = arith.constant 0 : i32
    %c0_i32_1 = arith.constant 0 : i32
    return %c0_i32, %c0_i32_0 : i32, i32
  }
  func.func @transform_3(%arg0: i32) -> (i32, i32, i32) {
    %c0_i32 = arith.constant 0 : i32
    %c0_i32_0 = arith.constant 0 : i32
    %c0_i32_1 = arith.constant 0 : i32
    %c0_i32_2 = arith.constant 0 : i32
    return %c0_i32, %c0_i32_0, %c0_i32_1 : i32, i32, i32
  }
  func.func @transform_4(%arg0: i32) -> (i32, i32, i32) {
    %c0_i32 = arith.constant 0 : i32
    %c0_i32_0 = arith.constant 0 : i32
    %c0_i32_1 = arith.constant 0 : i32
    %c0_i32_2 = arith.constant 0 : i32
    return %c0_i32, %c0_i32_0, %c0_i32_1 : i32, i32, i32
  }
  func.func @transform_5(%arg0: i32) -> (i32, i32, i32) {
    %c0_i32 = arith.constant 0 : i32
    %c0_i32_0 = arith.constant 0 : i32
    %c0_i32_1 = arith.constant 0 : i32
    %c0_i32_2 = arith.constant 0 : i32
    return %c0_i32, %c0_i32_0, %c0_i32_1 : i32, i32, i32
  }
  func.func @transform_6(%arg0: i32) -> (i32, i32, i32) {
    %c0_i32 = arith.constant 0 : i32
    %c0_i32_0 = arith.constant 0 : i32
    %c0_i32_1 = arith.constant 0 : i32
    %c0_i32_2 = arith.constant 0 : i32
    return %c0_i32, %c0_i32_0, %c0_i32_1 : i32, i32, i32
  }
  func.func @transform_7(%arg0: i32) -> (i32, i32) {
    %c0_i32 = arith.constant 0 : i32
    %c0_i32_0 = arith.constant 0 : i32
    %c0_i32_1 = arith.constant 0 : i32
    return %c0_i32, %c0_i32_0 : i32, i32
  }
  func.func @transform_8(%arg0: i32) -> (i32, i32, i32) {
    %c0_i32 = arith.constant 0 : i32
    %c0_i32_0 = arith.constant 0 : i32
    %c0_i32_1 = arith.constant 0 : i32
    %c0_i32_2 = arith.constant 0 : i32
    return %c0_i32, %c0_i32_0, %c0_i32_1 : i32, i32, i32
  }
  func.func @transform_9(%arg0: i32) -> (i32, i32, i32) {
    %c0_i32 = arith.constant 0 : i32
    %c0_i32_0 = arith.constant 0 : i32
    %c0_i32_1 = arith.constant 0 : i32
    %c0_i32_2 = arith.constant 0 : i32
    return %c0_i32, %c0_i32_0, %c0_i32_1 : i32, i32, i32
  }
  func.func @transform_10(%arg0: i32) -> (i32, i32) {
    %c0_i32 = arith.constant 0 : i32
    %c0_i32_0 = arith.constant 0 : i32
    %c0_i32_1 = arith.constant 0 : i32
    return %c0_i32, %c0_i32_0 : i32, i32
  }
  func.func @transform_11(%arg0: i32) -> (i32, i32) {
    %c0_i32 = arith.constant 0 : i32
    %c0_i32_0 = arith.constant 0 : i32
    %c0_i32_1 = arith.constant 0 : i32
    return %c0_i32, %c0_i32_0 : i32, i32
  }
  func.func @transform_12(%arg0: i32) -> (i32, i32) {
    %c0_i32 = arith.constant 0 : i32
    %c0_i32_0 = arith.constant 0 : i32
    %c0_i32_1 = arith.constant 0 : i32
    return %c0_i32, %c0_i32_0 : i32, i32
  }
  func.func @transform_13(%arg0: i32) -> (i32, i32) {
    %c0_i32 = arith.constant 0 : i32
    %c0_i32_0 = arith.constant 0 : i32
    %c0_i32_1 = arith.constant 0 : i32
    return %c0_i32, %c0_i32_0 : i32, i32
  }
  func.func @transform_14(%arg0: i32) -> (i32, i32) {
    %c0_i32 = arith.constant 0 : i32
    %c0_i32_0 = arith.constant 0 : i32
    %c0_i32_1 = arith.constant 0 : i32
    return %c0_i32, %c0_i32_0 : i32, i32
  }
  func.func @transform_15(%arg0: i32) -> (i32, i32) {
    %c0_i32 = arith.constant 0 : i32
    %c0_i32_0 = arith.constant 0 : i32
    %c0_i32_1 = arith.constant 0 : i32
    return %c0_i32, %c0_i32_0 : i32, i32
  }
  func.func @transform_16(%arg0: i32) -> (i32, i32) {
    %c0_i32 = arith.constant 0 : i32
    %c0_i32_0 = arith.constant 0 : i32
    %c0_i32_1 = arith.constant 0 : i32
    return %c0_i32, %c0_i32_0 : i32, i32
  }
  func.func @transform_17(%arg0: i32) -> (i32, i32) {
    %c0_i32 = arith.constant 0 : i32
    %c0_i32_0 = arith.constant 0 : i32
    %c0_i32_1 = arith.constant 0 : i32
    return %c0_i32, %c0_i32_0 : i32, i32
  }
  func.func @transform_18(%arg0: i32) -> (i32, i32, i32) {
    %c0_i32 = arith.constant 0 : i32
    %c0_i32_0 = arith.constant 0 : i32
    %c0_i32_1 = arith.constant 0 : i32
    return %arg0, %c0_i32, %c0_i32_0 : i32, i32, i32
  }
  func.func @transform_19(%arg0: i32) -> (i32, i32, i32, i32) {
    %c0_i32 = arith.constant 0 : i32
    %c0_i32_0 = arith.constant 0 : i32
    %c0_i32_1 = arith.constant 0 : i32
    %c0_i32_2 = arith.constant 0 : i32
    return %arg0, %c0_i32, %c0_i32_0, %c0_i32_1 : i32, i32, i32, i32
  }
}

</mosaic_0001>

<bundles_post_ra>
// kernel: tinyvit_block.1
= control target key start
LH: loop header
LB: loop body
LE: loop exit
PB: predicated region body
PF: predicated region fallthrough
CT: control target
= control target key end

     0   :  { %vm107_vm0 = vcmask 261120   ;;  %vm126_vm1 = vcmask 253952   ;;  %vm516_vm2 = vcmask 130048   ;;  %vm732_vm3 = vcmask 1040384   ;;  %s10855_s0 = inlined_call_operand.vmem [shape: f32[2,49,32], index: 0, kind: input, shape index: {}]   ;;  %s10856_s3 = inlined_call_operand.vmem [shape: bf16[6,32,16], index: 3, kind: input, shape index: {}]   ;;  %s10857_s1 = inlined_call_operand.vmem [shape: f32[1,32], index: 1, kind: input, shape index: {}]   ;;  %s10858_s2 = inlined_call_operand.vmem [shape: f32[1,32], index: 2, kind: input, shape index: {}]   ;;  %s10859_s4 = inlined_call_operand.vmem [shape: f32[6,1,16], index: 4, kind: input, shape index: {}]   ;;  %s10860_s5 = inlined_call_operand.vmem [shape: f32[2,49,49], index: 5, kind: input, shape index: {}]   ;;  %s10861_s19 = inlined_call_operand.vmem [shape: f32[2,2,49,49], index: 19, kind: output, shape index: {1}]   ;;  %s10862_s6 = inlined_call_operand.vmem [shape: bf16[2,16,32], index: 6, kind: input, shape index: {}]   ;;  %s10863_s7 = inlined_call_operand.vmem [shape: f32[1,32], index: 7, kind: input, shape index: {}]   ;;  %s10864_s8 = inlined_call_operand.vmem [shape: f32[9,49,49], index: 8, kind: input, shape index: {}]   ;;  %s10865_s9 = inlined_call_operand.vmem [shape: f32[9,1,32], index: 9, kind: input, shape index: {}]   ;;  %s10866_s10 = inlined_call_operand.vmem [shape: f32[1,32], index: 10, kind: input, shape index: {}]   ;;  %s10867_s11 = inlined_call_operand.vmem [shape: f32[1,32], index: 11, kind: input, shape index: {}]   ;;  %s10868_s14 = inlined_call_operand.vmem [shape: bf16[32,128], index: 14, kind: input, shape index: {}]   ;;  %s10869_s12 = inlined_call_operand.vmem [shape: f32[1,32], index: 12, kind: input, shape index: {}]   ;;  %s10870_s13 = inlined_call_operand.vmem [shape: f32[1,32], index: 13, kind: input, shape index: {}]   ;;  %s10871_s16 = inlined_call_operand.vmem [shape: bf16[128,32], index: 16, kind: input, shape index: {}]   ;;  %s10872_s15 = inlined_call_operand.vmem [shape: f32[1,128], index: 15, kind: input, shape index: {}]   ;;  %s10873_s17 = inlined_call_operand.vmem [shape: f32[1,32], index: 17, kind: input, shape index: {}]   ;;  %s10874_s18 = inlined_call_operand.vmem [shape: f32[2,49,32], index: 18, kind: output, shape index: {0}]  }
   0x1   :  { %10879 = sst [smem:[#allocation2_spill]] %s10855_s0  ;;  %vm626_vm4 = vcmask 400384   ;;  %vm645_vm5 = vcmask 393216   ;;  %vm8446_vm6 = vmmov 0  }
   0x2   :  { %10880 = sst [smem:[#allocation3_spill]] %s10856_s3  ;;  %s10883_s20 = sld [smem:[#allocation2_spill]] }
   0x3   :  { %10881 = sst [smem:[#allocation4_spill]] %s10857_s1  ;;  %s10884_s21 = sld [smem:[#allocation3_spill]] }
   0x4   :  { %10882 = sst [smem:[#allocation5_spill]] %s10858_s2  ;;  %s10885_s29 = sld [smem:[#allocation4_spill]] }
   0x5   :  { %s10886_s3 = sld [smem:[#allocation5_spill]] }
   0x8   :  { %v100_v0 = vld [vmem:[%s10883_s20] sm:$0xff]  ;;  %v102_v1 = vld [vmem:[%s10883_s20 + $0x10] sm:$0xff]  ;;  %v101_v2 = vld [vmem:[%s10883_s20 + $0x8] sm:$0xff] }
   0x9   :  { %v108_v3 = vsel %vm107_vm0, %v100_v0, 0.0  ;;  %v114_v4 = vsel %vm107_vm0, %v102_v1, 0.0  ;;  %v103_v5 = vld [vmem:[%s10883_s20 + $0x18] sm:$0xff]  ;;  %v111_v6 = vsel %vm107_vm0, %v101_v2, 0.0  ;;  %v104_v8 = vld [vmem:[%s10883_s20 + $0x20] sm:$0xff]  ;;  %v105_v9 = vld [vmem:[%s10883_s20 + $0x28] sm:$0xff] }
   0xa   :  { %109 = vadd.xlane.f32.xlu0 %v108_v3  ;;  %115 = vadd.xlane.f32.xlu1 %v114_v4  ;;  %v117_v7 = vsel %vm107_vm0, %v103_v5, 0.0  ;;  %v120_v10 = vsel %vm107_vm0, %v104_v8, 0.0  ;;  %v123_v11 = vsel %vm107_vm0, %v105_v9, 0.0  ;;  %v106_v12 = vld [vmem:[%s10883_s20 + $0x30] sm:$0x1]  ;;  %v8168_v49 = vld [vmem:[%s10884_s21] sm:$0xff]  }
   0xb   :  { %v127_v13 = vsel %vm126_vm1, %v106_v12, 0.0  ;;  %v8169_v50 = vld [vmem:[%s10884_s21 + $0x20] sm:$0xff]   ;;  %7052 = vmatprep.subr.bf16.mxu1 %v8168_v49  ;;  %v8170_v51 = vld [vmem:[%s10884_s21 + $0x8] sm:$0xff]   ;;  %v8626_v53 = vld [vmem:[%s10884_s21 + $0x10] sm:$0xff]  }
   0xc   :  { %7076 = vmatprep.subr.bf16.mxu0 %v8169_v50  ;;  %7053 = vmatpush3.bf16.msra.mxu1 %v8168_v49  ;;  %v8171_v52 = vld [vmem:[%s10884_s21 + $0x28] sm:$0xff]   ;;  %v6161_v49 = vld [vmem:[%s10859_s4 + $0x2] ss:$0 sm:$0xff] }
   0xd   :  { %7077 = vmatpush3.bf16.msra.mxu0 %v8169_v50  ;;  %7054 = vmatprep.subr.bf16.mxu1 %v8170_v51 }
   0xe   :  { %112 = vadd.xlane.f32.xlu0 %v111_v6  ;;  %118 = vadd.xlane.f32.xlu1 %v117_v7 }
   0xf   :  { %7078 = vmatprep.subr.bf16.mxu0 %v8171_v52 }
  0x10   :  { %7055 = vmatpush3.bf16.msra.mxu1 %v8170_v51 }
  0x11   :  { %7079 = vmatpush3.bf16.msra.mxu0 %v8171_v52  ;;  %7064 = vmatprep.subr.bf16.mxu1 %v8626_v53 }
  0x12   :  { %121 = vadd.xlane.f32.xlu0 %v120_v10  ;;  %124 = vadd.xlane.f32.xlu1 %v123_v11 }
  0x16   :  { %128 = vadd.xlane.f32.xlu0 %v127_v13  ;;  %v6135_v13 = vld [vmem:[%s10885_s29] ss:$0 sm:$0xff] }
  0x97   :  { %v110_v14 = vpop.xlane.xlu0 %109  ;;  %v116_v15 = vpop.xlane.xlu1 %115 }
  0x98   :  { %v131_v16 = vmul.f32 0.03125, %v110_v14  ;;  %v133_v17 = vmul.f32 0.03125, %v116_v15 }
  0x9a   :  { %v8576_v18 = vsub.f32 %v100_v0, %v131_v16  ;;  %v8578_v19 = vsub.f32 %v102_v1, %v133_v17 }
  0x9b   :  { %v113_v20 = vpop.xlane.xlu0 %112  ;;  %v119_v21 = vpop.xlane.xlu1 %118 }
  0x9c   :  { %v132_v22 = vmul.f32 0.03125, %v113_v20  ;;  %v134_v23 = vmul.f32 0.03125, %v119_v21  ;;  %v145_v24 = vmul.f32 %v8576_v18, %v8576_v18  ;;  %v147_v25 = vmul.f32 %v8578_v19, %v8578_v19  ;;  %v6136_v21 = vld [vmem:[%s10886_s3] ss:$0 sm:$0xff] }
  0x9e   :  { %v8584_v26 = vsub.f32 %v101_v2, %v132_v22  ;;  %v8586_v27 = vsub.f32 %v103_v5, %v134_v23  ;;  %v152_v28 = vsel %vm107_vm0, %v145_v24, 0.0  ;;  %v158_v31 = vsel %vm107_vm0, %v147_v25, 0.0 }
  0x9f   :  { %153 = vadd.xlane.f32.xlu1 %v152_v28  ;;  %v122_v29 = vpop.xlane.xlu0 %121  ;;  %v125_v30 = vpop.xlane.xlu1 %124 }
  0xa0   :  { %v135_v32 = vmul.f32 0.03125, %v122_v29  ;;  %v136_v33 = vmul.f32 0.03125, %v125_v30  ;;  %v146_v34 = vmul.f32 %v8584_v26, %v8584_v26  ;;  %v148_v35 = vmul.f32 %v8586_v27, %v8586_v27 }
  0xa2   :  { %v8594_v36 = vsub.f32 %v104_v8, %v135_v32  ;;  %v8596_v37 = vsub.f32 %v105_v9, %v136_v33  ;;  %v155_v38 = vsel %vm107_vm0, %v146_v34, 0.0  ;;  %v161_v41 = vsel %vm107_vm0, %v148_v35, 0.0 }
  0xa3   :  { %159 = vadd.xlane.f32.xlu1 %v158_v31  ;;  %156 = vadd.xlane.f32.xlu0 %v155_v38  ;;  %v129_v39 = vpop.xlane.xlu0 %128 }
  0xa4   :  { %v137_v40 = vmul.f32 0.03125, %v129_v39  ;;  %v149_v42 = vmul.f32 %v8594_v36, %v8594_v36  ;;  %v150_v43 = vmul.f32 %v8596_v37, %v8596_v37 }
  0xa6   :  { %v8604_v44 = vsub.f32 %v106_v12, %v137_v40  ;;  %v164_v45 = vsel %vm107_vm0, %v149_v42, 0.0  ;;  %v167_v46 = vsel %vm107_vm0, %v150_v43, 0.0 }
  0xa7   :  { %162 = vadd.xlane.f32.xlu0 %v161_v41  ;;  %165 = vadd.xlane.f32.xlu1 %v164_v45  ;;  %v8173_v41 = vld [vmem:[%s10884_s21 + $0x18] sm:$0xff]  }
  0xa8   :  { %v151_v47 = vmul.f32 %v8604_v44, %v8604_v44 }
  0xaa   :  { %v170_v48 = vsel %vm126_vm1, %v151_v47, 0.0  ;;  %v8681_v47 = vld [vmem:[%s10859_s4] ss:$0 sm:$0xff] }
  0xab   :  { %168 = vadd.xlane.f32.xlu0 %v167_v46  ;;  %171 = vadd.xlane.f32.xlu1 %v170_v48 }
 0x12c   :  { %v154_v54 = vpop.xlane.xlu1 %153 }
 0x12d   :  { %v173_v55 = vmul.f32 0.03125, %v154_v54 }
 0x12f   :  { %v180_v56 = vadd.f32 1e-05, %v173_v55 }
 0x130   :  { %v160_v57 = vpop.xlane.xlu1 %159  ;;  %v157_v58 = vpop.xlane.xlu0 %156 }
 0x131   :  { %8206 = vrsqrt.f32 %v180_v56  ;;  %v175_v59 = vmul.f32 0.03125, %v160_v57  ;;  %v174_v60 = vmul.f32 0.03125, %v157_v58 }
 0x133   :  { %v182_v61 = vadd.f32 1e-05, %v175_v59  ;;  %v181_v62 = vadd.f32 1e-05, %v174_v60 }
 0x134   :  { %v166_v63 = vpop.xlane.xlu1 %165  ;;  %v163_v0 = vpop.xlane.xlu0 %162 }
 0x135   :  { %8208 = vrsqrt.f32 %v182_v61  ;;  %v177_v1 = vmul.f32 0.03125, %v166_v63  ;;  %v176_v2 = vmul.f32 0.03125, %v163_v0 }
 0x136   :  { %8210 = vrsqrt.f32 %v181_v62 }
 0x137   :  { %v184_v3 = vadd.f32 1e-05, %v177_v1  ;;  %v183_v4 = vadd.f32 1e-05, %v176_v2 }
 0x138   :  { %v172_v5 = vpop.xlane.xlu1 %171  ;;  %v169_v6 = vpop.xlane.xlu0 %168 }
 0x139   :  { %8212 = vrsqrt.f32 %v184_v3  ;;  %v179_v7 = vmul.f32 0.03125, %v172_v5  ;;  %v178_v8 = vmul.f32 0.03125, %v169_v6 }
 0x13a   :  { %8214 = vrsqrt.f32 %v183_v4 }
 0x13b   :  { %v8207_v9 = vpop.eup %8206  ;;  %v186_v10 = vadd.f32 1e-05, %v179_v7  ;;  %v185_v11 = vadd.f32 1e-05, %v178_v8 }
 0x13c   :  { %v194_v12 = vmul.f32 %v8207_v9, %v8576_v18 }
 0x13d   :  { %8216 = vrsqrt.f32 %v186_v10 }
 0x13e   :  { %8218 = vrsqrt.f32 %v185_v11  ;;  %v207_v17 = vmul.f32 %v6135_v13, %v194_v12 }
 0x13f   :  { %v8209_v14 = vpop.eup %8208 }
 0x140   :  { %v8211_v15 = vpop.eup %8210  ;;  %v196_v16 = vmul.f32 %v8209_v14, %v8578_v19  ;;  %v220_v25 = vadd.f32 %v6136_v21, %v207_v17 }
 0x141   :  { %v195_v20 = vmul.f32 %v8211_v15, %v8584_v26 }
 0x142   :  { %v209_v24 = vmul.f32 %v6135_v13, %v196_v16 }
 0x143   :  { %v8213_v22 = vpop.eup %8212  ;;  %v208_v23 = vmul.f32 %v6135_v13, %v195_v20  ;;  %v8444_v20 = vmov 0  }
 0x144   :  { %v8215_v18 = vpop.eup %8214  ;;  %v198_v29 = vmul.f32 %v8213_v22, %v8594_v36  ;;  %v222_v26 = vadd.f32 %v6136_v21, %v209_v24 }
 0x145   :  { %v221_v28 = vadd.f32 %v6136_v21, %v208_v23  ;;  %v197_v30 = vmul.f32 %v8215_v18, %v8586_v27 }
 0x146   :  { %v211_v35 = vmul.f32 %v6135_v13, %v198_v29 }
 0x147   :  { %v8217_v31 = vpop.eup %8216  ;;  %v210_v32 = vmul.f32 %v6135_v13, %v197_v30  ;;  %v8640_v19 = vpack.c.bf16 %v221_v28, %v220_v25  ;;  %v6149_v25 = vld [vmem:[%s10859_s4 + $0x1] ss:$0 sm:$0xff] }
 0x148   :  { %v8219_v33 = vpop.eup %8218  ;;  %v200_v34 = vmul.f32 %v8217_v31, %v8604_v44  ;;  %v224_v42 = vadd.f32 %v6136_v21, %v211_v35 }
 0x149   :  { %v223_v38 = vadd.f32 %v6136_v21, %v210_v32  ;;  %v199_v39 = vmul.f32 %v8219_v33, %v8596_v37  ;;  %7056 = vmatprep.mubr.msk.bf16.mxu1 %vm107_vm0, %v8640_v19  ;;  %7080 = vmatprep.mubr.msk.bf16.mxu0 %vm107_vm0, %v8640_v19 }
 0x14a   :  { %v213_v36 = vmul.f32 %v6135_v13, %v200_v34 }
 0x14b   :  { %v212_v27 = vmul.f32 %v6135_v13, %v199_v39  ;;  %v8648_v40 = vpack.c.bf16 %v223_v38, %v222_v26 }
 0x14c   :  { %v226_v37 = vadd.f32 %v6136_v21, %v213_v36 }
 0x14d   :  { %v225_v43 = vadd.f32 %v6136_v21, %v212_v27  ;;  %7057 = vmatmul.mubr.msk.bf16.vlgmr.msra.gmra.mrb[0].mxu1 %vm107_vm0, %v8648_v40  ;;  %7081 = vmatmul.mubr.msk.bf16.vlgmr.msra.gmra.mrb[0].mxu0 %vm107_vm0, %v8648_v40  ;;  %v8702_v21 = vsel %vm732_vm3, 65535, %v8444_v20  ;;  %v618_v20 = vld [vmem:[%s10860_s5 + $0x30] sm:$0x1] }
 0x14e   :  { %7065 = vmatpush3.bf16.msra.mxu1 %v8626_v53  ;;  %v8664_v45 = vpack.c.bf16 %v226_v37, %v226_v37 }
 0x14f   :  { %v8658_v44 = vpack.c.bf16 %v225_v43, %v224_v42  ;;  %7066 = vmatprep.subr.bf16.mxu1 %v8173_v41 }
 0x151   :  { %7060 = vmatprep.mubr.msk.bf16.mxu1 %vm107_vm0, %v8658_v44  ;;  %7084 = vmatprep.mubr.msk.bf16.mxu0 %vm107_vm0, %v8658_v44 }
 0x152   :  { %7067 = vmatpush3.bf16.msra.mxu1 %v8173_v41 }
 0x155   :  { %7061 = vmatmul.mubr.msk.bf16.gmra.mrb[4].mxu1 %vm107_vm0, %v8664_v45  ;;  %7085 = vmatmul.mubr.msk.bf16.gmra.mrb[4].mxu0 %vm107_vm0, %v8664_v45 }
 0x156   :  { %7068 = vmatprep.mubr.msk.bf16.mxu1 %vm107_vm0, %v8640_v19 }
 0x15d   :  { %7069 = vmatmul.mubr.msk.bf16.vlgmr.msra.gmra.mrb[8].mxu1 %vm107_vm0, %v8648_v40 }
 0x15e   :  { %7072 = vmatprep.mubr.msk.bf16.mxu1 %vm107_vm0, %v8658_v44 }
 0x165   :  { %7073 = vmatmul.mubr.msk.bf16.gmra.mrb[12].mxu1 %vm107_vm0, %v8664_v45 }
 0x220   :  { %v7058_v46 = vpop.f32.mrb[0].mxu1  ;;  %v7082_v48 = vpop.f32.mrb[0].mxu0 }
 0x221   :  { %v300_v50 = vpop.f32.mrb[1].mxu1  ;;  %v478_v51 = vpop.f32.mrb[1].mxu0  ;;  %v8687_v54 = vadd.f32 %v7058_v46, %v8681_v47  ;;  %v487_v55 = vadd.f32 %v7082_v48, %v6161_v49 }
 0x222   :  { %v7059_v52 = vpop.f32.mrb[2].mxu1  ;;  %v7083_v53 = vpop.f32.mrb[2].mxu0  ;;  %v301_v60 = vadd.f32 %v8681_v47, %v300_v50  ;;  %v479_v61 = vadd.f32 %v6161_v49, %v478_v51  ;;  %v8174_v51 = vld [vmem:[%s10884_s21 + $0x40] sm:$0xff]  }
 0x223   :  { %v8690_v56 = vadd.f32 %v7059_v52, %v8681_v47  ;;  %v490_v57 = vadd.f32 %v7083_v53, %v6161_v49  ;;  %v303_v58 = vpop.f32.mrb[3].mxu1  ;;  %v481_v59 = vpop.f32.mrb[3].mxu0  ;;  %v8175_v53 = vld [vmem:[%s10884_s21 + $0x48] sm:$0xff]  }
 0x224   :  { %v304_v62 = vadd.f32 %v8681_v47, %v303_v58  ;;  %v482_v63 = vadd.f32 %v6161_v49, %v481_v59 }
 0x225   :  { %v509_v0 = vpack.c.bf16 %v8690_v56, %v8687_v54  ;;  %v717_v1 = vpack.c.bf16 %v490_v57, %v487_v55 }
 0x226   :  { %v508_v2 = vpack.c.bf16 %v304_v62, %v301_v60  ;;  %v716_v3 = vpack.c.bf16 %v482_v63, %v479_v61  ;;  %v613_v62 = vld [vmem:[%s10860_s5 + $0x8] sm:$0xff]  ;;  %v614_v63 = vld [vmem:[%s10860_s5 + $0x10] sm:$0xff] }
 0x228   :  { %v8696_v4 = vpop.f32.mrb[4].mxu1  ;;  %v7086_v5 = vpop.f32.mrb[4].mxu0  ;;  %7096 = vmatprep.mubr.msk.bf16.mxu1 %vm516_vm2, %v508_v2  ;;  %7104 = vmatprep.subr.bf16.mxu0 %v716_v3 }
 0x229   :  { %v503_v6 = vadd.f32 %v7086_v5, %v6161_v49  ;;  %v316_v7 = vpop.f32.mrb[5].mxu1  ;;  %v494_v8 = vpop.f32.mrb[5].mxu0  ;;  %7105 = vmatpush3.bf16.msra.mxu0 %v716_v3  ;;  %v325_v55 = vadd.f32 %v8696_v4, %v8681_v47  ;;  %v615_v3 = vld [vmem:[%s10860_s5 + $0x18] sm:$0xff] }
 0x22a   :  { %v7063_v9 = vpop.f32.mrb[6].mxu1  ;;  %v7087_v10 = vpop.f32.mrb[6].mxu0  ;;  %7106 = vmatprep.subr.bf16.mxu0 %v717_v1  ;;  %v317_v11 = vadd.f32 %v8681_v47, %v316_v7  ;;  %v495_v15 = vadd.f32 %v6161_v49, %v494_v8 }
 0x22b   :  { %v319_v12 = vpop.f32.mrb[7].mxu1  ;;  %v497_v13 = vpop.f32.mrb[7].mxu0  ;;  %v719_v14 = vpack.c.bf16 %v503_v6, %v503_v6  ;;  %v511_v57 = vpack.c.bf16 %v325_v55, %v325_v55 }
 0x22c   :  { %v320_v16 = vadd.f32 %v8681_v47, %v319_v12  ;;  %v498_v17 = vadd.f32 %v6161_v49, %v497_v13  ;;  %v612_v47 = vld [vmem:[%s10860_s5] sm:$0xff] }
 0x22d   :  { %7107 = vmatpush3.bf16.msra.mxu0 %v717_v1  ;;  %v736_v18 = vand.u32 %v8702_v21, %v719_v14 }
 0x22e   :  { %v510_v22 = vpack.c.bf16 %v320_v16, %v317_v11  ;;  %v718_v23 = vpack.c.bf16 %v498_v17, %v495_v15  ;;  %v616_v11 = vld [vmem:[%s10860_s5 + $0x20] sm:$0xff]  ;;  %v617_v17 = vld [vmem:[%s10860_s5 + $0x28] sm:$0xff] }
 0x230   :  { %v7070_v24 = vpop.f32.mrb[8].mxu1  ;;  %7108 = vmatprep.subr.bf16.mxu0 %v718_v23 }
 0x231   :  { %v389_v28 = vpop.f32.mrb[9].mxu1  ;;  %7109 = vmatpush3.bf16.msra.mxu0 %v718_v23  ;;  %v398_v30 = vadd.f32 %v7070_v24, %v6149_v25 }
 0x232   :  { %v7071_v29 = vpop.f32.mrb[10].mxu1  ;;  %7110 = vmatprep.subr.bf16.mxu0 %v736_v18  ;;  %v390_v33 = vadd.f32 %v6149_v25, %v389_v28 }
 0x233   :  { %v401_v31 = vadd.f32 %v7071_v29, %v6149_v25  ;;  %v392_v32 = vpop.f32.mrb[11].mxu1 }
 0x234   :  { %v393_v26 = vadd.f32 %v6149_v25, %v392_v32 }
 0x235   :  { %v513_v34 = vpack.c.bf16 %v401_v31, %v398_v30  ;;  %7111 = vmatpush3.bf16.msra.mxu0 %v736_v18  ;;  %v6193_v30 = vld [vmem:[%s10859_s4 + $0x4] ss:$0 sm:$0xff] }
 0x236   :  { %v512_v35 = vpack.c.bf16 %v393_v26, %v390_v33 }
 0x237   :  { %v533_v46 = vsel %vm516_vm2, %v513_v34, 0 }
 0x238   :  { %v7074_v38 = vpop.f32.mrb[12].mxu1  ;;  %8148 = vmatprep.subr.msk.bf16.mxu1 %vm516_vm2, %v512_v35  ;;  %v530_v39 = vsel %vm516_vm2, %v512_v35, 0 }
 0x239   :  { %v405_v36 = vpop.f32.mrb[13].mxu1  ;;  %7089 = vmatpush3.bf16.xpose.msra.mxu1 %v530_v39  ;;  %v414_v48 = vadd.f32 %v7074_v38, %v6149_v25 }
 0x23a   :  { %v7075_v27 = vpop.f32.mrb[14].mxu1  ;;  %8149 = vmatprep.subr.msk.bf16.mxu1 %vm516_vm2, %v513_v34  ;;  %v406_v42 = vadd.f32 %v6149_v25, %v405_v36 }
 0x23b   :  { %v408_v41 = vpop.f32.mrb[15].mxu1  ;;  %v515_v49 = vpack.c.bf16 %v414_v48, %v414_v48 }
 0x23c   :  { %v409_v43 = vadd.f32 %v6149_v25, %v408_v41 }
 0x23d   :  { %v539_v52 = vsel %vm516_vm2, %v515_v49, 0 }
 0x23e   :  { %v514_v37 = vpack.c.bf16 %v409_v43, %v406_v42 }
 0x240   :  { %v536_v50 = vsel %vm516_vm2, %v514_v37, 0 }
 0x241   :  { %7091 = vmatpush3.bf16.xpose.msra.mxu1 %v533_v46 }
 0x242   :  { %8150 = vmatprep.subr.msk.bf16.mxu1 %vm516_vm2, %v514_v37 }
 0x249   :  { %7093 = vmatpush3.bf16.xpose.msra.mxu1 %v536_v50 }
 0x24a   :  { %8151 = vmatprep.subr.msk.bf16.mxu1 %vm516_vm2, %v515_v49 }
 0x251   :  { %7095 = vmatpush3.bf16.xpose.msra.mxu1 %v539_v52 }
 0x252   :  { %7132 = vmatprep.subr.bf16.mxu1 %v8174_v51 }
 0x258   :  { %7097 = vmatmul.mubr.msk.bf16.vlgmr.msra.gmra.mrb[16].mxu1 %vm516_vm2, %v509_v0 }
 0x259   :  { %7100 = vmatprep.mubr.msk.bf16.mxu1 %vm516_vm2, %v510_v22  ;;  %7133 = vmatpush3.bf16.msra.mxu1 %v8174_v51 }
 0x25a   :  { %7134 = vmatprep.subr.bf16.mxu1 %v8175_v53 }
 0x25d   :  { %7135 = vmatpush3.bf16.msra.mxu1 %v8175_v53 }
 0x260   :  { %7101 = vmatmul.mubr.msk.bf16.gmra.mrb[20].mxu1 %vm516_vm2, %v511_v57 }
 0x261   :  { %7136 = vmatprep.mubr.msk.bf16.mxu1 %vm107_vm0, %v8640_v19 }
 0x268   :  { %7137 = vmatmul.mubr.msk.bf16.vlgmr.msra.gmra.mrb[24].mxu1 %vm107_vm0, %v8648_v40 }
 0x269   :  { %7140 = vmatprep.mubr.msk.bf16.mxu1 %vm107_vm0, %v8658_v44 }
 0x270   :  { %7141 = vmatmul.mubr.msk.bf16.gmra.mrb[28].mxu1 %vm107_vm0, %v8664_v45 }
 0x32b   :  { %v7098_v54 = vpop.f32.mrb[16].mxu1 }
 0x32c   :  { %v575_v56 = vpop.f32.mrb[17].mxu1  ;;  %v607_v58 = vmul.f32 0.25, %v7098_v54 }
 0x32d   :  { %v605_v59 = vmul.f32 0.25, %v575_v56  ;;  %v7099_v60 = vpop.f32.mrb[18].mxu1 }
 0x32e   :  { %v578_v61 = vpop.f32.mrb[19].mxu1  ;;  %v608_v0 = vmul.f32 0.25, %v7099_v60  ;;  %v8756_v6 = vadd.f32 %v614_v63, %v607_v58 }
 0x32f   :  { %v606_v1 = vmul.f32 0.25, %v578_v61  ;;  %v8747_v2 = vadd.f32 %v612_v47, %v605_v59 }
 0x330   :  { %v8760_v9 = vadd.f32 %v615_v3, %v608_v0  ;;  %v633_v15 = vsel %vm626_vm4, %v8756_v6, -inf }
 0x331   :  { %v627_v4 = vsel %vm626_vm4, %v8747_v2, -inf  ;;  %v8754_v5 = vadd.f32 %v613_v62, %v606_v1 }
 0x332   :  { %628 = vmax.xlane.f32.xlu0 %v627_v4  ;;  %v636_v23 = vsel %vm626_vm4, %v8760_v9, -inf }
 0x333   :  { %v7102_v7 = vpop.f32.mrb[20].mxu1  ;;  %v630_v8 = vsel %vm626_vm4, %v8754_v5, -inf }
 0x334   :  { %631 = vmax.xlane.f32.xlu1 %v630_v8  ;;  %v591_v10 = vpop.f32.mrb[21].mxu1  ;;  %v611_v12 = vmul.f32 0.25, %v7102_v7 }
 0x335   :  { %v609_v13 = vmul.f32 0.25, %v591_v10  ;;  %v7103_v14 = vpop.f32.mrb[22].mxu1 }
 0x336   :  { %634 = vmax.xlane.f32.xlu0 %v633_v15  ;;  %v594_v16 = vpop.f32.mrb[23].mxu1  ;;  %v8778_v28 = vadd.f32 %v618_v20, %v611_v12 }
 0x337   :  { %v610_v22 = vmul.f32 0.25, %v594_v16  ;;  %v623_v18 = vadd.f32 %v616_v11, %v609_v13 }
 0x338   :  { %637 = vmax.xlane.f32.xlu1 %v636_v23  ;;  %v646_v26 = vsel %vm645_vm5, %v8778_v28, -inf }
 0x339   :  { %v639_v24 = vsel %vm626_vm4, %v623_v18, -inf  ;;  %v8776_v25 = vadd.f32 %v617_v17, %v610_v22 }
 0x33a   :  { %640 = vmax.xlane.f32.xlu0 %v639_v24 }
 0x33b   :  { %v7138_v29 = vpop.f32.mrb[24].mxu1  ;;  %v642_v31 = vsel %vm626_vm4, %v8776_v25, -inf }
 0x33c   :  { %v956_v32 = vpop.f32.mrb[25].mxu1  ;;  %643 = vmax.xlane.f32.xlu1 %v642_v31  ;;  %v965_v34 = vadd.f32 %v7138_v29, %v6193_v30  ;;  %v8176_v31 = vld [vmem:[%s10884_s21 + $0x30] sm:$0xff]  }
 0x33d   :  { %v7139_v33 = vpop.f32.mrb[26].mxu1  ;;  %v957_v39 = vadd.f32 %v6193_v30, %v956_v32  ;;  %7120 = vmatprep.subr.bf16.mxu0 %v8176_v31 }
 0x33e   :  { %v968_v35 = vadd.f32 %v7139_v33, %v6193_v30  ;;  %647 = vmax.xlane.f32.xlu0 %v646_v26  ;;  %v959_v38 = vpop.f32.mrb[27].mxu1 }
 0x33f   :  { %v960_v36 = vadd.f32 %v6193_v30, %v959_v38 }
 0x340   :  { %v1080_v27 = vpack.c.bf16 %v968_v35, %v965_v34 }
 0x341   :  { %v1079_v41 = vpack.c.bf16 %v960_v36, %v957_v39 }
 0x342   :  { %v1099_v52 = vsel %vm516_vm2, %v1080_v27, 0 }
 0x343   :  { %v7142_v42 = vpop.f32.mrb[28].mxu1  ;;  %8152 = vmatprep.subr.msk.bf16.mxu1 %vm516_vm2, %v1079_v41  ;;  %v1096_v43 = vsel %vm516_vm2, %v1079_v41, 0 }
 0x344   :  { %v972_v37 = vpop.f32.mrb[29].mxu1  ;;  %7157 = vmatpush3.bf16.xpose.msra.mxu1 %v1096_v43  ;;  %v981_v53 = vadd.f32 %v7142_v42, %v6193_v30 }
 0x345   :  { %v7143_v46 = vpop.f32.mrb[30].mxu1  ;;  %8153 = vmatprep.subr.msk.bf16.mxu1 %vm516_vm2, %v1080_v27  ;;  %v973_v49 = vadd.f32 %v6193_v30, %v972_v37 }
 0x346   :  { %v975_v48 = vpop.f32.mrb[31].mxu1  ;;  %v1082_v55 = vpack.c.bf16 %v981_v53, %v981_v53  ;;  %v8177_v53 = vld [vmem:[%s10884_s21 + $0x38] sm:$0xff]  }
 0x347   :  { %v976_v50 = vadd.f32 %v6193_v30, %v975_v48 }
 0x348   :  { %v1105_v54 = vsel %vm516_vm2, %v1082_v55, 0 }
 0x349   :  { %v1081_v51 = vpack.c.bf16 %v976_v50, %v973_v49 }
 0x34b   :  { %v1102_v57 = vsel %vm516_vm2, %v1081_v51, 0 }
 0x34c   :  { %7159 = vmatpush3.bf16.xpose.msra.mxu1 %v1099_v52 }
 0x34d   :  { %8154 = vmatprep.subr.msk.bf16.mxu1 %vm516_vm2, %v1081_v51 }
 0x354   :  { %7161 = vmatpush3.bf16.xpose.msra.mxu1 %v1102_v57 }
 0x355   :  { %8155 = vmatprep.subr.msk.bf16.mxu1 %vm516_vm2, %v1082_v55 }
 0x35c   :  { %7163 = vmatpush3.bf16.xpose.msra.mxu1 %v1105_v54 }
 0x3bf   :  { %v629_v56 = vpop.xlane.xlu0 %628 }
 0x3c0   :  { %v649_v47 = vsub.f32 %v8747_v2, %v629_v56 }
 0x3c1   :  { %v632_v58 = vpop.xlane.xlu1 %631 }
 0x3c2   :  { %v656_v59 = vmul.f32 1.442695, %v649_v47  ;;  %v650_v60 = vsub.f32 %v8754_v5, %v632_v58  ;;  %v8178_v58 = vld [vmem:[%s10884_s21 + $0x50] sm:$0xff]  }
 0x3c3   :  { %v635_v61 = vpop.xlane.xlu0 %634 }
 0x3c4   :  { %8220 = vpow2.f32 %v656_v59  ;;  %v658_v62 = vmul.f32 1.442695, %v650_v60  ;;  %v651_v63 = vsub.f32 %v8756_v6, %v635_v61  ;;  %v8179_v60 = vld [vmem:[%s10884_s21 + $0x58] sm:$0xff]  }
 0x3c5   :  { %v638_v0 = vpop.xlane.xlu1 %637 }
 0x3c6   :  { %8222 = vpow2.f32 %v658_v62  ;;  %v660_v1 = vmul.f32 1.442695, %v651_v63  ;;  %v652_v3 = vsub.f32 %v8760_v9, %v638_v0 }
 0x3c7   :  { %v641_v4 = vpop.xlane.xlu0 %640 }
 0x3c8   :  { %8224 = vpow2.f32 %v660_v1  ;;  %v662_v7 = vmul.f32 1.442695, %v652_v3  ;;  %v653_v8 = vsub.f32 %v623_v18, %v641_v4 }
 0x3c9   :  { %v644_v10 = vpop.xlane.xlu1 %643 }
 0x3ca   :  { %8226 = vpow2.f32 %v662_v7  ;;  %v664_v2 = vmul.f32 1.442695, %v653_v8  ;;  %v654_v11 = vsub.f32 %v8776_v25, %v644_v10  ;;  %v6181_v8 = vld [vmem:[%s10859_s4 + $0x3] ss:$0 sm:$0xff] }
 0x3cb   :  { %v648_v5 = vpop.xlane.xlu0 %647 }
 0x3cc   :  { %8228 = vpow2.f32 %v664_v2  ;;  %v666_v12 = vmul.f32 1.442695, %v654_v11  ;;  %v655_v13 = vsub.f32 %v8778_v28, %v648_v5 }
 0x3ce   :  { %v8221_v6 = vpop.eup %8220  ;;  %8230 = vpow2.f32 %v666_v12  ;;  %v668_v14 = vmul.f32 1.442695, %v655_v13 }
 0x3cf   :  { %v670_v15 = vsel %vm626_vm4, %v8221_v6, 0.0 }
 0x3d0   :  { %v8223_v9 = vpop.eup %8222  ;;  %8232 = vpow2.f32 %v668_v14  ;;  %671 = vadd.xlane.f32.xlu1 %v670_v15 }
 0x3d1   :  { %v673_v16 = vsel %vm626_vm4, %v8223_v9, 0.0 }
 0x3d2   :  { %v8225_v17 = vpop.eup %8224  ;;  %674 = vadd.xlane.f32.xlu0 %v673_v16 }
 0x3d3   :  { %v676_v20 = vsel %vm626_vm4, %v8225_v17, 0.0 }
 0x3d4   :  { %v8227_v22 = vpop.eup %8226  ;;  %677 = vadd.xlane.f32.xlu1 %v676_v20 }
 0x3d5   :  { %v679_v23 = vsel %vm626_vm4, %v8227_v22, 0.0 }
 0x3d6   :  { %v8229_v18 = vpop.eup %8228  ;;  %680 = vadd.xlane.f32.xlu0 %v679_v23 }
 0x3d7   :  { %v682_v24 = vsel %vm626_vm4, %v8229_v18, 0.0 }
 0x3d8   :  { %v8231_v25 = vpop.eup %8230  ;;  %683 = vadd.xlane.f32.xlu1 %v682_v24 }
 0x3d9   :  { %v685_v28 = vsel %vm626_vm4, %v8231_v25, 0.0 }
 0x3da   :  { %v8233_v29 = vpop.eup %8232  ;;  %686 = vadd.xlane.f32.xlu0 %v685_v28 }
 0x3db   :  { %v688_v30 = vsel %vm645_vm5, %v8233_v29, 0.0 }
 0x3dc   :  { %689 = vadd.xlane.f32.xlu1 %v688_v30 }
 0x45d   :  { %v672_v32 = vpop.xlane.xlu1 %671 }
 0x45e   :  { %8234 = vrcp.f32 %v672_v32 }
 0x45f   :  { %v675_v33 = vpop.xlane.xlu0 %674 }
 0x460   :  { %8236 = vrcp.f32 %v675_v33 }
 0x461   :  { %v678_v26 = vpop.xlane.xlu1 %677 }
 0x462   :  { %8238 = vrcp.f32 %v678_v26 }
 0x463   :  { %v681_v34 = vpop.xlane.xlu0 %680 }
 0x464   :  { %8240 = vrcp.f32 %v681_v34 }
 0x465   :  { %v684_v35 = vpop.xlane.xlu1 %683 }
 0x466   :  { %8242 = vrcp.f32 %v684_v35 }
 0x467   :  { %v687_v38 = vpop.xlane.xlu0 %686 }
 0x468   :  { %v8235_v39 = vpop.eup %8234  ;;  %8244 = vrcp.f32 %v687_v38 }
 0x469   :  { %v690_v36 = vpop.xlane.xlu1 %689  ;;  %v698_v27 = vmul.f32 %v8235_v39, %v8221_v6 }
 0x46a   :  { %v8237_v41 = vpop.eup %8236  ;;  %8246 = vrcp.f32 %v690_v36 }
 0x46b   :  { %v699_v42 = vmul.f32 %v8237_v41, %v8223_v9  ;;  %705 = vst.msk [vmem:[%s10861_s19] sm:$0xff] %vm626_vm4, %v698_v27 }
 0x46c   :  { %v8239_v43 = vpop.eup %8238 }
 0x46d   :  { %v700_v37 = vmul.f32 %v8239_v43, %v8225_v17  ;;  %706 = vst.msk [vmem:[%s10861_s19 + $0x8] sm:$0xff] %vm626_vm4, %v699_v42  ;;  %v712_v46 = vpack.c.bf16 %v699_v42, %v698_v27 }
 0x46e   :  { %v8241_v48 = vpop.eup %8240 }
 0x46f   :  { %707 = vst.msk [vmem:[%s10861_s19 + $0x10] sm:$0xff] %vm626_vm4, %v700_v37  ;;  %v701_v49 = vmul.f32 %v8241_v48, %v8227_v22  ;;  %7112 = vmatprep.mubr.msk.bf16.mxu0 %vm626_vm4, %v712_v46 }
 0x470   :  { %v8243_v50 = vpop.eup %8242 }
 0x471   :  { %708 = vst.msk [vmem:[%s10861_s19 + $0x18] sm:$0xff] %vm626_vm4, %v701_v49  ;;  %v713_v51 = vpack.c.bf16 %v701_v49, %v700_v37  ;;  %v702_v52 = vmul.f32 %v8243_v50, %v8229_v18 }
 0x472   :  { %v8245_v55 = vpop.eup %8244 }
 0x473   :  { %7113 = vmatmul.mubr.msk.bf16.vlgmr.msra.gmra.mrb[8].mxu0 %vm626_vm4, %v713_v51  ;;  %v703_v57 = vmul.f32 %v8245_v55, %v8231_v25  ;;  %709 = vst.msk [vmem:[%s10861_s19 + $0x20] sm:$0xff] %vm626_vm4, %v702_v52 }
 0x474   :  { %v8247_v54 = vpop.eup %8246  ;;  %7121 = vmatpush3.bf16.msra.mxu0 %v8176_v31 }
 0x475   :  { %710 = vst.msk [vmem:[%s10861_s19 + $0x28] sm:$0xff] %vm626_vm4, %v703_v57  ;;  %v714_v56 = vpack.c.bf16 %v703_v57, %v702_v52  ;;  %v704_v47 = vmul.f32 %v8247_v54, %v8233_v29  ;;  %7122 = vmatprep.subr.bf16.mxu0 %v8177_v53  ;;  %v6205_v29 = vld [vmem:[%s10859_s4 + $0x5] ss:$0 sm:$0xff] }
 0x477   :  { %7116 = vmatprep.mubr.msk.bf16.mxu0 %vm626_vm4, %v714_v56  ;;  %711 = vst.msk [vmem:[%s10861_s19 + $0x30] sm:$0x1] %vm645_vm5, %v704_v47  ;;  %v715_v59 = vpack.c.bf16 %v704_v47, %v704_v47  ;;  %v6217_v47 = vld [vmem:[%s10860_s5 + $0x40] sm:$0xff] }
 0x478   :  { %7123 = vmatpush3.bf16.msra.mxu0 %v8177_v53  ;;  %v6216_v53 = vld [vmem:[%s10860_s5 + $0x38] sm:$0xff] }
 0x479   :  { %7144 = vmatprep.subr.bf16.mxu0 %v8178_v58 }
 0x47b   :  { %7117 = vmatmul.mubr.msk.bf16.gmra.mrb[12].mxu0 %vm626_vm4, %v715_v59 }
 0x47c   :  { %7124 = vmatprep.mubr.msk.bf16.mxu0 %vm107_vm0, %v8640_v19 }
 0x483   :  { %7125 = vmatmul.mubr.msk.bf16.vlgmr.msra.gmra.mrb[16].mxu0 %vm107_vm0, %v8648_v40 }
 0x484   :  { %7128 = vmatprep.mubr.msk.bf16.mxu0 %vm107_vm0, %v8658_v44  ;;  %7145 = vmatpush3.bf16.msra.mxu0 %v8178_v58  ;;  %v6218_v58 = vld [vmem:[%s10860_s5 + $0x48] sm:$0xff] }
 0x485   :  { %7146 = vmatprep.subr.bf16.mxu0 %v8179_v60 }
 0x488   :  { %7147 = vmatpush3.bf16.msra.mxu0 %v8179_v60 }
 0x48b   :  { %7129 = vmatmul.mubr.msk.bf16.gmra.mrb[20].mxu0 %vm107_vm0, %v8664_v45 }
 0x48c   :  { %7148 = vmatprep.mubr.msk.bf16.mxu0 %vm107_vm0, %v8640_v19 }
 0x493   :  { %7149 = vmatmul.mubr.msk.bf16.vlgmr.msra.gmra.mrb[24].mxu0 %vm107_vm0, %v8648_v40 }
 0x494   :  { %7152 = vmatprep.mubr.msk.bf16.mxu0 %vm107_vm0, %v8658_v44 }
 0x49b   :  { %7153 = vmatmul.mubr.msk.bf16.gmra.mrb[28].mxu0 %vm107_vm0, %v8664_v45 }
 0x546   :  { %v8868_v61 = vpop.f32.mrb[8].mxu0 }
 0x547   :  { %v8870_v62 = vpop.f32.mrb[9].mxu0 }
 0x548   :  { %v8872_v63 = vpop.f32.mrb[10].mxu0 }
 0x549   :  { %v803_v0 = vpack.c.bf16 %v8872_v63, %v8868_v61  ;;  %v8876_v1 = vpop.f32.mrb[11].mxu0 }
 0x54a   :  { %v802_v19 = vpack.c.bf16 %v8876_v1, %v8870_v62  ;;  %v8447_v62 = vmov 0.0  }
 0x54e   :  { %v8880_v40 = vpop.f32.mrb[12].mxu0 }
 0x54f   :  { %v8882_v44 = vpop.f32.mrb[13].mxu0 }
 0x550   :  { %v7119_v3 = vpop.f32.mrb[14].mxu0 }
 0x551   :  { %v8884_v45 = vpop.f32.mrb[15].mxu0 }
 0x552   :  { %v804_v4 = vpack.c.bf16 %v8884_v45, %v8882_v44 }
 0x556   :  { %v7126_v7 = vpop.f32.mrb[16].mxu0 }
 0x557   :  { %v867_v10 = vpop.f32.mrb[17].mxu0  ;;  %v876_v11 = vadd.f32 %v7126_v7, %v6181_v8  ;;  %v6219_v7 = vld [vmem:[%s10860_s5 + $0x50] sm:$0xff] }
 0x558   :  { %v7127_v2 = vpop.f32.mrb[18].mxu0  ;;  %v868_v13 = vadd.f32 %v6181_v8, %v867_v10 }
 0x559   :  { %v879_v5 = vadd.f32 %v7127_v2, %v6181_v8  ;;  %v870_v12 = vpop.f32.mrb[19].mxu0 }
 0x55a   :  { %v871_v6 = vadd.f32 %v6181_v8, %v870_v12 }
 0x55b   :  { %v1076_v14 = vpack.c.bf16 %v879_v5, %v876_v11 }
 0x55c   :  { %v1075_v15 = vpack.c.bf16 %v871_v6, %v868_v13  ;;  %v6220_v6 = vld [vmem:[%s10860_s5 + $0x58] sm:$0xff] }
 0x55e   :  { %v7130_v9 = vpop.f32.mrb[20].mxu0  ;;  %7164 = vmatprep.mubr.msk.bf16.mxu1 %vm516_vm2, %v1075_v15 }
 0x55f   :  { %v883_v16 = vpop.f32.mrb[21].mxu0  ;;  %7165 = vmatmul.mubr.msk.bf16.vlgmr.msra.gmra.mrb[32].mxu1 %vm516_vm2, %v1076_v14  ;;  %v892_v20 = vadd.f32 %v7130_v9, %v6181_v8 }
 0x560   :  { %v7131_v17 = vpop.f32.mrb[22].mxu0  ;;  %v884_v23 = vadd.f32 %v6181_v8, %v883_v16 }
 0x561   :  { %v886_v22 = vpop.f32.mrb[23].mxu0  ;;  %v1078_v25 = vpack.c.bf16 %v892_v20, %v892_v20  ;;  %v6221_v20 = vld [vmem:[%s10860_s5 + $0x60] sm:$0xff] }
 0x562   :  { %v887_v18 = vadd.f32 %v6181_v8, %v886_v22  ;;  %v6222_v22 = vld [vmem:[%s10860_s5 + $0x68] sm:$0x1] }
 0x564   :  { %v1077_v24 = vpack.c.bf16 %v887_v18, %v884_v23 }
 0x566   :  { %v7150_v28 = vpop.f32.mrb[24].mxu0  ;;  %7168 = vmatprep.mubr.msk.bf16.mxu1 %vm516_vm2, %v1077_v24 }
 0x567   :  { %v1045_v30 = vpop.f32.mrb[25].mxu0  ;;  %7169 = vmatmul.mubr.msk.bf16.gmra.mrb[36].mxu1 %vm516_vm2, %v1078_v25  ;;  %v1054_v32 = vadd.f32 %v7150_v28, %v6205_v29 }
 0x568   :  { %v7151_v31 = vpop.f32.mrb[26].mxu0  ;;  %v1046_v34 = vadd.f32 %v6205_v29, %v1045_v30  ;;  %7222 = vmatprep.mubr.msk.f32.mxu1 %vm8446_vm6, %v8447_v62 }
 0x569   :  { %v1057_v33 = vadd.f32 %v7151_v31, %v6205_v29  ;;  %v1048_v26 = vpop.f32.mrb[27].mxu0 }
 0x56a   :  { %v1049_v35 = vadd.f32 %v6205_v29, %v1048_v26 }
 0x56b   :  { %v1283_v38 = vpack.c.bf16 %v1057_v33, %v1054_v32 }
 0x56c   :  { %v1282_v39 = vpack.c.bf16 %v1049_v35, %v1046_v34 }
 0x56e   :  { %v7154_v36 = vpop.f32.mrb[28].mxu0  ;;  %7172 = vmatprep.subr.bf16.mxu0 %v1282_v39 }
 0x56f   :  { %v1070_v27 = vadd.f32 %v7154_v36, %v6205_v29  ;;  %v1061_v41 = vpop.f32.mrb[29].mxu0  ;;  %7173 = vmatpush3.bf16.msra.mxu0 %v1282_v39 }
 0x570   :  { %v7155_v42 = vpop.f32.mrb[30].mxu0  ;;  %7174 = vmatprep.subr.bf16.mxu0 %v1283_v38  ;;  %v1062_v46 = vadd.f32 %v6205_v29, %v1061_v41 }
 0x571   :  { %v1064_v43 = vpop.f32.mrb[31].mxu0  ;;  %v1285_v37 = vpack.c.bf16 %v1070_v27, %v1070_v27 }
 0x572   :  { %v1065_v48 = vadd.f32 %v6205_v29, %v1064_v43 }
 0x573   :  { %7175 = vmatpush3.bf16.msra.mxu0 %v1283_v38  ;;  %v1299_v50 = vand.u32 %v1285_v37, %v8702_v21 }
 0x574   :  { %v1284_v49 = vpack.c.bf16 %v1065_v48, %v1062_v46 }
 0x576   :  { %7176 = vmatprep.subr.bf16.mxu0 %v1284_v49 }
 0x577   :  { %7177 = vmatpush3.bf16.msra.mxu0 %v1284_v49 }
 0x578   :  { %7178 = vmatprep.subr.bf16.mxu0 %v1299_v50 }
 0x57b   :  { %7179 = vmatpush3.bf16.msra.mxu0 %v1299_v50 }
 0x632   :  { %v7166_v51 = vpop.f32.mrb[32].mxu1 }
 0x633   :  { %v1141_v52 = vpop.f32.mrb[33].mxu1  ;;  %v1173_v55 = vmul.f32 0.25, %v7166_v51 }
 0x634   :  { %v1171_v57 = vmul.f32 0.25, %v1141_v52  ;;  %v7167_v54 = vpop.f32.mrb[34].mxu1 }
 0x635   :  { %v1144_v56 = vpop.f32.mrb[35].mxu1  ;;  %v1174_v59 = vmul.f32 0.25, %v7167_v54  ;;  %v1188_v2 = vadd.f32 %v6218_v58, %v1173_v55 }
 0x636   :  { %v1172_v60 = vmul.f32 0.25, %v1144_v56  ;;  %v1186_v3 = vadd.f32 %v6216_v53, %v1171_v57 }
 0x637   :  { %v1189_v12 = vadd.f32 %v6219_v7, %v1174_v59  ;;  %v1199_v16 = vsel %vm626_vm4, %v1188_v2, -inf }
 0x638   :  { %v1193_v8 = vsel %vm626_vm4, %v1186_v3, -inf  ;;  %v1187_v10 = vadd.f32 %v6217_v47, %v1172_v60 }
 0x639   :  { %1194 = vmax.xlane.f32.xlu0 %v1193_v8  ;;  %v1202_v18 = vsel %vm626_vm4, %v1189_v12, -inf }
 0x63a   :  { %v7170_v11 = vpop.f32.mrb[36].mxu1  ;;  %v1196_v5 = vsel %vm626_vm4, %v1187_v10, -inf }
 0x63b   :  { %1197 = vmax.xlane.f32.xlu1 %v1196_v5  ;;  %v1157_v13 = vpop.f32.mrb[37].mxu1  ;;  %v1177_v14 = vmul.f32 0.25, %v7170_v11 }
 0x63c   :  { %v1175_v15 = vmul.f32 0.25, %v1157_v13  ;;  %v7171_v9 = vpop.f32.mrb[38].mxu1 }
 0x63d   :  { %1200 = vmax.xlane.f32.xlu0 %v1199_v16  ;;  %v1160_v17 = vpop.f32.mrb[39].mxu1  ;;  %v1192_v29 = vadd.f32 %v6222_v22, %v1177_v14 }
 0x63e   :  { %v1176_v23 = vmul.f32 0.25, %v1160_v17  ;;  %v1190_v24 = vadd.f32 %v6220_v6, %v1175_v15 }
 0x63f   :  { %1203 = vmax.xlane.f32.xlu1 %v1202_v18  ;;  %v1211_v31 = vsel %vm645_vm5, %v1192_v29, -inf }
 0x640   :  { %v1205_v25 = vsel %vm626_vm4, %v1190_v24, -inf  ;;  %v1191_v28 = vadd.f32 %v6221_v20, %v1176_v23 }
 0x641   :  { %1206 = vmax.xlane.f32.xlu0 %v1205_v25 }
 0x642   :  { %v1208_v30 = vsel %vm626_vm4, %v1191_v28, -inf }
 0x643   :  { %1209 = vmax.xlane.f32.xlu1 %v1208_v30 }
 0x645   :  { %1212 = vmax.xlane.f32.xlu0 %v1211_v31 }
 0x6c6   :  { %v1195_v32 = vpop.xlane.xlu0 %1194 }
 0x6c7   :  { %v1214_v33 = vsub.f32 %v1186_v3, %v1195_v32 }
 0x6c8   :  { %v1198_v26 = vpop.xlane.xlu1 %1197 }
 0x6c9   :  { %v1221_v34 = vmul.f32 1.442695, %v1214_v33  ;;  %v1215_v35 = vsub.f32 %v1187_v10, %v1198_v26 }
 0x6ca   :  { %v1201_v38 = vpop.xlane.xlu0 %1200 }
 0x6cb   :  { %8248 = vpow2.f32 %v1221_v34  ;;  %v1223_v39 = vmul.f32 1.442695, %v1215_v35  ;;  %v1216_v36 = vsub.f32 %v1188_v2, %v1201_v38 }
 0x6cc   :  { %v1204_v27 = vpop.xlane.xlu1 %1203 }
 0x6cd   :  { %8250 = vpow2.f32 %v1223_v39  ;;  %v1225_v41 = vmul.f32 1.442695, %v1216_v36  ;;  %v1217_v42 = vsub.f32 %v1189_v12, %v1204_v27  ;;  %v8180_v12 = vld [vmem:[%s10862_s6 + $0x8] sm:$0xff]   ;;  %v8181_v27 = vld [vmem:[%s10862_s6] sm:$0xff]  }
 0x6ce   :  { %v1207_v43 = vpop.xlane.xlu0 %1206  ;;  %7188 = vmatprep.subr.bf16.mxu0 %v8180_v12 }
 0x6cf   :  { %8252 = vpow2.f32 %v1225_v41  ;;  %v1227_v37 = vmul.f32 1.442695, %v1217_v42  ;;  %v1218_v46 = vsub.f32 %v1190_v24, %v1207_v43 }
 0x6d0   :  { %v1210_v48 = vpop.xlane.xlu1 %1209 }
 0x6d1   :  { %8254 = vpow2.f32 %v1227_v37  ;;  %v1229_v49 = vmul.f32 1.442695, %v1218_v46  ;;  %v1219_v50 = vsub.f32 %v1191_v28, %v1210_v48 }
 0x6d2   :  { %v1213_v51 = vpop.xlane.xlu0 %1212 }
 0x6d3   :  { %8256 = vpow2.f32 %v1229_v49  ;;  %v1231_v52 = vmul.f32 1.442695, %v1219_v50  ;;  %v1220_v53 = vsub.f32 %v1192_v29, %v1213_v51 }
 0x6d5   :  { %v8249_v55 = vpop.eup %8248  ;;  %8258 = vpow2.f32 %v1231_v52  ;;  %v1233_v57 = vmul.f32 1.442695, %v1220_v53 }
 0x6d6   :  { %v1235_v54 = vsel %vm626_vm4, %v8249_v55, 0.0 }
 0x6d7   :  { %v8251_v56 = vpop.eup %8250  ;;  %8260 = vpow2.f32 %v1233_v57  ;;  %1236 = vadd.xlane.f32.xlu1 %v1235_v54  ;;  %v805_v57 = vpack.c.bf16 %v8880_v40, %v8880_v40  ;;  %v8445_v54 = vmov 0.0|0.0   ;;  %v8402_v40 = vld [vmem:[%s10883_s20 + $0x10] sm:$0xff] }
 0x6d8   :  { %v1238_v47 = vsel %vm626_vm4, %v8251_v56, 0.0  ;;  %7996 = vmatprep.subr.bf16.mxu1 %v8445_v54 }
 0x6d9   :  { %v8253_v58 = vpop.eup %8252  ;;  %1239 = vadd.xlane.f32.xlu0 %v1238_v47 }
 0x6da   :  { %v1241_v59 = vsel %vm626_vm4, %v8253_v58, 0.0 }
 0x6db   :  { %v8255_v60 = vpop.eup %8254  ;;  %1242 = vadd.xlane.f32.xlu1 %v1241_v59  ;;  %v8404_v59 = vld [vmem:[%s10883_s20 + $0x18] sm:$0xff] }
 0x6dc   :  { %v1244_v3 = vsel %vm626_vm4, %v8255_v60, 0.0 }
 0x6dd   :  { %v8257_v7 = vpop.eup %8256  ;;  %1245 = vadd.xlane.f32.xlu0 %v1244_v3 }
 0x6de   :  { %v1247_v8 = vsel %vm626_vm4, %v8257_v7, 0.0 }
 0x6df   :  { %v8259_v10 = vpop.eup %8258  ;;  %1248 = vadd.xlane.f32.xlu1 %v1247_v8 }
 0x6e0   :  { %v1250_v2 = vsel %vm626_vm4, %v8259_v10, 0.0 }
 0x6e1   :  { %v8261_v11 = vpop.eup %8260  ;;  %1251 = vadd.xlane.f32.xlu0 %v1250_v2 }
 0x6e2   :  { %v1253_v5 = vsel %vm645_vm5, %v8261_v11, 0.0 }
 0x6e3   :  { %1254 = vadd.xlane.f32.xlu1 %v1253_v5 }
 0x764   :  { %v1237_v13 = vpop.xlane.xlu1 %1236 }
 0x765   :  { %8262 = vrcp.f32 %v1237_v13 }
 0x766   :  { %v1240_v6 = vpop.xlane.xlu0 %1239 }
 0x767   :  { %8264 = vrcp.f32 %v1240_v6 }
 0x768   :  { %v1243_v14 = vpop.xlane.xlu1 %1242 }
 0x769   :  { %8266 = vrcp.f32 %v1243_v14 }
 0x76a   :  { %v1246_v15 = vpop.xlane.xlu0 %1245 }
 0x76b   :  { %8268 = vrcp.f32 %v1246_v15 }
 0x76c   :  { %v1249_v9 = vpop.xlane.xlu1 %1248 }
 0x76d   :  { %8270 = vrcp.f32 %v1249_v9 }
 0x76e   :  { %v1252_v16 = vpop.xlane.xlu0 %1251 }
 0x76f   :  { %v8263_v17 = vpop.eup %8262  ;;  %8272 = vrcp.f32 %v1252_v16 }
 0x770   :  { %v1255_v20 = vpop.xlane.xlu1 %1254  ;;  %v1263_v22 = vmul.f32 %v8263_v17, %v8249_v55 }
 0x771   :  { %v8265_v23 = vpop.eup %8264  ;;  %8274 = vrcp.f32 %v1255_v20  ;;  %v8406_v20 = vld [vmem:[%s10883_s20 + $0x20] sm:$0xff] }
 0x772   :  { %v1264_v18 = vmul.f32 %v8265_v23, %v8251_v56  ;;  %6223 = vst.msk [vmem:[%s10861_s19 + $0x38] sm:$0xff] %vm626_vm4, %v1263_v22  ;;  %v8403_v56 = vld [vmem:[%s10883_s20] sm:$0xff] }
 0x773   :  { %v8267_v24 = vpop.eup %8266 }
 0x774   :  { %v1265_v25 = vmul.f32 %v8267_v24, %v8253_v58  ;;  %6224 = vst.msk [vmem:[%s10861_s19 + $0x40] sm:$0xff] %vm626_vm4, %v1264_v18  ;;  %v1278_v28 = vpack.c.bf16 %v1264_v18, %v1263_v22  ;;  %v8407_v18 = vld [vmem:[%s10883_s20 + $0x28] sm:$0xff] }
 0x775   :  { %v8269_v29 = vpop.eup %8268 }
 0x776   :  { %6225 = vst.msk [vmem:[%s10861_s19 + $0x48] sm:$0xff] %vm626_vm4, %v1265_v25  ;;  %v1266_v30 = vmul.f32 %v8269_v29, %v8255_v60  ;;  %7180 = vmatprep.mubr.msk.bf16.mxu0 %vm626_vm4, %v1278_v28  ;;  %v8408_v29 = vld [vmem:[%s10883_s20 + $0x30] sm:$0x1] }
 0x777   :  { %v8271_v31 = vpop.eup %8270 }
 0x778   :  { %6226 = vst.msk [vmem:[%s10861_s19 + $0x50] sm:$0xff] %vm626_vm4, %v1266_v30  ;;  %v1279_v32 = vpack.c.bf16 %v1266_v30, %v1265_v25  ;;  %v1267_v33 = vmul.f32 %v8271_v31, %v8257_v7  ;;  %v8405_v7 = vld [vmem:[%s10883_s20 + $0x8] sm:$0xff] }
 0x779   :  { %v8273_v26 = vpop.eup %8272 }
 0x77a   :  { %7181 = vmatmul.mubr.msk.bf16.vlgmr.msra.gmra.mrb[32].mxu0 %vm626_vm4, %v1279_v32  ;;  %v1268_v34 = vmul.f32 %v8273_v26, %v8259_v10  ;;  %6227 = vst.msk [vmem:[%s10861_s19 + $0x58] sm:$0xff] %vm626_vm4, %v1267_v33  ;;  %v6273_v26 = vld [vmem:[%s10864_s8 + $0x70] sm:$0xff] }
 0x77b   :  { %v8275_v35 = vpop.eup %8274  ;;  %7189 = vmatpush3.bf16.msra.mxu0 %v8180_v12 }
 0x77c   :  { %6228 = vst.msk [vmem:[%s10861_s19 + $0x60] sm:$0xff] %vm626_vm4, %v1268_v34  ;;  %v1280_v38 = vpack.c.bf16 %v1268_v34, %v1267_v33  ;;  %v1269_v39 = vmul.f32 %v8275_v35, %v8261_v11  ;;  %7198 = vmatprep.subr.bf16.mxu0 %v8181_v27  ;;  %v1569_v33 = vld [vmem:[%s10864_s8] sm:$0xff]  ;;  %v1570_v34 = vld [vmem:[%s10864_s8 + $0x8] sm:$0xff]  ;;  %v6274_v35 = vld [vmem:[%s10864_s8 + $0x78] sm:$0xff] }
 0x77e   :  { %7184 = vmatprep.mubr.msk.bf16.mxu0 %vm626_vm4, %v1280_v38  ;;  %6229 = vst.msk [vmem:[%s10861_s19 + $0x68] sm:$0x1] %vm645_vm5, %v1269_v39  ;;  %v1281_v36 = vpack.c.bf16 %v1269_v39, %v1269_v39  ;;  %v1571_v38 = vld [vmem:[%s10864_s8 + $0x10] sm:$0xff]  ;;  %v6275_v39 = vld [vmem:[%s10864_s8 + $0x80] sm:$0xff] }
 0x782   :  { %7185 = vmatmul.mubr.msk.bf16.gmra.mrb[36].mxu0 %vm626_vm4, %v1281_v36  ;;  %v1572_v36 = vld [vmem:[%s10864_s8 + $0x18] sm:$0xff] }
 0x84d   :  { %v7182_v41 = vpop.f32.mrb[32].mxu0 }
 0x84e   :  { %v1335_v42 = vpop.f32.mrb[33].mxu0 }
 0x84f   :  { %v7183_v43 = vpop.f32.mrb[34].mxu0 }
 0x850   :  { %v1366_v37 = vpack.c.bf16 %v7183_v43, %v7182_v41  ;;  %v1338_v46 = vpop.f32.mrb[35].mxu0  ;;  %v1573_v41 = vld [vmem:[%s10864_s8 + $0x20] sm:$0xff]  ;;  %v1574_v43 = vld [vmem:[%s10864_s8 + $0x28] sm:$0xff] }
 0x851   :  { %v1365_v48 = vpack.c.bf16 %v1338_v46, %v1335_v42  ;;  %v6277_v42 = vld [vmem:[%s10864_s8 + $0x90] sm:$0xff] }
 0x852   :  { %v1575_v46 = vld [vmem:[%s10864_s8 + $0x30] sm:$0x1] }
 0x853   :  { %7190 = vmatprep.mubr.msk.bf16.mxu0 %vm516_vm2, %v1365_v48  ;;  %v6279_v48 = vld [vmem:[%s10864_s8 + $0xa0] sm:$0x1] }
 0x854   :  { %7191 = vmatmul.mubr.msk.bf16.vlgmr.msra.gmra.mrb[40].mxu0 %vm516_vm2, %v1366_v37  ;;  %v6278_v37 = vld [vmem:[%s10864_s8 + $0x98] sm:$0xff] }
 0x855   :  { %v7186_v49 = vpop.f32.mrb[36].mxu0  ;;  %7199 = vmatpush3.bf16.msra.mxu0 %v8181_v27  ;;  %v6276_v27 = vld [vmem:[%s10864_s8 + $0x88] sm:$0xff] }
 0x856   :  { %v1351_v50 = vpop.f32.mrb[37].mxu0  ;;  %v1368_v55 = vpack.c.bf16 %v7186_v49, %v7186_v49  ;;  %8014 = vmatprep.subr.bf16.mxu0 %v8445_v54  ;;  %v6257_v49 = vld [vmem:[%s10864_s8 + $0x38] sm:$0xff] }
 0x857   :  { %v7187_v51 = vpop.f32.mrb[38].mxu0 }
 0x858   :  { %v1354_v52 = vpop.f32.mrb[39].mxu0  ;;  %v6258_v51 = vld [vmem:[%s10864_s8 + $0x40] sm:$0xff] }
 0x859   :  { %v1367_v53 = vpack.c.bf16 %v1354_v52, %v1351_v50  ;;  %v6305_v50 = vld [vmem:[%s10864_s8 + $0x118] sm:$0xff]  ;;  %v6306_v52 = vld [vmem:[%s10864_s8 + $0x120] sm:$0xff] }
 0x85b   :  { %7194 = vmatprep.mubr.msk.bf16.mxu0 %vm516_vm2, %v1367_v53  ;;  %v6259_v53 = vld [vmem:[%s10864_s8 + $0x48] sm:$0xff] }
 0x85c   :  { %7195 = vmatmul.mubr.msk.bf16.gmra.mrb[44].mxu0 %vm516_vm2, %v1368_v55  ;;  %v6307_v55 = vld [vmem:[%s10864_s8 + $0x128] sm:$0xff] }
 0x85d   :  { %7200 = vmatprep.mubr.msk.bf16.mxu0 %vm516_vm2, %v802_v19 }
 0x864   :  { %7201 = vmatmul.mubr.msk.bf16.vlgmr.msra.gmra.mrb[40].mxu0 %vm516_vm2, %v803_v0 }
 0x865   :  { %7204 = vmatprep.mubr.msk.bf16.mxu0 %vm516_vm2, %v804_v4  ;;  %v6246_v4 = vld [vmem:[%s10863_s7] ss:$0 sm:$0xff] }
 0x86c   :  { %7205 = vmatmul.mubr.msk.bf16.gmra.mrb[48].mxu0 %vm516_vm2, %v805_v57  ;;  %v6260_v57 = vld [vmem:[%s10864_s8 + $0x50] sm:$0xff] }
 0x86d   :  { %7292 = vmatprep.mubr.msk.f32.mxu0 %vm8446_vm6, %v8447_v62 }
 0x92f   :  { %v7196_v61 = vpop.f32.mrb[44].mxu0 }
 0x930   :  { %v1440_v63 = vpop.f32.mrb[45].mxu0 }
 0x931   :  { %v7197_v0 = vpop.f32.mrb[46].mxu0 }
 0x932   :  { %v1443_v1 = vpop.f32.mrb[47].mxu0  ;;  %v6309_v0 = vld [vmem:[%s10864_s8 + $0x138] sm:$0xff] }
 0x937   :  { %v7202_v19 = vpop.f32.mrb[40].mxu0 }
 0x938   :  { %v1538_v44 = vadd.f32 %v8402_v40, %v7202_v19  ;;  %v1506_v45 = vpop.f32.mrb[41].mxu0  ;;  %v6310_v19 = vld [vmem:[%s10864_s8 + $0x140] sm:$0xff]  ;;  %v6263_v40 = vld [vmem:[%s10864_s8 + $0x68] sm:$0x1] }
 0x939   :  { %v1536_v47 = vadd.f32 %v8403_v56, %v1506_v45  ;;  %v7203_v58 = vpop.f32.mrb[42].mxu0  ;;  %v6289_v45 = vld [vmem:[%s10864_s8 + $0xa8] sm:$0xff]  ;;  %v6290_v56 = vld [vmem:[%s10864_s8 + $0xb0] sm:$0xff] }
 0x93a   :  { %v1539_v60 = vadd.f32 %v8404_v59, %v7203_v58  ;;  %v1509_v3 = vpop.f32.mrb[43].mxu0  ;;  %v9012_v10 = vadd.f32 %v6246_v4, %v1538_v44  ;;  %v6311_v44 = vld [vmem:[%s10864_s8 + $0x148] sm:$0x1]  ;;  %v6291_v58 = vld [vmem:[%s10864_s8 + $0xb8] sm:$0xff] }
 0x93b   :  { %v1537_v8 = vadd.f32 %v8405_v7, %v1509_v3  ;;  %v9016_v11 = vadd.f32 %v6246_v4, %v1536_v47  ;;  %v6338_v47 = vld [vmem:[%s10864_s8 + $0x190] sm:$0xff]  ;;  %v6339_v59 = vld [vmem:[%s10864_s8 + $0x198] sm:$0xff]  ;;  %v6340_v3 = vld [vmem:[%s10864_s8 + $0x1a0] sm:$0xff] }
 0x93c   :  { %v9014_v2 = vadd.f32 %v6246_v4, %v1539_v60  ;;  %v6292_v60 = vld [vmem:[%s10864_s8 + $0xc0] sm:$0xff]  ;;  %v6293_v7 = vld [vmem:[%s10864_s8 + $0xc8] sm:$0xff] }
 0x93d   :  { %v9018_v5 = vadd.f32 %v6246_v4, %v1537_v8  ;;  %v6341_v8 = vld [vmem:[%s10864_s8 + $0x1a8] sm:$0xff] }
 0x93e   :  { %v9022_v12 = vpack.c.bf16 %v9014_v2, %v9012_v10 }
 0x93f   :  { %v9026_v13 = vpack.c.bf16 %v9018_v5, %v9016_v11  ;;  %v7206_v6 = vpop.f32.mrb[48].mxu0 }
 0x940   :  { %v1531_v14 = vadd.f32 %v7206_v6, %v7196_v61  ;;  %v1522_v15 = vpop.f32.mrb[49].mxu0  ;;  %v6308_v61 = vld [vmem:[%s10864_s8 + $0x130] sm:$0xff] }
 0x941   :  { %v1523_v9 = vadd.f32 %v1522_v15, %v1440_v63  ;;  %v7207_v16 = vpop.f32.mrb[50].mxu0  ;;  %7998 = vmatpush3.bf16.msra.mxu1 %v9026_v13  ;;  %8016 = vmatpush3.bf16.msra.mxu0 %v9026_v13  ;;  %v6261_v63 = vld [vmem:[%s10864_s8 + $0x58] sm:$0xff]  ;;  %v6294_v6 = vld [vmem:[%s10864_s8 + $0xd0] sm:$0xff] }
 0x942   :  { %v1525_v17 = vpop.f32.mrb[51].mxu0  ;;  %7999 = vmatprep.subr.bf16.mxu1 %v8445_v54  ;;  %8017 = vmatprep.subr.bf16.mxu0 %v8445_v54  ;;  %v1542_v30 = vadd.f32 %v8408_v29, %v1531_v14  ;;  %v6342_v14 = vld [vmem:[%s10864_s8 + $0x1b0] sm:$0xff]  ;;  %v6295_v15 = vld [vmem:[%s10864_s8 + $0xd8] sm:$0x1] }
 0x943   :  { %v1540_v22 = vadd.f32 %v8406_v20, %v1523_v9  ;;  %v1526_v23 = vadd.f32 %v1525_v17, %v1443_v1  ;;  %v6262_v1 = vld [vmem:[%s10864_s8 + $0x60] sm:$0xff]  ;;  %v6343_v9 = vld [vmem:[%s10864_s8 + $0x1b8] sm:$0x1]  ;;  %v6321_v16 = vld [vmem:[%s10864_s8 + $0x150] sm:$0xff] }
 0x944   :  { %v9057_v32 = vadd.f32 %v6246_v4, %v1542_v30  ;;  %v6322_v17 = vld [vmem:[%s10864_s8 + $0x158] sm:$0xff]  ;;  %v6325_v20 = vld [vmem:[%s10864_s8 + $0x170] sm:$0xff] }
 0x945   :  { %v1541_v24 = vadd.f32 %v8407_v18, %v1526_v23  ;;  %8001 = vmatpush3.bf16.msra.mxu1 %v9022_v12  ;;  %8019 = vmatpush3.bf16.msra.mxu0 %v9022_v12  ;;  %v9042_v25 = vadd.f32 %v6246_v4, %v1540_v22  ;;  %v6326_v22 = vld [vmem:[%s10864_s8 + $0x178] sm:$0xff]  ;;  %v6327_v23 = vld [vmem:[%s10864_s8 + $0x180] sm:$0x1]  ;;  %v6355_v29 = vld [vmem:[%s10864_s8 + $0x1d0] sm:$0xff] }
 0x946   :  { %8002 = vmatprep.subr.bf16.mxu1 %v8445_v54  ;;  %8020 = vmatprep.subr.bf16.mxu0 %v8445_v54  ;;  %v6353_v18 = vld [vmem:[%s10864_s8 + $0x1c0] sm:$0xff]  ;;  %v6356_v30 = vld [vmem:[%s10864_s8 + $0x1d8] sm:$0xff] }
 0x947   :  { %v9044_v28 = vadd.f32 %v6246_v4, %v1541_v24  ;;  %v6337_v4 = vld [vmem:[%s10864_s8 + $0x188] sm:$0xff] }
 0x948   :  { %v6354_v24 = vld [vmem:[%s10864_s8 + $0x1c8] sm:$0xff] }
 0x949   :  { %v9051_v31 = vpack.c.bf16 %v9044_v28, %v9042_v25 }
 0x94b   :  { %8004 = vmatpush3.bf16.msra.mxu1 %v9051_v31  ;;  %8022 = vmatpush3.bf16.msra.mxu0 %v9051_v31 }
 0x94c   :  { %7220 = vmatprep.subr.mxu1 %v8447_v62  ;;  %7290 = vmatprep.subr.mxu0 %v8447_v62 }
 0x94f   :  { %7221 = vmatpush3.msk.msra.mxu1 %vm732_vm3, %v9057_v32  ;;  %7291 = vmatpush3.msk.msra.mxu0 %vm732_vm3, %v9057_v32 }
 0x950   :  { %7223 = vmatmul.mubr.msk.f32.vlgmr.msra.gmra.mrb[40].mxu1 %vm626_vm4, %v1569_v33  ;;  %8005 = vmatprep.subr.bf16.mxu1 %v8445_v54  ;;  %v6358_v33 = vld [vmem:[%s10864_s8 + $0x1e8] sm:$0xff] }
 0x951   :  { %7293 = vmatmul.mubr.msk.f32.vlgmr.msra.gmra.mrb[52].mxu0 %vm626_vm4, %v6273_v26  ;;  %8032 = vmatprep.subr.bf16.mxu0 %v8445_v54  ;;  %v6359_v26 = vld [vmem:[%s10864_s8 + $0x1f0] sm:$0x1] }
 0x952   :  { %8007 = vmatpush3.bf16.msra.mxu1 %v9026_v13  ;;  %8034 = vmatpush3.bf16.msra.mxu0 %v9026_v13 }
 0x953   :  { %7225 = vmatprep.mubr.msk.f32.mxu1 %vm8446_vm6, %v8447_v62  ;;  %7295 = vmatprep.mubr.msk.f32.mxu0 %vm8446_vm6, %v8447_v62 }
 0x954   :  { %7226 = vmatmul.mubr.msk.f32.gmra.mrb[42].mxu1 %vm626_vm4, %v1570_v34  ;;  %8008 = vmatprep.subr.bf16.mxu1 %v8445_v54  ;;  %v9452_v34 = vld [vmem:[%s10865_s9] ss:$0 sm:$0xff] }
 0x955   :  { %7296 = vmatmul.mubr.msk.f32.gmra.mrb[54].mxu0 %vm626_vm4, %v6274_v35  ;;  %8035 = vmatprep.subr.bf16.mxu0 %v8445_v54  ;;  %v9457_v35 = vld [vmem:[%s10865_s9 + $0x4] ss:$0 sm:$0xff] }
 0x956   :  { %8010 = vmatpush3.bf16.msra.mxu1 %v9022_v12  ;;  %8037 = vmatpush3.bf16.msra.mxu0 %v9022_v12 }
 0x957   :  { %7228 = vmatprep.mubr.msk.f32.mxu1 %vm8446_vm6, %v8447_v62  ;;  %7298 = vmatprep.mubr.msk.f32.mxu0 %vm8446_vm6, %v8447_v62 }
 0x958   :  { %7229 = vmatmul.mubr.msk.f32.gmra.mrb[44].mxu1 %vm626_vm4, %v1571_v38  ;;  %8011 = vmatprep.subr.bf16.mxu1 %v8445_v54 }
 0x959   :  { %7299 = vmatmul.mubr.msk.f32.gmra.mrb[56].mxu0 %vm626_vm4, %v6275_v39  ;;  %8038 = vmatprep.subr.bf16.mxu0 %v8445_v54  ;;  %v1562_v39 = vmul.f32 %v9457_v35, %v9016_v11  ;;  %v1564_v11 = vmul.f32 %v9457_v35, %v9012_v10  ;;  %v1566_v10 = vmul.f32 %v9457_v35, %v9042_v25  ;;  %v6272_v25 = vld [vmem:[%s10865_s9 + $0x1] ss:$0 sm:$0xff] }
 0x95a   :  { %8013 = vmatpush3.bf16.msra.mxu1 %v9051_v31  ;;  %8040 = vmatpush3.bf16.msra.mxu0 %v9051_v31 }
 0x95b   :  { %7231 = vmatprep.mubr.msk.f32.mxu1 %vm8446_vm6, %v8447_v62  ;;  %7301 = vmatprep.mubr.msk.f32.mxu0 %vm8446_vm6, %v8447_v62 }
 0x95c   :  { %7232 = vmatmul.mubr.msk.f32.gmra.mrb[46].mxu1 %vm626_vm4, %v1572_v36  ;;  %7255 = vmatprep.subr.mxu1 %v8447_v62 }
 0x95d   :  { %7302 = vmatmul.mubr.msk.f32.gmra.mrb[58].mxu0 %vm626_vm4, %v6276_v27  ;;  %7360 = vmatprep.subr.mxu0 %v8447_v62 }
 0x95e   :  { %7256 = vmatpush3.msk.msra.mxu1 %vm732_vm3, %v9057_v32  ;;  %7361 = vmatpush3.msk.msra.mxu0 %vm732_vm3, %v9057_v32 }
 0x95f   :  { %7234 = vmatprep.mubr.msk.f32.mxu1 %vm8446_vm6, %v8447_v62  ;;  %7304 = vmatprep.mubr.msk.f32.mxu0 %vm8446_vm6, %v8447_v62 }
 0x960   :  { %7235 = vmatmul.mubr.msk.f32.gmra.mrb[48].mxu1 %vm626_vm4, %v1573_v41  ;;  %8023 = vmatprep.subr.bf16.mxu1 %v8445_v54 }
 0x961   :  { %7305 = vmatmul.mubr.msk.f32.gmra.mrb[60].mxu0 %vm626_vm4, %v6277_v42  ;;  %7237 = vmatprep.mubr.msk.f32.mxu1 %vm8446_vm6, %v8447_v62 }
 0x962   :  { %7307 = vmatprep.mubr.msk.f32.mxu0 %vm8446_vm6, %v8447_v62  ;;  %8050 = vmatprep.subr.bf16.mxu0 %v8445_v54 }
 0x964   :  { %7238 = vmatmul.mubr.msk.f32.gmra.mrb[50].mxu1 %vm626_vm4, %v1574_v43 }
 0x965   :  { %7308 = vmatmul.mubr.msk.f32.gmra.mrb[62].mxu0 %vm626_vm4, %v6278_v37  ;;  %7240 = vmatprep.mubr.msk.f32.mxu1 %vm8446_vm6, %v8447_v62 }
 0x966   :  { %7310 = vmatprep.mubr.msk.f32.mxu0 %vm8446_vm6, %v8447_v62 }
 0x968   :  { %7241 = vmatmul.mubr.msk.f32.gmra.mrb[52].mxu1 %vm626_vm4, %v1575_v46  ;;  %v1563_v46 = vmul.f32 %v9457_v35, %v9018_v5  ;;  %v1565_v5 = vmul.f32 %v9457_v35, %v9014_v2  ;;  %v1567_v2 = vmul.f32 %v9457_v35, %v9044_v28 }
 0x969   :  { %7311 = vmatmul.mubr.msk.f32.gmra.mrb[64].mxu0 %vm626_vm4, %v6279_v48  ;;  %7257 = vmatprep.mubr.msk.f32.mxu1 %vm8446_vm6, %v8447_v62 }
 0x96a   :  { %7362 = vmatprep.mubr.msk.f32.mxu0 %vm8446_vm6, %v8447_v62 }
 0x96c   :  { %7258 = vmatmul.mubr.msk.f32.vlgmr.msra.gmra.mrb[54].mxu1 %vm626_vm4, %v6257_v49 }
 0x96d   :  { %8025 = vmatpush3.bf16.msra.mxu1 %v9026_v13  ;;  %7363 = vmatmul.mubr.msk.f32.vlgmr.msra.gmra.mrb[66].mxu0 %vm626_vm4, %v6305_v50 }
 0x96e   :  { %8052 = vmatpush3.bf16.msra.mxu0 %v9026_v13  ;;  %7260 = vmatprep.mubr.msk.f32.mxu1 %vm8446_vm6, %v8447_v62 }
 0x96f   :  { %8026 = vmatprep.subr.bf16.mxu1 %v8445_v54  ;;  %8053 = vmatprep.subr.bf16.mxu0 %v8445_v54 }
 0x970   :  { %7261 = vmatmul.mubr.msk.f32.gmra.mrb[56].mxu1 %vm626_vm4, %v6258_v51  ;;  %7365 = vmatprep.mubr.msk.f32.mxu0 %vm8446_vm6, %v8447_v62 }
 0x971   :  { %8028 = vmatpush3.bf16.msra.mxu1 %v9022_v12  ;;  %7263 = vmatprep.mubr.msk.f32.mxu1 %vm8446_vm6, %v8447_v62 }
 0x972   :  { %8055 = vmatpush3.bf16.msra.mxu0 %v9022_v12  ;;  %8029 = vmatprep.subr.bf16.mxu1 %v8445_v54 }
 0x973   :  { %8056 = vmatprep.subr.bf16.mxu0 %v8445_v54  ;;  %7366 = vmatmul.mubr.msk.f32.gmra.mrb[68].mxu0 %vm626_vm4, %v6306_v52 }
 0x974   :  { %7264 = vmatmul.mubr.msk.f32.gmra.mrb[58].mxu1 %vm626_vm4, %v6259_v53  ;;  %7368 = vmatprep.mubr.msk.f32.mxu0 %vm8446_vm6, %v8447_v62 }
 0x975   :  { %8031 = vmatpush3.bf16.msra.mxu1 %v9051_v31  ;;  %7266 = vmatprep.mubr.msk.f32.mxu1 %vm8446_vm6, %v8447_v62 }
 0x976   :  { %8058 = vmatpush3.bf16.msra.mxu0 %v9051_v31  ;;  %7325 = vmatprep.subr.mxu1 %v8447_v62 }
 0x977   :  { %7430 = vmatprep.subr.mxu0 %v8447_v62  ;;  %7369 = vmatmul.mubr.msk.f32.gmra.mrb[70].mxu0 %vm626_vm4, %v6307_v55 }
 0x978   :  { %7267 = vmatmul.mubr.msk.f32.gmra.mrb[60].mxu1 %vm626_vm4, %v6260_v57  ;;  %7371 = vmatprep.mubr.msk.f32.mxu0 %vm8446_vm6, %v8447_v62 }
 0x979   :  { %7326 = vmatpush3.msk.msra.mxu1 %vm732_vm3, %v9057_v32  ;;  %7269 = vmatprep.mubr.msk.f32.mxu1 %vm8446_vm6, %v8447_v62 }
 0x97a   :  { %7431 = vmatpush3.msk.msra.mxu0 %vm732_vm3, %v9057_v32  ;;  %8041 = vmatprep.subr.bf16.mxu1 %v8445_v54 }
 0x97b   :  { %7372 = vmatmul.mubr.msk.f32.gmra.mrb[72].mxu0 %vm626_vm4, %v6308_v61 }
 0x97c   :  { %7270 = vmatmul.mubr.msk.f32.gmra.mrb[62].mxu1 %vm626_vm4, %v6261_v63  ;;  %7374 = vmatprep.mubr.msk.f32.mxu0 %vm8446_vm6, %v8447_v62 }
 0x97d   :  { %7272 = vmatprep.mubr.msk.f32.mxu1 %vm8446_vm6, %v8447_v62 }
 0x97f   :  { %7375 = vmatmul.mubr.msk.f32.gmra.mrb[74].mxu0 %vm626_vm4, %v6309_v0 }
 0x980   :  { %7273 = vmatmul.mubr.msk.f32.gmra.mrb[64].mxu1 %vm626_vm4, %v6262_v1  ;;  %7377 = vmatprep.mubr.msk.f32.mxu0 %vm8446_vm6, %v8447_v62 }
 0x981   :  { %7275 = vmatprep.mubr.msk.f32.mxu1 %vm8446_vm6, %v8447_v62 }
 0x983   :  { %7378 = vmatmul.mubr.msk.f32.gmra.mrb[76].mxu0 %vm626_vm4, %v6310_v19 }
 0x984   :  { %7276 = vmatmul.mubr.msk.f32.gmra.mrb[66].mxu1 %vm626_vm4, %v6263_v40  ;;  %7380 = vmatprep.mubr.msk.f32.mxu0 %vm8446_vm6, %v8447_v62 }
 0x985   :  { %7327 = vmatprep.mubr.msk.f32.mxu1 %vm8446_vm6, %v8447_v62 }
 0x987   :  { %7381 = vmatmul.mubr.msk.f32.gmra.mrb[78].mxu0 %vm626_vm4, %v6311_v44 }
 0x988   :  { %7328 = vmatmul.mubr.msk.f32.vlgmr.msra.gmra.mrb[68].mxu1 %vm626_vm4, %v6289_v45  ;;  %7432 = vmatprep.mubr.msk.f32.mxu0 %vm8446_vm6, %v8447_v62 }
 0x989   :  { %8043 = vmatpush3.bf16.msra.mxu1 %v9026_v13  ;;  %7330 = vmatprep.mubr.msk.f32.mxu1 %vm8446_vm6, %v8447_v62 }
 0x98a   :  { %8044 = vmatprep.subr.bf16.mxu1 %v8445_v54 }
 0x98b   :  { %7433 = vmatmul.mubr.msk.f32.vlgmr.msra.gmra.mrb[80].mxu0 %vm626_vm4, %v6337_v4 }
 0x98c   :  { %7331 = vmatmul.mubr.msk.f32.gmra.mrb[70].mxu1 %vm626_vm4, %v6290_v56  ;;  %7435 = vmatprep.mubr.msk.f32.mxu0 %vm8446_vm6, %v8447_v62 }
 0x98d   :  { %8046 = vmatpush3.bf16.msra.mxu1 %v9022_v12  ;;  %7333 = vmatprep.mubr.msk.f32.mxu1 %vm8446_vm6, %v8447_v62 }
 0x98e   :  { %8047 = vmatprep.subr.bf16.mxu1 %v8445_v54 }
 0x98f   :  { %7436 = vmatmul.mubr.msk.f32.gmra.mrb[82].mxu0 %vm626_vm4, %v6338_v47 }
 0x990   :  { %7334 = vmatmul.mubr.msk.f32.gmra.mrb[72].mxu1 %vm626_vm4, %v6291_v58  ;;  %7438 = vmatprep.mubr.msk.f32.mxu0 %vm8446_vm6, %v8447_v62 }
 0x991   :  { %8049 = vmatpush3.bf16.msra.mxu1 %v9051_v31  ;;  %7336 = vmatprep.mubr.msk.f32.mxu1 %vm8446_vm6, %v8447_v62 }
 0x992   :  { %7395 = vmatprep.subr.mxu1 %v8447_v62 }
 0x993   :  { %7439 = vmatmul.mubr.msk.f32.gmra.mrb[84].mxu0 %vm626_vm4, %v6339_v59 }
 0x994   :  { %7337 = vmatmul.mubr.msk.f32.gmra.mrb[74].mxu1 %vm626_vm4, %v6292_v60  ;;  %7441 = vmatprep.mubr.msk.f32.mxu0 %vm8446_vm6, %v8447_v62 }
 0x995   :  { %7396 = vmatpush3.msk.msra.mxu1 %vm732_vm3, %v9057_v32  ;;  %7339 = vmatprep.mubr.msk.f32.mxu1 %vm8446_vm6, %v8447_v62 }
 0x996   :  { %8059 = vmatprep.subr.bf16.mxu1 %v8445_v54 }
 0x997   :  { %7442 = vmatmul.mubr.msk.f32.gmra.mrb[86].mxu0 %vm626_vm4, %v6340_v3 }
 0x998   :  { %7340 = vmatmul.mubr.msk.f32.gmra.mrb[76].mxu1 %vm626_vm4, %v6293_v7  ;;  %7444 = vmatprep.mubr.msk.f32.mxu0 %vm8446_vm6, %v8447_v62 }
 0x999   :  { %7342 = vmatprep.mubr.msk.f32.mxu1 %vm8446_vm6, %v8447_v62 }
 0x99b   :  { %7445 = vmatmul.mubr.msk.f32.gmra.mrb[88].mxu0 %vm626_vm4, %v6341_v8 }
 0x99c   :  { %7343 = vmatmul.mubr.msk.f32.gmra.mrb[78].mxu1 %vm626_vm4, %v6294_v6  ;;  %7447 = vmatprep.mubr.msk.f32.mxu0 %vm8446_vm6, %v8447_v62 }
 0x99d   :  { %7345 = vmatprep.mubr.msk.f32.mxu1 %vm8446_vm6, %v8447_v62 }
 0x99f   :  { %7448 = vmatmul.mubr.msk.f32.gmra.mrb[90].mxu0 %vm626_vm4, %v6342_v14 }
 0x9a0   :  { %7346 = vmatmul.mubr.msk.f32.gmra.mrb[80].mxu1 %vm626_vm4, %v6295_v15  ;;  %7450 = vmatprep.mubr.msk.f32.mxu0 %vm8446_vm6, %v8447_v62 }
 0x9a1   :  { %7397 = vmatprep.mubr.msk.f32.mxu1 %vm8446_vm6, %v8447_v62 }
 0x9a3   :  { %7451 = vmatmul.mubr.msk.f32.gmra.mrb[92].mxu0 %vm626_vm4, %v6343_v9 }
 0x9a4   :  { %7398 = vmatmul.mubr.msk.f32.vlgmr.msra.gmra.mrb[82].mxu1 %vm626_vm4, %v6321_v16 }
 0x9a5   :  { %8061 = vmatpush3.bf16.msra.mxu1 %v9026_v13  ;;  %7400 = vmatprep.mubr.msk.f32.mxu1 %vm8446_vm6, %v8447_v62  ;;  %v6323_v13 = vld [vmem:[%s10864_s8 + $0x160] sm:$0xff] }
 0x9a6   :  { %8062 = vmatprep.subr.bf16.mxu1 %v8445_v54 }
 0x9a8   :  { %7401 = vmatmul.mubr.msk.f32.gmra.mrb[84].mxu1 %vm626_vm4, %v6322_v17 }
 0x9a9   :  { %8064 = vmatpush3.bf16.msra.mxu1 %v9022_v12  ;;  %7403 = vmatprep.mubr.msk.f32.mxu1 %vm8446_vm6, %v8447_v62  ;;  %v6324_v12 = vld [vmem:[%s10864_s8 + $0x168] sm:$0xff] }
 0x9aa   :  { %8065 = vmatprep.subr.bf16.mxu1 %v8445_v54 }
 0x9ac   :  { %7404 = vmatmul.mubr.msk.f32.gmra.mrb[86].mxu1 %vm626_vm4, %v6323_v13 }
 0x9ad   :  { %8067 = vmatpush3.bf16.msra.mxu1 %v9051_v31  ;;  %7406 = vmatprep.mubr.msk.f32.mxu1 %vm8446_vm6, %v8447_v62  ;;  %v6357_v31 = vld [vmem:[%s10864_s8 + $0x1e0] sm:$0xff] }
 0x9ae   :  { %7465 = vmatprep.subr.mxu1 %v8447_v62 }
 0x9b0   :  { %7407 = vmatmul.mubr.msk.f32.gmra.mrb[88].mxu1 %vm626_vm4, %v6324_v12  ;;  %v6288_v12 = vld [vmem:[%s10865_s9 + $0x2] ss:$0 sm:$0xff] }
 0x9b1   :  { %7466 = vmatpush3.msk.msra.mxu1 %vm732_vm3, %v9057_v32  ;;  %7409 = vmatprep.mubr.msk.f32.mxu1 %vm8446_vm6, %v8447_v62 }
 0x9b4   :  { %7410 = vmatmul.mubr.msk.f32.gmra.mrb[90].mxu1 %vm626_vm4, %v6325_v20 }
 0x9b5   :  { %7412 = vmatprep.mubr.msk.f32.mxu1 %vm8446_vm6, %v8447_v62 }
 0x9b8   :  { %7413 = vmatmul.mubr.msk.f32.gmra.mrb[92].mxu1 %vm626_vm4, %v6326_v22 }
 0x9b9   :  { %7415 = vmatprep.mubr.msk.f32.mxu1 %vm8446_vm6, %v8447_v62 }
 0x9bc   :  { %7416 = vmatmul.mubr.msk.f32.gmra.mrb[94].mxu1 %vm626_vm4, %v6327_v23 }
 0x9bd   :  { %7467 = vmatprep.mubr.msk.f32.mxu1 %vm8446_vm6, %v8447_v62 }
 0x9c0   :  { %7468 = vmatmul.mubr.msk.f32.vlgmr.msra.gmra.mrb[96].mxu1 %vm626_vm4, %v6353_v18 }
 0x9c1   :  { %7470 = vmatprep.mubr.msk.f32.mxu1 %vm8446_vm6, %v8447_v62 }
 0x9c4   :  { %7471 = vmatmul.mubr.msk.f32.gmra.mrb[98].mxu1 %vm626_vm4, %v6354_v24 }
 0x9c5   :  { %7473 = vmatprep.mubr.msk.f32.mxu1 %vm8446_vm6, %v8447_v62 }
 0x9c8   :  { %7474 = vmatmul.mubr.msk.f32.gmra.mrb[100].mxu1 %vm626_vm4, %v6355_v29 }
 0x9c9   :  { %7476 = vmatprep.mubr.msk.f32.mxu1 %vm8446_vm6, %v8447_v62 }
 0x9cc   :  { %7477 = vmatmul.mubr.msk.f32.gmra.mrb[102].mxu1 %vm626_vm4, %v6356_v30 }
 0x9cd   :  { %7479 = vmatprep.mubr.msk.f32.mxu1 %vm8446_vm6, %v8447_v62 }
 0x9d0   :  { %7480 = vmatmul.mubr.msk.f32.gmra.mrb[104].mxu1 %vm626_vm4, %v6357_v31 }
 0x9d1   :  { %7482 = vmatprep.mubr.msk.f32.mxu1 %vm8446_vm6, %v8447_v62 }
 0x9d4   :  { %7483 = vmatmul.mubr.msk.f32.gmra.mrb[106].mxu1 %vm626_vm4, %v6358_v33 }
 0x9d5   :  { %7485 = vmatprep.mubr.msk.f32.mxu1 %vm8446_vm6, %v8447_v62 }
 0x9d8   :  { %7486 = vmatmul.mubr.msk.f32.gmra.mrb[108].mxu1 %vm626_vm4, %v6359_v26 }
 0xa23   :  { %v1666_v38 = vpop.f32.mrb[40].mxu1 }
 0xa24   :  { %v1706_v36 = vmul.f32 %v9452_v34, %v1666_v38  ;;  %v7224_v27 = vpop.f32.mrb[41].mxu1  ;;  %v1964_v41 = vpop.f32.mrb[52].mxu0 }
 0xa25   :  { %v7294_v42 = vpop.f32.mrb[53].mxu0  ;;  %v2004_v18 = vmul.f32 %v6288_v12, %v1964_v41 }
 0xa26   :  { %v1713_v43 = vadd.f32 %v1706_v36, %v1562_v39 }
 0xa27   :  { %v1671_v37 = vpop.f32.mrb[42].mxu1 }
 0xa28   :  { %v1707_v48 = vmul.f32 %v9452_v34, %v1671_v37  ;;  %v7227_v49 = vpop.f32.mrb[43].mxu1  ;;  %v1969_v50 = vpop.f32.mrb[54].mxu0 }
 0xa29   :  { %v7297_v51 = vpop.f32.mrb[55].mxu0  ;;  %v2005_v39 = vmul.f32 %v6288_v12, %v1969_v50 }
 0xa2a   :  { %v1714_v52 = vadd.f32 %v1707_v48, %v1563_v46 }
 0xa2b   :  { %v1676_v53 = vpop.f32.mrb[44].mxu1 }
 0xa2c   :  { %v1708_v55 = vmul.f32 %v9452_v34, %v1676_v53  ;;  %v7230_v57 = vpop.f32.mrb[45].mxu1  ;;  %v1974_v61 = vpop.f32.mrb[56].mxu0 }
 0xa2d   :  { %v7300_v63 = vpop.f32.mrb[57].mxu0  ;;  %v2006_v51 = vmul.f32 %v6288_v12, %v1974_v61 }
 0xa2e   :  { %v1715_v0 = vadd.f32 %v1708_v55, %v1564_v11 }
 0xa2f   :  { %v1681_v1 = vpop.f32.mrb[46].mxu1 }
 0xa30   :  { %v1709_v19 = vmul.f32 %v9452_v34, %v1681_v1  ;;  %v7233_v40 = vpop.f32.mrb[47].mxu1  ;;  %v1979_v44 = vpop.f32.mrb[58].mxu0 }
 0xa31   :  { %v7303_v45 = vpop.f32.mrb[59].mxu0  ;;  %v2007_v1 = vmul.f32 %v6288_v12, %v1979_v44  ;;  %v1568_v44 = vmul.f32 %v9457_v35, %v9057_v32 }
 0xa32   :  { %v1716_v4 = vadd.f32 %v1709_v19, %v1565_v5 }
 0xa33   :  { %v1686_v56 = vpop.f32.mrb[48].mxu1 }
 0xa34   :  { %v1710_v47 = vmul.f32 %v9452_v34, %v1686_v56  ;;  %v7236_v58 = vpop.f32.mrb[49].mxu1  ;;  %v1984_v59 = vpop.f32.mrb[60].mxu0 }
 0xa35   :  { %v7306_v60 = vpop.f32.mrb[61].mxu0 }
 0xa36   :  { %v1717_v3 = vadd.f32 %v1710_v47, %v1566_v10  ;;  %v2008_v10 = vmul.f32 %v6288_v12, %v1984_v59 }
 0xa37   :  { %v1691_v7 = vpop.f32.mrb[50].mxu1 }
 0xa38   :  { %v1711_v8 = vmul.f32 %v9452_v34, %v1691_v7  ;;  %v7239_v6 = vpop.f32.mrb[51].mxu1  ;;  %v1989_v14 = vpop.f32.mrb[62].mxu0 }
 0xa39   :  { %v7309_v15 = vpop.f32.mrb[63].mxu0  ;;  %v2009_v6 = vmul.f32 %v6288_v12, %v1989_v14  ;;  %v6320_v14 = vld [vmem:[%s10865_s9 + $0x5] ss:$0 sm:$0xff] }
 0xa3a   :  { %v1718_v9 = vadd.f32 %v1711_v8, %v1567_v2 }
 0xa3b   :  { %v1696_v16 = vpop.f32.mrb[52].mxu1 }
 0xa3c   :  { %v7242_v17 = vpop.f32.mrb[53].mxu1  ;;  %v1994_v13 = vpop.f32.mrb[64].mxu0 }
 0xa3d   :  { %v7312_v20 = vpop.f32.mrb[65].mxu0 }
 0xa3f   :  { %v1815_v22 = vpop.f32.mrb[54].mxu1 }
 0xa40   :  { %v1855_v28 = vmul.f32 %v6272_v25, %v1815_v22  ;;  %v7259_v23 = vpop.f32.mrb[55].mxu1  ;;  %v2262_v24 = vpop.f32.mrb[66].mxu0 }
 0xa41   :  { %v7364_v29 = vpop.f32.mrb[67].mxu0  ;;  %v2010_v23 = vmul.f32 %v6288_v12, %v1994_v13 }
 0xa42   :  { %v1862_v30 = vadd.f32 %v1855_v28, %v1713_v43 }
 0xa43   :  { %v1820_v31 = vpop.f32.mrb[56].mxu1 }
 0xa44   :  { %v2011_v33 = vadd.f32 %v2004_v18, %v1862_v30  ;;  %v1856_v26 = vmul.f32 %v6272_v25, %v1820_v31  ;;  %v7262_v38 = vpop.f32.mrb[57].mxu1  ;;  %v2302_v31 = vmul.f32 %v6320_v14, %v2262_v24 }
 0xa46   :  { %v1863_v36 = vadd.f32 %v1856_v26, %v1714_v52  ;;  %v2267_v27 = vpop.f32.mrb[68].mxu0 }
 0xa47   :  { %v1825_v42 = vpop.f32.mrb[58].mxu1  ;;  %v7367_v37 = vpop.f32.mrb[69].mxu0 }
 0xa48   :  { %v2012_v46 = vadd.f32 %v2005_v39, %v1863_v36  ;;  %v1857_v48 = vmul.f32 %v6272_v25, %v1825_v42  ;;  %v7265_v49 = vpop.f32.mrb[59].mxu1  ;;  %v2303_v42 = vmul.f32 %v6320_v14, %v2267_v27 }
 0xa4a   :  { %v1864_v53 = vadd.f32 %v1857_v48, %v1715_v0  ;;  %v2272_v11 = vpop.f32.mrb[70].mxu0  ;;  %v1712_v0 = vmul.f32 %v9452_v34, %v1696_v16  ;;  %v6304_v34 = vld [vmem:[%s10865_s9 + $0x3] ss:$0 sm:$0xff] }
 0xa4b   :  { %v1830_v55 = vpop.f32.mrb[60].mxu1  ;;  %v7370_v41 = vpop.f32.mrb[71].mxu0 }
 0xa4c   :  { %v2013_v57 = vadd.f32 %v2006_v51, %v1864_v53  ;;  %v1858_v63 = vmul.f32 %v6272_v25, %v1830_v55  ;;  %v7268_v43 = vpop.f32.mrb[61].mxu1  ;;  %v1719_v22 = vadd.f32 %v1712_v0, %v1568_v44 }
 0xa4e   :  { %v1865_v5 = vadd.f32 %v1858_v63, %v1716_v4  ;;  %v2277_v19 = vpop.f32.mrb[72].mxu0  ;;  %v2304_v63 = vmul.f32 %v6320_v14, %v2272_v11 }
 0xa4f   :  { %v1835_v40 = vpop.f32.mrb[62].mxu1  ;;  %v7373_v50 = vpop.f32.mrb[73].mxu0 }
 0xa50   :  { %v2014_v52 = vadd.f32 %v2007_v1, %v1865_v5  ;;  %v1859_v45 = vmul.f32 %v6272_v25, %v1835_v40  ;;  %v7271_v56 = vpop.f32.mrb[63].mxu1 }
 0xa52   :  { %v1866_v47 = vadd.f32 %v1859_v45, %v1717_v3  ;;  %v2282_v58 = vpop.f32.mrb[74].mxu0  ;;  %v2305_v45 = vmul.f32 %v6320_v14, %v2277_v19 }
 0xa53   :  { %v1840_v60 = vpop.f32.mrb[64].mxu1  ;;  %v7376_v61 = vpop.f32.mrb[75].mxu0  ;;  %v2306_v0 = vmul.f32 %v6320_v14, %v2282_v58  ;;  %v6336_v58 = vld [vmem:[%s10865_s9 + $0x6] ss:$0 sm:$0xff] }
 0xa54   :  { %v2015_v7 = vadd.f32 %v2008_v10, %v1866_v47  ;;  %v1860_v2 = vmul.f32 %v6272_v25, %v1840_v60  ;;  %v7274_v8 = vpop.f32.mrb[65].mxu1 }
 0xa56   :  { %v1867_v4 = vadd.f32 %v1860_v2, %v1718_v9  ;;  %v2287_v15 = vpop.f32.mrb[76].mxu0 }
 0xa57   :  { %v1845_v17 = vpop.f32.mrb[66].mxu1  ;;  %v7379_v20 = vpop.f32.mrb[77].mxu0 }
 0xa58   :  { %v2016_v28 = vadd.f32 %v2009_v6, %v1867_v4  ;;  %v1861_v59 = vmul.f32 %v6272_v25, %v1845_v17  ;;  %v7277_v3 = vpop.f32.mrb[67].mxu1  ;;  %v2307_v17 = vmul.f32 %v6320_v14, %v2287_v15 }
 0xa5a   :  { %v1868_v16 = vadd.f32 %v1861_v59, %v1719_v22  ;;  %v2292_v18 = vpop.f32.mrb[78].mxu0 }
 0xa5b   :  { %v2113_v32 = vpop.f32.mrb[68].mxu1  ;;  %v7382_v35 = vpop.f32.mrb[79].mxu0 }
 0xa5c   :  { %v2017_v9 = vadd.f32 %v2010_v23, %v1868_v16  ;;  %v2153_v29 = vmul.f32 %v6304_v34, %v2113_v32  ;;  %v7329_v30 = vpop.f32.mrb[69].mxu1  ;;  %v2308_v16 = vmul.f32 %v6320_v14, %v2292_v18 }
 0xa5e   :  { %v2160_v26 = vadd.f32 %v2153_v29, %v2011_v33  ;;  %v2560_v25 = vpop.f32.mrb[80].mxu0 }
 0xa5f   :  { %v2118_v38 = vpop.f32.mrb[70].mxu1  ;;  %v7434_v13 = vpop.f32.mrb[81].mxu0 }
 0xa60   :  { %v2309_v12 = vadd.f32 %v2302_v31, %v2160_v26  ;;  %v2154_v39 = vmul.f32 %v6304_v34, %v2118_v38  ;;  %v7332_v36 = vpop.f32.mrb[71].mxu1 }
 0xa62   :  { %v2161_v37 = vadd.f32 %v2154_v39, %v2012_v46  ;;  %v2565_v48 = vpop.f32.mrb[82].mxu0 }
 0xa63   :  { %v2123_v49 = vpop.f32.mrb[72].mxu1  ;;  %v7437_v51 = vpop.f32.mrb[83].mxu0 }
 0xa64   :  { %v2310_v53 = vadd.f32 %v2303_v42, %v2161_v37  ;;  %v2155_v55 = vmul.f32 %v6304_v34, %v2123_v49  ;;  %v7335_v41 = vpop.f32.mrb[73].mxu1 }
 0xa66   :  { %v2162_v43 = vadd.f32 %v2155_v55, %v2013_v57  ;;  %v2570_v1 = vpop.f32.mrb[84].mxu0 }
 0xa67   :  { %v2128_v5 = vpop.f32.mrb[74].mxu1  ;;  %v7440_v24 = vpop.f32.mrb[85].mxu0 }
 0xa68   :  { %v2311_v33 = vadd.f32 %v2304_v63, %v2162_v43  ;;  %v2156_v40 = vmul.f32 %v6304_v34, %v2128_v5  ;;  %v7338_v50 = vpop.f32.mrb[75].mxu1 }
 0xa6a   :  { %v2163_v56 = vadd.f32 %v2156_v40, %v2014_v52  ;;  %v2575_v10 = vpop.f32.mrb[86].mxu0 }
 0xa6b   :  { %v2133_v47 = vpop.f32.mrb[76].mxu1  ;;  %v7443_v27 = vpop.f32.mrb[87].mxu0 }
 0xa6c   :  { %v2312_v46 = vadd.f32 %v2305_v45, %v2163_v56  ;;  %v2157_v60 = vmul.f32 %v6304_v34, %v2133_v47  ;;  %v7341_v61 = vpop.f32.mrb[77].mxu1 }
 0xa6e   :  { %v2164_v2 = vadd.f32 %v2157_v60, %v2015_v7  ;;  %v2580_v8 = vpop.f32.mrb[88].mxu0  ;;  %v6352_v7 = vld [vmem:[%s10865_s9 + $0x7] ss:$0 sm:$0xff] }
 0xa6f   :  { %v2138_v6 = vpop.f32.mrb[78].mxu1  ;;  %v7446_v11 = vpop.f32.mrb[89].mxu0  ;;  %v2600_v26 = vmul.f32 %v6352_v7, %v2560_v25  ;;  %v2601_v39 = vmul.f32 %v6352_v7, %v2565_v48  ;;  %v2602_v55 = vmul.f32 %v6352_v7, %v2570_v1  ;;  %v2603_v24 = vmul.f32 %v6352_v7, %v2575_v10  ;;  %v6368_v10 = vld [vmem:[%s10865_s9 + $0x8] ss:$0 sm:$0xff] }
 0xa70   :  { %v2313_v57 = vadd.f32 %v2306_v0, %v2164_v2  ;;  %v2158_v44 = vmul.f32 %v6304_v34, %v2138_v6  ;;  %v7344_v4 = vpop.f32.mrb[79].mxu1  ;;  %v2604_v56 = vmul.f32 %v6352_v7, %v2580_v8 }
 0xa72   :  { %v2165_v20 = vadd.f32 %v2158_v44, %v2016_v28  ;;  %v2585_v22 = vpop.f32.mrb[90].mxu0 }
 0xa73   :  { %v2143_v59 = vpop.f32.mrb[80].mxu1  ;;  %v7449_v19 = vpop.f32.mrb[91].mxu0  ;;  %v2605_v61 = vmul.f32 %v6352_v7, %v2585_v22 }
 0xa74   :  { %v2314_v52 = vadd.f32 %v2307_v17, %v2165_v20  ;;  %v2159_v3 = vmul.f32 %v6304_v34, %v2143_v59  ;;  %v7347_v23 = vpop.f32.mrb[81].mxu1  ;;  %v6369_v17 = vld [vmem:[%s10866_s10] ss:$0 sm:$0xff] }
 0xa75   :  { %v6370_v59 = vld [vmem:[%s10867_s11] ss:$0 sm:$0xff] }
 0xa76   :  { %v2166_v32 = vadd.f32 %v2159_v3, %v2017_v9  ;;  %v2590_v35 = vpop.f32.mrb[92].mxu0 }
 0xa77   :  { %v2411_v29 = vpop.f32.mrb[82].mxu1  ;;  %v7452_v15 = vpop.f32.mrb[93].mxu0  ;;  %v2606_v11 = vmul.f32 %v6352_v7, %v2590_v35 }
 0xa78   :  { %v2315_v28 = vadd.f32 %v2308_v16, %v2166_v32  ;;  %v2451_v30 = vmul.f32 %v6336_v58, %v2411_v29  ;;  %v7399_v31 = vpop.f32.mrb[83].mxu1 }
 0xa7a   :  { %v2458_v38 = vadd.f32 %v2451_v30, %v2309_v12 }
 0xa7b   :  { %v2416_v34 = vpop.f32.mrb[84].mxu1 }
 0xa7c   :  { %v2607_v13 = vadd.f32 %v2600_v26, %v2458_v38  ;;  %v2452_v14 = vmul.f32 %v6336_v58, %v2416_v34  ;;  %v7402_v18 = vpop.f32.mrb[85].mxu1 }
 0xa7e   :  { %v2459_v36 = vadd.f32 %v2452_v14, %v2310_v53 }
 0xa7f   :  { %v2421_v42 = vpop.f32.mrb[86].mxu1 }
 0xa80   :  { %v2608_v37 = vadd.f32 %v2601_v39, %v2459_v36  ;;  %v2453_v49 = vmul.f32 %v6336_v58, %v2421_v42  ;;  %v7405_v51 = vpop.f32.mrb[87].mxu1 }
 0xa82   :  { %v2460_v9 = vadd.f32 %v2453_v49, %v2311_v33 }
 0xa83   :  { %v2426_v41 = vpop.f32.mrb[88].mxu1 }
 0xa84   :  { %v2609_v63 = vadd.f32 %v2602_v55, %v2460_v9  ;;  %v2454_v43 = vmul.f32 %v6336_v58, %v2426_v41  ;;  %v7408_v5 = vpop.f32.mrb[89].mxu1 }
 0xa86   :  { %v2461_v40 = vadd.f32 %v2454_v43, %v2312_v46 }
 0xa87   :  { %v2431_v25 = vpop.f32.mrb[90].mxu1 }
 0xa88   :  { %v2610_v12 = vadd.f32 %v2603_v24, %v2461_v40  ;;  %v2455_v50 = vmul.f32 %v6336_v58, %v2431_v25  ;;  %v7411_v45 = vpop.f32.mrb[91].mxu1 }
 0xa8a   :  { %v2462_v47 = vadd.f32 %v2455_v50, %v2313_v57 }
 0xa8b   :  { %v2436_v48 = vpop.f32.mrb[92].mxu1 }
 0xa8c   :  { %v2611_v53 = vadd.f32 %v2604_v56, %v2462_v47  ;;  %v2456_v27 = vmul.f32 %v6336_v58, %v2436_v48  ;;  %v7414_v60 = vpop.f32.mrb[93].mxu1  ;;  %v9532_v48 = vld [vmem:[%s10883_s20 + $0x38] sm:$0xff] }
 0xa8d   :  { %v3218_v60 = vsel %vm107_vm0, %v9532_v48, 0.0 }
 0xa8e   :  { %v2463_v0 = vadd.f32 %v2456_v27, %v2314_v52 }
 0xa8f   :  { %v2441_v1 = vpop.f32.mrb[94].mxu1 }
 0xa90   :  { %v2612_v33 = vadd.f32 %v2605_v61, %v2463_v0  ;;  %v2457_v2 = vmul.f32 %v6336_v58, %v2441_v1  ;;  %v7417_v6 = vpop.f32.mrb[95].mxu1  ;;  %v9543_v0 = vld [vmem:[%s10883_s20 + $0x48] sm:$0xff]  ;;  %v9548_v1 = vld [vmem:[%s10883_s20 + $0x40] sm:$0xff] }
 0xa91   :  { %v3221_v6 = vsel %vm107_vm0, %v9548_v1, 0.0 }
 0xa92   :  { %v2464_v46 = vadd.f32 %v2457_v2, %v2315_v28  ;;  %v3224_v2 = vsel %vm107_vm0, %v9543_v0, 0.0 }
 0xa93   :  { %v2709_v44 = vpop.f32.mrb[96].mxu1 }
 0xa94   :  { %v2613_v4 = vadd.f32 %v2606_v11, %v2464_v46  ;;  %v2749_v8 = vmul.f32 %v6368_v10, %v2709_v44  ;;  %v7469_v57 = vpop.f32.mrb[97].mxu1  ;;  %v9559_v11 = vld [vmem:[%s10883_s20 + $0x58] sm:$0xff] }
 0xa95   :  { %v3230_v46 = vsel %vm107_vm0, %v9559_v11, 0.0 }
 0xa96   :  { %v2756_v20 = vadd.f32 %v2749_v8, %v2607_v13  ;;  %v9578_v8 = vld [vmem:[%s10883_s20 + $0x60] sm:$0xff] }
 0xa97   :  { %v2714_v22 = vpop.f32.mrb[98].mxu1 }
 0xa98   :  { %v2769_v19 = vmul.f32 %v6369_v17, %v2756_v20  ;;  %v2750_v52 = vmul.f32 %v6368_v10, %v2714_v22  ;;  %v7472_v3 = vpop.f32.mrb[99].mxu1 }
 0xa9a   :  { %v2757_v23 = vadd.f32 %v2750_v52, %v2608_v37  ;;  %v9507_v16 = vadd.f32 %v6370_v59, %v2769_v19 }
 0xa9b   :  { %v2719_v58 = vpop.f32.mrb[100].mxu1 }
 0xa9c   :  { %v2770_v7 = vmul.f32 %v6369_v17, %v2757_v23  ;;  %v2751_v32 = vmul.f32 %v6368_v10, %v2719_v58  ;;  %v7475_v35 = vpop.f32.mrb[101].mxu1  ;;  %v2789_v29 = vsel %vm107_vm0, %v9507_v16, 0.0 }
 0xa9d   :  { %2790 = vadd.xlane.f32.xlu0 %v2789_v29 }
 0xa9e   :  { %v2758_v15 = vadd.f32 %v2751_v32, %v2609_v63  ;;  %v9511_v28 = vadd.f32 %v6370_v59, %v2770_v7 }
 0xa9f   :  { %v2724_v30 = vpop.f32.mrb[102].mxu1 }
 0xaa0   :  { %v2771_v31 = vmul.f32 %v6369_v17, %v2758_v15  ;;  %v2752_v26 = vmul.f32 %v6368_v10, %v2724_v30  ;;  %v7478_v38 = vpop.f32.mrb[103].mxu1  ;;  %v2792_v34 = vsel %vm107_vm0, %v9511_v28, 0.0 }
 0xaa1   :  { %2793 = vadd.xlane.f32.xlu1 %v2792_v34 }
 0xaa2   :  { %v2759_v13 = vadd.f32 %v2752_v26, %v2610_v12  ;;  %v9515_v14 = vadd.f32 %v6370_v59, %v2771_v31 }
 0xaa3   :  { %v2729_v18 = vpop.f32.mrb[104].mxu1 }
 0xaa4   :  { %v2772_v39 = vmul.f32 %v6369_v17, %v2759_v13  ;;  %v2753_v36 = vmul.f32 %v6368_v10, %v2729_v18  ;;  %v7481_v42 = vpop.f32.mrb[105].mxu1  ;;  %v2795_v37 = vsel %vm107_vm0, %v9515_v14, 0.0 }
 0xaa5   :  { %2796 = vadd.xlane.f32.xlu0 %v2795_v37 }
 0xaa6   :  { %v2760_v49 = vadd.f32 %v2753_v36, %v2611_v53  ;;  %v9519_v51 = vadd.f32 %v6370_v59, %v2772_v39 }
 0xaa7   :  { %v2734_v55 = vpop.f32.mrb[106].mxu1 }
 0xaa8   :  { %v2773_v9 = vmul.f32 %v6369_v17, %v2760_v49  ;;  %v2754_v41 = vmul.f32 %v6368_v10, %v2734_v55  ;;  %v7484_v63 = vpop.f32.mrb[107].mxu1  ;;  %v2798_v43 = vsel %vm107_vm0, %v9519_v51, 0.0 }
 0xaa9   :  { %2799 = vadd.xlane.f32.xlu1 %v2798_v43 }
 0xaaa   :  { %v2761_v5 = vadd.f32 %v2754_v41, %v2612_v33  ;;  %v9523_v24 = vadd.f32 %v6370_v59, %v2773_v9 }
 0xaab   :  { %v2739_v40 = vpop.f32.mrb[108].mxu1 }
 0xaac   :  { %v2774_v25 = vmul.f32 %v6369_v17, %v2761_v5  ;;  %v2755_v12 = vmul.f32 %v6368_v10, %v2739_v40  ;;  %v7487_v50 = vpop.f32.mrb[109].mxu1  ;;  %v2801_v45 = vsel %vm107_vm0, %v9523_v24, 0.0  ;;  %v9564_v10 = vld [vmem:[%s10883_s20 + $0x50] sm:$0xff] }
 0xaad   :  { %2802 = vadd.xlane.f32.xlu0 %v2801_v45  ;;  %v3227_v44 = vsel %vm107_vm0, %v9564_v10, 0.0 }
 0xaae   :  { %v2762_v56 = vadd.f32 %v2755_v12, %v2613_v4  ;;  %v9527_v47 = vadd.f32 %v6370_v59, %v2774_v25  ;;  %v9573_v4 = vld [vmem:[%s10883_s20 + $0x68] sm:$0x1] }
 0xaaf   :  { %v3236_v57 = vsel %vm126_vm1, %v9573_v4, 0.0 }
 0xab0   :  { %v2775_v53 = vmul.f32 %v6369_v17, %v2762_v56  ;;  %v2804_v27 = vsel %vm107_vm0, %v9527_v47, 0.0  ;;  %v3233_v17 = vsel %vm107_vm0, %v9578_v8, 0.0 }
 0xab1   :  { %2805 = vadd.xlane.f32.xlu1 %v2804_v27 }
 0xab2   :  { %v9538_v61 = vadd.f32 %v6370_v59, %v2775_v53 }
 0xab4   :  { %v2807_v33 = vsel %vm126_vm1, %v9538_v61, 0.0 }
 0xab5   :  { %3219 = vadd.xlane.f32.xlu1 %v3218_v60  ;;  %2808 = vadd.xlane.f32.xlu0 %v2807_v33 }
 0xab9   :  { %3225 = vadd.xlane.f32.xlu1 %v3224_v2  ;;  %3222 = vadd.xlane.f32.xlu0 %v3221_v6 }
 0xabd   :  { %3231 = vadd.xlane.f32.xlu1 %v3230_v46  ;;  %3228 = vadd.xlane.f32.xlu0 %v3227_v44 }
 0xac1   :  { %3237 = vadd.xlane.f32.xlu1 %v3236_v57  ;;  %3234 = vadd.xlane.f32.xlu0 %v3233_v17 }
 0xb2a   :  { %v2791_v20 = vpop.xlane.xlu0 %2790 }
 0xb2b   :  { %v2810_v22 = vmul.f32 0.03125, %v2791_v20 }
 0xb2d   :  { %v9585_v59 = vsub.f32 %v9507_v16, %v2810_v22 }
 0xb2e   :  { %v2794_v19 = vpop.xlane.xlu1 %2793 }
 0xb2f   :  { %v2811_v52 = vmul.f32 0.03125, %v2794_v19  ;;  %v2824_v3 = vmul.f32 %v9585_v59, %v9585_v59 }
 0xb31   :  { %v9590_v23 = vsub.f32 %v9511_v28, %v2811_v52  ;;  %v2831_v58 = vsel %vm107_vm0, %v2824_v3, 0.0 }
 0xb32   :  { %v2797_v7 = vpop.xlane.xlu0 %2796  ;;  %2832 = vadd.xlane.f32.xlu0 %v2831_v58 }
 0xb33   :  { %v2812_v32 = vmul.f32 0.03125, %v2797_v7  ;;  %v2825_v35 = vmul.f32 %v9590_v23, %v9590_v23 }
 0xb35   :  { %v9596_v29 = vsub.f32 %v9515_v14, %v2812_v32  ;;  %v2834_v15 = vsel %vm107_vm0, %v2825_v35, 0.0 }
 0xb36   :  { %v2800_v30 = vpop.xlane.xlu1 %2799  ;;  %2835 = vadd.xlane.f32.xlu1 %v2834_v15 }
 0xb37   :  { %v2813_v31 = vmul.f32 0.03125, %v2800_v30  ;;  %v2826_v26 = vmul.f32 %v9596_v29, %v9596_v29 }
 0xb39   :  { %v9602_v38 = vsub.f32 %v9519_v51, %v2813_v31  ;;  %v2837_v34 = vsel %vm107_vm0, %v2826_v26, 0.0 }
 0xb3a   :  { %2838 = vadd.xlane.f32.xlu0 %v2837_v34  ;;  %v2803_v13 = vpop.xlane.xlu0 %2802 }
 0xb3b   :  { %v2814_v18 = vmul.f32 0.03125, %v2803_v13  ;;  %v2827_v39 = vmul.f32 %v9602_v38, %v9602_v38 }
 0xb3d   :  { %v9608_v36 = vsub.f32 %v9523_v24, %v2814_v18  ;;  %v2840_v42 = vsel %vm107_vm0, %v2827_v39, 0.0 }
 0xb3e   :  { %2841 = vadd.xlane.f32.xlu1 %v2840_v42  ;;  %v2806_v37 = vpop.xlane.xlu1 %2805  ;;  %v8183_v42 = vld [vmem:[%s10868_s14 + $0x8] sm:$0xff]  }
 0xb3f   :  { %v2815_v49 = vmul.f32 0.03125, %v2806_v37  ;;  %v2828_v55 = vmul.f32 %v9608_v36, %v9608_v36  ;;  %v9677_v37 = vld [vmem:[%s10884_s21] sm:$0xff]  }
 0xb41   :  { %v9614_v9 = vsub.f32 %v9527_v47, %v2815_v49  ;;  %v2843_v41 = vsel %vm107_vm0, %v2828_v55, 0.0 }
 0xb42   :  { %v3220_v63 = vpop.xlane.xlu1 %3219  ;;  %2844 = vadd.xlane.f32.xlu0 %v2843_v41  ;;  %v2809_v43 = vpop.xlane.xlu0 %2808 }
 0xb43   :  { %v3239_v5 = vmul.f32 0.03125, %v3220_v63  ;;  %v2816_v40 = vmul.f32 0.03125, %v2809_v43  ;;  %v2829_v25 = vmul.f32 %v9614_v9, %v9614_v9 }
 0xb45   :  { %v9620_v12 = vsub.f32 %v9532_v48, %v3239_v5  ;;  %v9623_v50 = vsub.f32 %v9538_v61, %v2816_v40  ;;  %v2846_v45 = vsel %vm107_vm0, %v2829_v25, 0.0 }
 0xb46   :  { %2847 = vadd.xlane.f32.xlu1 %v2846_v45  ;;  %v3226_v56 = vpop.xlane.xlu1 %3225  ;;  %v3223_v53 = vpop.xlane.xlu0 %3222 }
 0xb47   :  { %v3241_v27 = vmul.f32 0.03125, %v3226_v56  ;;  %v3240_v60 = vmul.f32 0.03125, %v3223_v53  ;;  %v3253_v33 = vmul.f32 %v9620_v12, %v9620_v12  ;;  %v2830_v2 = vmul.f32 %v9623_v50, %v9623_v50 }
 0xb49   :  { %v9631_v6 = vsub.f32 %v9543_v0, %v3241_v27  ;;  %v9634_v48 = vsub.f32 %v9548_v1, %v3240_v60  ;;  %v3260_v46 = vsel %vm107_vm0, %v3253_v33, 0.0  ;;  %v2849_v44 = vsel %vm126_vm1, %v2830_v2, 0.0 }
 0xb4a   :  { %3261 = vadd.xlane.f32.xlu1 %v3260_v46  ;;  %v3232_v57 = vpop.xlane.xlu1 %3231  ;;  %2850 = vadd.xlane.f32.xlu0 %v2849_v44  ;;  %v3229_v17 = vpop.xlane.xlu0 %3228  ;;  %v9684_v46 = vld [vmem:[%s10869_s12] ss:$0 sm:$0xff] }
 0xb4b   :  { %v3243_v20 = vmul.f32 0.03125, %v3232_v57  ;;  %v3242_v22 = vmul.f32 0.03125, %v3229_v17  ;;  %v3255_v19 = vmul.f32 %v9631_v6, %v9631_v6  ;;  %v3254_v0 = vmul.f32 %v9634_v48, %v9634_v48 }
 0xb4d   :  { %v9643_v52 = vsub.f32 %v9559_v11, %v3243_v20  ;;  %v9646_v1 = vsub.f32 %v9564_v10, %v3242_v22  ;;  %v3266_v3 = vsel %vm107_vm0, %v3255_v19, 0.0  ;;  %v3263_v58 = vsel %vm107_vm0, %v3254_v0, 0.0  ;;  %v9691_v0 = vld [vmem:[%s10870_s13] ss:$0 sm:$0xff] }
 0xb4e   :  { %3267 = vadd.xlane.f32.xlu1 %v3266_v3  ;;  %v3238_v7 = vpop.xlane.xlu1 %3237  ;;  %3264 = vadd.xlane.f32.xlu0 %v3263_v58  ;;  %v3235_v32 = vpop.xlane.xlu0 %3234 }
 0xb4f   :  { %v3245_v35 = vmul.f32 0.03125, %v3238_v7  ;;  %v3244_v15 = vmul.f32 0.03125, %v3235_v32  ;;  %v3257_v30 = vmul.f32 %v9643_v52, %v9643_v52  ;;  %v3256_v11 = vmul.f32 %v9646_v1, %v9646_v1 }
 0xb51   :  { %v9655_v31 = vsub.f32 %v9573_v4, %v3245_v35  ;;  %v9658_v10 = vsub.f32 %v9578_v8, %v3244_v15  ;;  %v3272_v26 = vsel %vm107_vm0, %v3257_v30, 0.0  ;;  %v3269_v34 = vsel %vm107_vm0, %v3256_v11, 0.0  ;;  %v8182_v8 = vld [vmem:[%s10868_s14] sm:$0xff]  }
 0xb52   :  { %3273 = vadd.xlane.f32.xlu1 %v3272_v26  ;;  %3270 = vadd.xlane.f32.xlu0 %v3269_v34 }
 0xb53   :  { %v3259_v13 = vmul.f32 %v9655_v31, %v9655_v31  ;;  %v3258_v18 = vmul.f32 %v9658_v10, %v9658_v10  ;;  %7488 = vmatprep.subr.bf16.mxu0 %v8182_v8 }
 0xb54   :  { %7489 = vmatpush3.bf16.msra.mxu0 %v8182_v8 }
 0xb55   :  { %v3278_v39 = vsel %vm126_vm1, %v3259_v13, 0.0  ;;  %v3275_v4 = vsel %vm107_vm0, %v3258_v18, 0.0  ;;  %7490 = vmatprep.subr.bf16.mxu0 %v8183_v42 }
 0xb56   :  { %3279 = vadd.xlane.f32.xlu1 %v3278_v39  ;;  %3276 = vadd.xlane.f32.xlu0 %v3275_v4 }
 0xb58   :  { %7491 = vmatpush3.bf16.msra.mxu0 %v8183_v42 }
 0xb59   :  { %7524 = vmatprep.subr.bf16.mxu0 %v9677_v37 }
 0xbbf   :  { %v2833_v49 = vpop.xlane.xlu0 %2832 }
 0xbc0   :  { %v2852_v55 = vmul.f32 0.03125, %v2833_v49 }
 0xbc2   :  { %v2859_v41 = vadd.f32 1e-05, %v2852_v55 }
 0xbc3   :  { %v2836_v63 = vpop.xlane.xlu1 %2835 }
 0xbc4   :  { %8276 = vrsqrt.f32 %v2859_v41  ;;  %v2853_v43 = vmul.f32 0.03125, %v2836_v63 }
 0xbc6   :  { %v2860_v5 = vadd.f32 1e-05, %v2853_v43 }
 0xbc7   :  { %v2839_v40 = vpop.xlane.xlu0 %2838 }
 0xbc8   :  { %8278 = vrsqrt.f32 %v2860_v5  ;;  %v2854_v25 = vmul.f32 0.03125, %v2839_v40 }
 0xbca   :  { %v2861_v45 = vadd.f32 1e-05, %v2854_v25 }
 0xbcb   :  { %v2842_v56 = vpop.xlane.xlu1 %2841 }
 0xbcc   :  { %8280 = vrsqrt.f32 %v2861_v45  ;;  %v2855_v53 = vmul.f32 0.03125, %v2842_v56 }
 0xbce   :  { %v8277_v27 = vpop.eup %8276  ;;  %v2862_v60 = vadd.f32 1e-05, %v2855_v53 }
 0xbcf   :  { %v2873_v33 = vmul.f32 %v8277_v27, %v9585_v59  ;;  %v2845_v2 = vpop.xlane.xlu0 %2844 }
 0xbd0   :  { %8282 = vrsqrt.f32 %v2862_v60  ;;  %v2856_v44 = vmul.f32 0.03125, %v2845_v2 }
 0xbd1   :  { %v2886_v19 = vmul.f32 %v9684_v46, %v2873_v33  ;;  %v8185_v33 = vld [vmem:[%s10884_s21 + $0x8] sm:$0xff]  }
 0xbd2   :  { %v8279_v57 = vpop.eup %8278  ;;  %v2863_v17 = vadd.f32 1e-05, %v2856_v44 }
 0xbd3   :  { %v2874_v20 = vmul.f32 %v8279_v57, %v9590_v23  ;;  %v2848_v22 = vpop.xlane.xlu1 %2847  ;;  %v2899_v23 = vadd.f32 %v9691_v0, %v2886_v19 }
 0xbd4   :  { %8284 = vrsqrt.f32 %v2863_v17  ;;  %v2857_v59 = vmul.f32 0.03125, %v2848_v22 }
 0xbd5   :  { %v2887_v3 = vmul.f32 %v9684_v46, %v2874_v20 }
 0xbd6   :  { %v8281_v58 = vpop.eup %8280  ;;  %v2864_v7 = vadd.f32 1e-05, %v2857_v59 }
 0xbd7   :  { %v2875_v32 = vmul.f32 %v8281_v58, %v9596_v29  ;;  %v3262_v35 = vpop.xlane.xlu1 %3261  ;;  %v2851_v15 = vpop.xlane.xlu0 %2850  ;;  %v2900_v30 = vadd.f32 %v9691_v0, %v2887_v3  ;;  %v8186_v58 = vld [vmem:[%s10884_s21 + $0x10] sm:$0xff]  }
 0xbd8   :  { %8286 = vrsqrt.f32 %v2864_v7  ;;  %v3281_v11 = vmul.f32 0.03125, %v3262_v35  ;;  %v2858_v26 = vmul.f32 0.03125, %v2851_v15 }
 0xbd9   :  { %v2906_v34 = vpack.c.bf16 %v2900_v30, %v2899_v23  ;;  %v2888_v4 = vmul.f32 %v9684_v46, %v2875_v32 }
 0xbda   :  { %v8283_v13 = vpop.eup %8282  ;;  %v3288_v18 = vadd.f32 1e-05, %v3281_v11  ;;  %v2865_v39 = vadd.f32 1e-05, %v2858_v26 }
 0xbdb   :  { %v2876_v8 = vmul.f32 %v8283_v13, %v9602_v38  ;;  %v3268_v42 = vpop.xlane.xlu1 %3267  ;;  %7492 = vmatprep.mubr.msk.bf16.mxu0 %vm107_vm0, %v2906_v34  ;;  %v3265_v29 = vpop.xlane.xlu0 %3264  ;;  %v2901_v40 = vadd.f32 %v9691_v0, %v2888_v4 }
 0xbdc   :  { %8288 = vrsqrt.f32 %v3288_v18  ;;  %v3283_v49 = vmul.f32 0.03125, %v3268_v42  ;;  %v3282_v55 = vmul.f32 0.03125, %v3265_v29  ;;  %v8409_v18 = vld [vmem:[%s10885_s29] ss:$0 sm:$0xff] }
 0xbdd   :  { %v2889_v41 = vmul.f32 %v9684_v46, %v2876_v8  ;;  %8290 = vrsqrt.f32 %v2865_v39 }
 0xbde   :  { %v8285_v63 = vpop.eup %8284  ;;  %v3290_v43 = vadd.f32 1e-05, %v3283_v49  ;;  %v3289_v5 = vadd.f32 1e-05, %v3282_v55 }
 0xbdf   :  { %v2902_v25 = vadd.f32 %v9691_v0, %v2889_v41  ;;  %v2877_v45 = vmul.f32 %v8285_v63, %v9608_v36  ;;  %v3274_v38 = vpop.xlane.xlu1 %3273  ;;  %v3271_v56 = vpop.xlane.xlu0 %3270 }
 0xbe0   :  { %8292 = vrsqrt.f32 %v3290_v43  ;;  %v3285_v53 = vmul.f32 0.03125, %v3274_v38  ;;  %v3284_v27 = vmul.f32 0.03125, %v3271_v56 }
 0xbe1   :  { %8294 = vrsqrt.f32 %v3289_v5  ;;  %v2907_v60 = vpack.c.bf16 %v2902_v25, %v2901_v40  ;;  %v2890_v22 = vmul.f32 %v9684_v46, %v2877_v45 }
 0xbe2   :  { %v8287_v2 = vpop.eup %8286  ;;  %v3292_v44 = vadd.f32 1e-05, %v3285_v53  ;;  %v3291_v57 = vadd.f32 1e-05, %v3284_v27 }
 0xbe3   :  { %v2878_v17 = vmul.f32 %v8287_v2, %v9614_v9  ;;  %v3280_v20 = vpop.xlane.xlu1 %3279  ;;  %7493 = vmatmul.mubr.msk.bf16.vlgmr.msra.gmra.mrb[96].mxu0 %vm107_vm0, %v2907_v60  ;;  %v3277_v36 = vpop.xlane.xlu0 %3276  ;;  %v2903_v23 = vadd.f32 %v9691_v0, %v2890_v22  ;;  %v8187_v60 = vld [vmem:[%s10884_s21 + $0x18] sm:$0xff]   ;;  %v8192_v22 = vld [vmem:[%s10871_s16 + $0x20] sm:$0xff]  }
 0xbe4   :  { %8296 = vrsqrt.f32 %v3292_v44  ;;  %v3287_v19 = vmul.f32 0.03125, %v3280_v20  ;;  %v3286_v59 = vmul.f32 0.03125, %v3277_v36  ;;  %7525 = vmatpush3.bf16.msra.mxu0 %v9677_v37  ;;  %v8190_v20 = vld [vmem:[%s10871_s16 + $0x10] sm:$0xff]   ;;  %v8191_v36 = vld [vmem:[%s10871_s16 + $0x18] sm:$0xff]  }
 0xbe5   :  { %8298 = vrsqrt.f32 %v3291_v57  ;;  %v2891_v3 = vmul.f32 %v9684_v46, %v2878_v17  ;;  %7526 = vmatprep.subr.bf16.mxu0 %v8185_v33  ;;  %v8188_v57 = vld [vmem:[%s10871_s16] sm:$0xff]   ;;  %v8189_v17 = vld [vmem:[%s10871_s16 + $0x8] sm:$0xff]  }
 0xbe6   :  { %v8289_v9 = vpop.eup %8288  ;;  %v3294_v7 = vadd.f32 1e-05, %v3287_v19  ;;  %v3293_v32 = vadd.f32 1e-05, %v3286_v59  ;;  %7500 = vmatprep.subr.bf16.mxu1 %v8188_v57  ;;  %v8193_v19 = vld [vmem:[%s10871_s16 + $0x28] sm:$0xff]   ;;  %v8194_v59 = vld [vmem:[%s10871_s16 + $0x30] sm:$0xff]  }
 0xbe7   :  { %v8291_v35 = vpop.eup %8290  ;;  %v3302_v15 = vmul.f32 %v8289_v9, %v9620_v12  ;;  %v2904_v30 = vadd.f32 %v9691_v0, %v2891_v3  ;;  %7501 = vmatpush3.bf16.msra.mxu1 %v8188_v57  ;;  %v8195_v3 = vld [vmem:[%s10871_s16 + $0x38] sm:$0xff]   ;;  %v6373_v9 = vld [vmem:[%s10872_s15] ss:$0 sm:$0xff] }
 0xbe8   :  { %8300 = vrsqrt.f32 %v3294_v7  ;;  %v2879_v37 = vmul.f32 %v8291_v35, %v9623_v50  ;;  %7527 = vmatpush3.bf16.msra.mxu0 %v8185_v33  ;;  %7502 = vmatprep.subr.bf16.mxu1 %v8189_v17  ;;  %v9821_v57 = vld [vmem:[%s10859_s4] ss:$0 sm:$0xff] }
 0xbe9   :  { %8302 = vrsqrt.f32 %v3293_v32  ;;  %v2908_v11 = vpack.c.bf16 %v2904_v30, %v2903_v23  ;;  %7536 = vmatprep.subr.bf16.mxu0 %v8186_v58  ;;  %v3309_v12 = vmul.f32 %v8409_v18, %v3302_v15 }
 0xbea   :  { %v8293_v26 = vpop.eup %8292  ;;  %v2892_v34 = vmul.f32 %v9684_v46, %v2879_v37  ;;  %v8410_v46 = vld [vmem:[%s10886_s3] ss:$0 sm:$0xff] }
 0xbeb   :  { %v8295_v13 = vpop.eup %8294  ;;  %7496 = vmatprep.mubr.msk.bf16.mxu0 %vm107_vm0, %v2908_v11  ;;  %v3304_v39 = vmul.f32 %v8293_v26, %v9631_v6  ;;  %v3316_v55 = vadd.f32 %v8410_v46, %v3309_v12  ;;  %7503 = vmatpush3.bf16.msra.mxu1 %v8189_v17 }
 0xbec   :  { %v3303_v4 = vmul.f32 %v8295_v13, %v9634_v48  ;;  %v2905_v50 = vadd.f32 %v9691_v0, %v2892_v34  ;;  %7504 = vmatprep.subr.bf16.mxu1 %v8190_v20 }
 0xbed   :  { %v3311_v41 = vmul.f32 %v8409_v18, %v3304_v39 }
 0xbee   :  { %v8297_v8 = vpop.eup %8296  ;;  %v3310_v42 = vmul.f32 %v8409_v18, %v3303_v4  ;;  %v2909_v29 = vpack.c.bf16 %v2905_v50, %v2905_v50 }
 0xbef   :  { %v8299_v49 = vpop.eup %8298  ;;  %v3306_v43 = vmul.f32 %v8297_v8, %v9643_v52  ;;  %v3318_v45 = vadd.f32 %v8410_v46, %v3311_v41  ;;  %7505 = vmatpush3.bf16.msra.mxu1 %v8190_v20 }
 0xbf0   :  { %v3317_v63 = vadd.f32 %v8410_v46, %v3310_v42  ;;  %v3305_v5 = vmul.f32 %v8299_v49, %v9646_v1  ;;  %7497 = vmatmul.mubr.msk.bf16.gmra.mrb[100].mxu0 %vm107_vm0, %v2909_v29  ;;  %7506 = vmatprep.subr.bf16.mxu1 %v8191_v36 }
 0xbf1   :  { %v3313_v38 = vmul.f32 %v8409_v18, %v3306_v43 }
 0xbf2   :  { %v8301_v6 = vpop.eup %8300  ;;  %v3312_v48 = vmul.f32 %v8409_v18, %v3305_v5  ;;  %v9733_v0 = vpack.c.bf16 %v3317_v63, %v3316_v55 }
 0xbf3   :  { %v8303_v40 = vpop.eup %8302  ;;  %v3308_v25 = vmul.f32 %v8301_v6, %v9655_v31  ;;  %v3320_v33 = vadd.f32 %v8410_v46, %v3313_v38  ;;  %7507 = vmatpush3.bf16.msra.mxu1 %v8191_v36 }
 0xbf4   :  { %v3319_v56 = vadd.f32 %v8410_v46, %v3312_v48  ;;  %v3307_v53 = vmul.f32 %v8303_v40, %v9658_v10  ;;  %7528 = vmatprep.mubr.msk.bf16.mxu0 %vm107_vm0, %v9733_v0  ;;  %7508 = vmatprep.subr.bf16.mxu1 %v8192_v22 }
 0xbf5   :  { %v3315_v52 = vmul.f32 %v8409_v18, %v3308_v25 }
 0xbf6   :  { %v3314_v27 = vmul.f32 %v8409_v18, %v3307_v53  ;;  %v9739_v1 = vpack.c.bf16 %v3319_v56, %v3318_v45 }
 0xbf7   :  { %v3322_v31 = vadd.f32 %v8410_v46, %v3315_v52  ;;  %7509 = vmatpush3.bf16.msra.mxu1 %v8192_v22 }
 0xbf8   :  { %v3321_v2 = vadd.f32 %v8410_v46, %v3314_v27  ;;  %7529 = vmatmul.mubr.msk.bf16.vlgmr.msra.gmra.mrb[104].mxu0 %vm107_vm0, %v9739_v1  ;;  %7510 = vmatprep.subr.bf16.mxu1 %v8193_v19 }
 0xbf9   :  { %7537 = vmatpush3.bf16.msra.mxu0 %v8186_v58  ;;  %v9750_v10 = vpack.c.bf16 %v3322_v31, %v3322_v31  ;;  %v9789_v58 = vld [vmem:[%s10884_s21 + $0x20] sm:$0xff]  }
 0xbfa   :  { %v9746_v44 = vpack.c.bf16 %v3321_v2, %v3320_v33  ;;  %7538 = vmatprep.subr.bf16.mxu0 %v8187_v60 }
 0xbfb   :  { %7511 = vmatpush3.bf16.msra.mxu1 %v8193_v19 }
 0xbfc   :  { %7532 = vmatprep.mubr.msk.bf16.mxu0 %vm107_vm0, %v9746_v44  ;;  %7512 = vmatprep.subr.bf16.mxu1 %v8194_v59 }
 0xbfd   :  { %7539 = vmatpush3.bf16.msra.mxu0 %v8187_v60 }
 0xbff   :  { %7513 = vmatpush3.bf16.msra.mxu1 %v8194_v59 }
 0xc00   :  { %7533 = vmatmul.mubr.msk.bf16.gmra.mrb[108].mxu0 %vm107_vm0, %v9750_v10  ;;  %7514 = vmatprep.subr.bf16.mxu1 %v8195_v3 }
 0xc01   :  { %7540 = vmatprep.mubr.msk.bf16.mxu0 %vm107_vm0, %v9733_v0 }
 0xc03   :  { %7515 = vmatpush3.bf16.msra.mxu1 %v8195_v3 }
 0xc04   :  { %7548 = vmatprep.subr.bf16.mxu1 %v9789_v58 }
 0xc08   :  { %7541 = vmatmul.mubr.msk.bf16.vlgmr.msra.gmra.mrb[112].mxu0 %vm107_vm0, %v9739_v1 }
 0xc09   :  { %7544 = vmatprep.mubr.msk.bf16.mxu0 %vm107_vm0, %v9746_v44 }
 0xc10   :  { %7545 = vmatmul.mubr.msk.bf16.gmra.mrb[116].mxu0 %vm107_vm0, %v9750_v10 }
 0xcb6   :  { %v7494_v7 = vpop.f32.mrb[96].mxu0 }
 0xcb7   :  { %v2983_v32 = vadd.f32 %v7494_v7, %v6373_v9  ;;  %v2974_v35 = vpop.f32.mrb[97].mxu0 }
 0xcb8   :  { %v2975_v15 = vadd.f32 %v6373_v9, %v2974_v35  ;;  %v7495_v23 = vpop.f32.mrb[98].mxu0 }
 0xcb9   :  { %v3013_v30 = vmul.f32 0.044715, %v2983_v32  ;;  %v9795_v37 = vadd.f32 %v7495_v23, %v6373_v9  ;;  %v2977_v11 = vpop.f32.mrb[99].mxu0  ;;  %v3006_v19 = vmul.f32 0.5, %v2983_v32 }
 0xcba   :  { %v3011_v26 = vmul.f32 0.044715, %v2975_v15  ;;  %v9797_v34 = vadd.f32 %v6373_v9, %v2977_v11 }
 0xcbb   :  { %v3020_v13 = vmul.f32 %v3013_v30, %v2983_v32  ;;  %v3014_v18 = vmul.f32 0.044715, %v9795_v37  ;;  %v3004_v30 = vmul.f32 0.5, %v2975_v15 }
 0xcbc   :  { %v3018_v12 = vmul.f32 %v3011_v26, %v2975_v15  ;;  %v3012_v39 = vmul.f32 0.044715, %v9797_v34 }
 0xcbd   :  { %v3027_v4 = vmul.f32 %v3020_v13, %v2983_v32  ;;  %v3021_v50 = vmul.f32 %v3014_v18, %v9795_v37 }
 0xcbe   :  { %v3025_v8 = vmul.f32 %v3018_v12, %v2975_v15  ;;  %v3019_v42 = vmul.f32 %v3012_v39, %v9797_v34 }
 0xcbf   :  { %v3034_v29 = vadd.f32 %v3027_v4, %v2983_v32  ;;  %v3028_v49 = vmul.f32 %v3021_v50, %v9795_v37 }
 0xcc0   :  { %v3026_v46 = vmul.f32 %v3019_v42, %v9797_v34  ;;  %v3032_v55 = vadd.f32 %v3025_v8, %v2975_v15  ;;  %v3007_v15 = vmul.f32 0.5, %v9795_v37 }
 0xcc1   :  { %v3041_v41 = vmul.f32 0.7978846, %v3034_v29  ;;  %v3035_v63 = vadd.f32 %v3028_v49, %v9795_v37 }
 0xcc2   :  { %v3033_v43 = vadd.f32 %v3026_v46, %v9797_v34  ;;  %v3039_v5 = vmul.f32 0.7978846, %v3032_v55 }
 0xcc3   :  { %8304 = vtanh.f32 %v3041_v41  ;;  %v3042_v6 = vmul.f32 0.7978846, %v3035_v63  ;;  %v7498_v48 = vpop.f32.mrb[100].mxu0  ;;  %v3005_v63 = vmul.f32 0.5, %v9797_v34  ;;  %v8197_v34 = vld [vmem:[%s10884_s21 + $0x28] sm:$0xff]  }
 0xcc4   :  { %v9807_v40 = vadd.f32 %v7498_v48, %v6373_v9  ;;  %v2990_v25 = vpop.f32.mrb[101].mxu0  ;;  %v3040_v45 = vmul.f32 0.7978846, %v3033_v43  ;;  %8306 = vtanh.f32 %v3039_v5 }
 0xcc5   :  { %8308 = vtanh.f32 %v3042_v6  ;;  %v9809_v38 = vadd.f32 %v6373_v9, %v2990_v25  ;;  %v7499_v56 = vpop.f32.mrb[102].mxu0 }
 0xcc6   :  { %v3017_v53 = vmul.f32 0.044715, %v9807_v40  ;;  %v2993_v52 = vpop.f32.mrb[103].mxu0  ;;  %8310 = vtanh.f32 %v3040_v45 }
 0xcc7   :  { %v3015_v27 = vmul.f32 0.044715, %v9809_v38  ;;  %v9813_v60 = vadd.f32 %v6373_v9, %v2993_v52 }
 0xcc8   :  { %v3024_v33 = vmul.f32 %v3017_v53, %v9807_v40 }
 0xcc9   :  { %v3022_v2 = vmul.f32 %v3015_v27, %v9809_v38  ;;  %v3016_v31 = vmul.f32 0.044715, %v9813_v60 }
 0xcca   :  { %v3031_v17 = vmul.f32 %v3024_v33, %v9807_v40 }
 0xccb   :  { %v3029_v20 = vmul.f32 %v3022_v2, %v9809_v38  ;;  %v3023_v36 = vmul.f32 %v3016_v31, %v9813_v60  ;;  %v7530_v22 = vpop.f32.mrb[104].mxu0 }
 0xccc   :  { %v3396_v59 = vpop.f32.mrb[105].mxu0  ;;  %v3038_v3 = vadd.f32 %v3031_v17, %v9807_v40  ;;  %v9829_v35 = vadd.f32 %v7530_v22, %v9821_v57  ;;  %v6408_v22 = vld [vmem:[%s10859_s4 + $0x1] ss:$0 sm:$0xff] }
 0xccd   :  { %v8305_v9 = vpop.eup %8304  ;;  %v3030_v7 = vmul.f32 %v3023_v36, %v9813_v60  ;;  %v7531_v23 = vpop.f32.mrb[106].mxu0  ;;  %v3036_v11 = vadd.f32 %v3029_v20, %v9809_v38  ;;  %v3397_v13 = vadd.f32 %v9821_v57, %v3396_v59 }
 0xcce   :  { %v8307_v26 = vpop.eup %8306  ;;  %v9834_v18 = vadd.f32 %v7531_v23, %v9821_v57  ;;  %v3399_v32 = vpop.f32.mrb[107].mxu0  ;;  %v3055_v12 = vadd.f32 1.0, %v8305_v9  ;;  %v3045_v39 = vmul.f32 0.7978846, %v3038_v3  ;;  %v3008_v23 = vmul.f32 0.5, %v9809_v38 }
 0xccf   :  { %v8309_v4 = vpop.eup %8308  ;;  %v3400_v50 = vadd.f32 %v9821_v57, %v3399_v32  ;;  %v3053_v8 = vadd.f32 1.0, %v8307_v26  ;;  %v3037_v42 = vadd.f32 %v3030_v7, %v9813_v60  ;;  %v3043_v29 = vmul.f32 0.7978846, %v3036_v11 }
 0xcd0   :  { %v8311_v49 = vpop.eup %8310  ;;  %v3601_v46 = vpack.c.bf16 %v9834_v18, %v9829_v35  ;;  %v3056_v55 = vadd.f32 1.0, %v8309_v4  ;;  %8312 = vtanh.f32 %v3045_v39  ;;  %v3062_v6 = vmul.f32 %v3055_v12, %v3006_v19 }
 0xcd1   :  { %v3600_v41 = vpack.c.bf16 %v3400_v50, %v3397_v13  ;;  %v3054_v43 = vadd.f32 1.0, %v8311_v49  ;;  %v3044_v5 = vmul.f32 0.7978846, %v3037_v42  ;;  %8314 = vtanh.f32 %v3043_v29 }
 0xcd2   :  { %v3063_v48 = vmul.f32 %v3056_v55, %v3007_v15  ;;  %v3060_v45 = vmul.f32 %v3053_v8, %v3004_v30  ;;  %v3010_v11 = vmul.f32 0.5, %v9807_v40  ;;  %v3009_v32 = vmul.f32 0.5, %v9813_v60 }
 0xcd3   :  { %v9842_v25 = vpop.f32.mrb[108].mxu0  ;;  %7568 = vmatprep.mubr.msk.bf16.mxu0 %vm516_vm2, %v3600_v41  ;;  %v3061_v56 = vmul.f32 %v3054_v43, %v3005_v63  ;;  %8316 = vtanh.f32 %v3044_v5 }
 0xcd4   :  { %v3412_v37 = vpop.f32.mrb[109].mxu0  ;;  %v3068_v53 = vpack.c.bf16 %v3063_v48, %v3062_v6 }
 0xcd5   :  { %v7535_v52 = vpop.f32.mrb[110].mxu0  ;;  %v3067_v27 = vpack.c.bf16 %v3061_v56, %v3060_v45  ;;  %v9849_v2 = vadd.f32 %v9821_v57, %v3412_v37 }
 0xcd6   :  { %v3415_v33 = vpop.f32.mrb[111].mxu0 }
 0xcd7   :  { %v9852_v31 = vadd.f32 %v9821_v57, %v3415_v33  ;;  %7516 = vmatprep.mubr.bf16.mxu1 %v3067_v27  ;;  %v8199_v27 = vld [vmem:[%s10884_s21 + $0x48] sm:$0xff]   ;;  %v3421_v33 = vadd.f32 %v9842_v25, %v9821_v57  ;;  %v6388_v57 = vld [vmem:[%s10873_s17] ss:$0 sm:$0xff] }
 0xcd8   :  { %7517 = vmatmul.mubr.bf16.vlgmr.msra.gmra.mrb[112].mxu1 %v3068_v53  ;;  %v8198_v53 = vld [vmem:[%s10884_s21 + $0x40] sm:$0xff]  }
 0xcd9   :  { %v3602_v17 = vpack.c.bf16 %v9852_v31, %v9849_v2  ;;  %7549 = vmatpush3.bf16.msra.mxu1 %v9789_v58 }
 0xcda   :  { %v8313_v20 = vpop.eup %8312  ;;  %7550 = vmatprep.subr.bf16.mxu1 %v8197_v34 }
 0xcdb   :  { %v7542_v36 = vpop.f32.mrb[112].mxu0  ;;  %v3059_v19 = vadd.f32 1.0, %v8313_v20  ;;  %v8315_v59 = vpop.eup %8314 }
 0xcdc   :  { %v3483_v3 = vpop.f32.mrb[113].mxu0  ;;  %v3057_v30 = vadd.f32 1.0, %v8315_v59  ;;  %v3492_v26 = vadd.f32 %v7542_v36, %v6408_v22 }
 0xcdd   :  { %v8317_v9 = vpop.eup %8316  ;;  %v7543_v7 = vpop.f32.mrb[114].mxu0  ;;  %7551 = vmatpush3.bf16.msra.mxu1 %v8197_v34  ;;  %v3484_v39 = vadd.f32 %v6408_v22, %v3483_v3  ;;  %v3066_v50 = vmul.f32 %v3059_v19, %v3010_v11  ;;  %v3603_v34 = vpack.c.bf16 %v3421_v33, %v3421_v33 }
 0xcde   :  { %v3495_v58 = vadd.f32 %v7543_v7, %v6408_v22  ;;  %v3486_v13 = vpop.f32.mrb[115].mxu0  ;;  %v3058_v12 = vadd.f32 1.0, %v8317_v9  ;;  %v3064_v42 = vmul.f32 %v3057_v30, %v3008_v23 }
 0xcdf   :  { %v3487_v4 = vadd.f32 %v6408_v22, %v3486_v13  ;;  %v3070_v38 = vpack.c.bf16 %v3066_v50, %v3066_v50 }
 0xce0   :  { %v3605_v8 = vpack.c.bf16 %v3495_v58, %v3492_v26  ;;  %v3065_v29 = vmul.f32 %v3058_v12, %v3009_v32 }
 0xce1   :  { %v3604_v49 = vpack.c.bf16 %v3487_v4, %v3484_v39 }
 0xce2   :  { %v3069_v15 = vpack.c.bf16 %v3065_v29, %v3064_v42  ;;  %v3624_v48 = vsel %vm516_vm2, %v3605_v8, 0 }
 0xce3   :  { %v7546_v55 = vpop.f32.mrb[116].mxu0  ;;  %8156 = vmatprep.subr.msk.bf16.mxu0 %vm516_vm2, %v3604_v49  ;;  %v3621_v40 = vsel %vm516_vm2, %v3604_v49, 0 }
 0xce4   :  { %7520 = vmatprep.mubr.bf16.mxu1 %v3069_v15  ;;  %v3499_v41 = vpop.f32.mrb[117].mxu0  ;;  %7561 = vmatpush3.bf16.xpose.msra.mxu0 %v3621_v40  ;;  %v3508_v45 = vadd.f32 %v7546_v55, %v6408_v22 }
 0xce5   :  { %7521 = vmatmul.mubr.bf16.gmra.mrb[116].mxu1 %v3070_v38  ;;  %v7547_v60 = vpop.f32.mrb[118].mxu0  ;;  %8157 = vmatprep.subr.msk.bf16.mxu0 %vm516_vm2, %v3605_v8  ;;  %v3500_v43 = vadd.f32 %v6408_v22, %v3499_v41 }
 0xce6   :  { %v3502_v63 = vpop.f32.mrb[119].mxu0  ;;  %7552 = vmatprep.mubr.msk.bf16.mxu1 %vm107_vm0, %v9733_v0  ;;  %v3607_v56 = vpack.c.bf16 %v3508_v45, %v3508_v45 }
 0xce7   :  { %v3503_v5 = vadd.f32 %v6408_v22, %v3502_v63 }
 0xce8   :  { %v3630_v52 = vsel %vm516_vm2, %v3607_v56, 0 }
 0xce9   :  { %v3606_v6 = vpack.c.bf16 %v3503_v5, %v3500_v43  ;;  %v3703_v5 = vld [vmem:[%s10860_s5] sm:$0xff] }
 0xceb   :  { %v3627_v37 = vsel %vm516_vm2, %v3606_v6, 0 }
 0xcec   :  { %7563 = vmatpush3.bf16.xpose.msra.mxu0 %v3624_v48 }
 0xced   :  { %7553 = vmatmul.mubr.msk.bf16.vlgmr.msra.gmra.mrb[120].mxu1 %vm107_vm0, %v9739_v1  ;;  %8158 = vmatprep.subr.msk.bf16.mxu0 %vm516_vm2, %v3606_v6 }
 0xcee   :  { %7556 = vmatprep.mubr.msk.bf16.mxu1 %vm107_vm0, %v9746_v44 }
 0xcf4   :  { %7565 = vmatpush3.bf16.xpose.msra.mxu0 %v3627_v37  ;;  %v3704_v37 = vld [vmem:[%s10860_s5 + $0x8] sm:$0xff] }
 0xcf5   :  { %7557 = vmatmul.mubr.msk.bf16.gmra.mrb[124].mxu1 %vm107_vm0, %v9750_v10  ;;  %8159 = vmatprep.subr.msk.bf16.mxu0 %vm516_vm2, %v3607_v56 }
 0xcfc   :  { %7567 = vmatpush3.bf16.xpose.msra.mxu0 %v3630_v52 }
 0xcfd   :  { %7604 = vmatprep.subr.bf16.mxu0 %v8198_v53 }
 0xd03   :  { %7569 = vmatmul.mubr.msk.bf16.vlgmr.msra.gmra.mrb[120].mxu0 %vm516_vm2, %v3601_v46 }
 0xd04   :  { %7572 = vmatprep.mubr.msk.bf16.mxu0 %vm516_vm2, %v3602_v17  ;;  %7605 = vmatpush3.bf16.msra.mxu0 %v8198_v53  ;;  %v3705_v53 = vld [vmem:[%s10860_s5 + $0x10] sm:$0xff] }
 0xd05   :  { %7606 = vmatprep.subr.bf16.mxu0 %v8199_v27 }
 0xd08   :  { %7607 = vmatpush3.bf16.msra.mxu0 %v8199_v27 }
 0xd0b   :  { %7573 = vmatmul.mubr.msk.bf16.gmra.mrb[124].mxu0 %vm516_vm2, %v3603_v34  ;;  %v3706_v34 = vld [vmem:[%s10860_s5 + $0x18] sm:$0xff] }
 0xd0c   :  { %7608 = vmatprep.mubr.msk.bf16.mxu0 %vm107_vm0, %v9733_v0 }
 0xd13   :  { %7609 = vmatmul.mubr.msk.bf16.vlgmr.msra.gmra.mrb[128].mxu0 %vm107_vm0, %v9739_v1 }
 0xd14   :  { %7612 = vmatprep.mubr.msk.bf16.mxu0 %vm107_vm0, %v9746_v44 }
 0xd1b   :  { %7613 = vmatmul.mubr.msk.bf16.gmra.mrb[132].mxu0 %vm107_vm0, %v9750_v10 }
 0xdab   :  { %v7518_v35 = vpop.f32.mrb[112].mxu1 }
 0xdac   :  { %v3185_v18 = vadd.f32 %v7518_v35, %v9515_v14  ;;  %v3153_v46 = vpop.f32.mrb[113].mxu1 }
 0xdad   :  { %v3183_v25 = vadd.f32 %v3153_v46, %v9507_v16  ;;  %v7519_v2 = vpop.f32.mrb[114].mxu1 }
 0xdae   :  { %v3198_v31 = vadd.f32 %v6388_v57, %v3185_v18  ;;  %v3186_v17 = vadd.f32 %v7519_v2, %v9519_v51  ;;  %v3156_v20 = vpop.f32.mrb[115].mxu1 }
 0xdaf   :  { %v3196_v36 = vadd.f32 %v6388_v57, %v3183_v25  ;;  %v3184_v22 = vadd.f32 %v3156_v20, %v9511_v28 }
 0xdb0   :  { %3205 = vst.msk [vmem:[%s10874_s18 + $0x10] sm:$0xff] %vm107_vm0, %v3198_v31  ;;  %v3199_v19 = vadd.f32 %v6388_v57, %v3186_v17  ;;  %v3707_v17 = vld [vmem:[%s10860_s5 + $0x20] sm:$0xff] }
 0xdb1   :  { %3203 = vst.msk [vmem:[%s10874_s18] sm:$0xff] %vm107_vm0, %v3196_v36  ;;  %v3197_v16 = vadd.f32 %v6388_v57, %v3184_v22 }
 0xdb2   :  { %3206 = vst.msk [vmem:[%s10874_s18 + $0x18] sm:$0xff] %vm107_vm0, %v3199_v19 }
 0xdb3   :  { %3204 = vst.msk [vmem:[%s10874_s18 + $0x8] sm:$0xff] %vm107_vm0, %v3197_v16 }
 0xdb8   :  { %v7522_v28 = vpop.f32.mrb[116].mxu1 }
 0xdb9   :  { %v3189_v14 = vadd.f32 %v7522_v28, %v9538_v61  ;;  %v3169_v51 = vpop.f32.mrb[117].mxu1  ;;  %v3708_v28 = vld [vmem:[%s10860_s5 + $0x28] sm:$0xff] }
 0xdba   :  { %v3187_v59 = vadd.f32 %v3169_v51, %v9523_v24  ;;  %v7523_v3 = vpop.f32.mrb[118].mxu1 }
 0xdbb   :  { %v3202_v9 = vadd.f32 %v6388_v57, %v3189_v14  ;;  %v3172_v7 = vpop.f32.mrb[119].mxu1  ;;  %v3709_v14 = vld [vmem:[%s10860_s5 + $0x30] sm:$0x1] }
 0xdbc   :  { %v3200_v23 = vadd.f32 %v6388_v57, %v3187_v59  ;;  %v3188_v30 = vadd.f32 %v3172_v7, %v9527_v47  ;;  %v6420_v47 = vld [vmem:[%s10859_s4 + $0x2] ss:$0 sm:$0xff] }
 0xdbd   :  { %3209 = vst.msk [vmem:[%s10874_s18 + $0x30] sm:$0x1] %vm126_vm1, %v3202_v9 }
 0xdbe   :  { %3207 = vst.msk [vmem:[%s10874_s18 + $0x20] sm:$0xff] %vm107_vm0, %v3200_v23  ;;  %v3201_v61 = vadd.f32 %v6388_v57, %v3188_v30 }
 0xdc0   :  { %3208 = vst.msk [vmem:[%s10874_s18 + $0x28] sm:$0xff] %vm107_vm0, %v3201_v61  ;;  %v7554_v24 = vpop.f32.mrb[120].mxu1  ;;  %v6459_v61 = vld [vmem:[%s10859_s4 + $0x4] ss:$0 sm:$0xff] }
 0xdc1   :  { %v3570_v11 = vpop.f32.mrb[121].mxu1  ;;  %v3579_v58 = vadd.f32 %v7554_v24, %v6420_v47 }
 0xdc2   :  { %v7555_v26 = vpop.f32.mrb[122].mxu1  ;;  %v3571_v12 = vadd.f32 %v6420_v47, %v3570_v11 }
 0xdc3   :  { %v3582_v13 = vadd.f32 %v7555_v26, %v6420_v47  ;;  %v3573_v32 = vpop.f32.mrb[123].mxu1 }
 0xdc4   :  { %v3574_v39 = vadd.f32 %v6420_v47, %v3573_v32 }
 0xdc5   :  { %v3807_v4 = vpack.c.bf16 %v3582_v13, %v3579_v58 }
 0xdc6   :  { %v3806_v50 = vpack.c.bf16 %v3574_v39, %v3571_v12 }
 0xdc8   :  { %v7558_v8 = vpop.f32.mrb[124].mxu1  ;;  %7576 = vmatprep.subr.bf16.mxu1 %v3806_v50 }
 0xdc9   :  { %v3595_v42 = vadd.f32 %v7558_v8, %v6420_v47  ;;  %v3586_v29 = vpop.f32.mrb[125].mxu1  ;;  %7577 = vmatpush3.bf16.msra.mxu1 %v3806_v50 }
 0xdca   :  { %v7559_v49 = vpop.f32.mrb[126].mxu1  ;;  %7578 = vmatprep.subr.bf16.mxu1 %v3807_v4  ;;  %v3587_v40 = vadd.f32 %v6420_v47, %v3586_v29 }
 0xdcb   :  { %v3589_v15 = vpop.f32.mrb[127].mxu1  ;;  %v3809_v55 = vpack.c.bf16 %v3595_v42, %v3595_v42 }
 0xdcc   :  { %v3590_v38 = vadd.f32 %v6420_v47, %v3589_v15 }
 0xdcd   :  { %7579 = vmatpush3.bf16.msra.mxu1 %v3807_v4  ;;  %v3823_v60 = vand.u32 %v3809_v55, %v8702_v21 }
 0xdce   :  { %v3808_v41 = vpack.c.bf16 %v3590_v38, %v3587_v40 }
 0xdd0   :  { %7580 = vmatprep.subr.bf16.mxu1 %v3808_v41 }
 0xdd1   :  { %7581 = vmatpush3.bf16.msra.mxu1 %v3808_v41 }
 0xdd2   :  { %7582 = vmatprep.subr.bf16.mxu1 %v3823_v60 }
 0xdd5   :  { %7583 = vmatpush3.bf16.msra.mxu1 %v3823_v60 }
 0xdd6   :  { %v7570_v63 = vpop.f32.mrb[120].mxu0 }
 0xdd7   :  { %v3666_v43 = vpop.f32.mrb[121].mxu0  ;;  %v3698_v6 = vmul.f32 0.25, %v7570_v63 }
 0xdd8   :  { %v3696_v48 = vmul.f32 0.25, %v3666_v43  ;;  %v7571_v45 = vpop.f32.mrb[122].mxu0 }
 0xdd9   :  { %v3669_v56 = vpop.f32.mrb[123].mxu0  ;;  %v3699_v52 = vmul.f32 0.25, %v7571_v45  ;;  %v9961_v18 = vadd.f32 %v3705_v53, %v3698_v6 }
 0xdda   :  { %v3697_v27 = vmul.f32 0.25, %v3669_v56  ;;  %v9952_v33 = vadd.f32 %v3703_v5, %v3696_v48 }
 0xddb   :  { %v9965_v2 = vadd.f32 %v3706_v34, %v3699_v52  ;;  %v3723_v19 = vsel %vm626_vm4, %v9961_v18, -inf }
 0xddc   :  { %v3717_v57 = vsel %vm626_vm4, %v9952_v33, -inf  ;;  %v9959_v35 = vadd.f32 %v3704_v37, %v3697_v27 }
 0xddd   :  { %3718 = vmax.xlane.f32.xlu0 %v3717_v57  ;;  %v3726_v59 = vsel %vm626_vm4, %v9965_v2, -inf }
 0xdde   :  { %v7574_v46 = vpop.f32.mrb[124].mxu0  ;;  %v3720_v25 = vsel %vm626_vm4, %v9959_v35, -inf }
 0xddf   :  { %3721 = vmax.xlane.f32.xlu1 %v3720_v25  ;;  %v3682_v31 = vpop.f32.mrb[125].mxu0  ;;  %v3702_v20 = vmul.f32 0.25, %v7574_v46 }
 0xde0   :  { %v3700_v36 = vmul.f32 0.25, %v3682_v31  ;;  %v7575_v22 = vpop.f32.mrb[126].mxu0 }
 0xde1   :  { %3724 = vmax.xlane.f32.xlu0 %v3723_v19  ;;  %v3685_v16 = vpop.f32.mrb[127].mxu0  ;;  %v9983_v23 = vadd.f32 %v3709_v14, %v3702_v20 }
 0xde2   :  { %v3701_v51 = vmul.f32 0.25, %v3685_v16  ;;  %v3714_v3 = vadd.f32 %v3707_v17, %v3700_v36 }
 0xde3   :  { %3727 = vmax.xlane.f32.xlu1 %v3726_v59  ;;  %v3735_v26 = vsel %vm645_vm5, %v9983_v23, -inf }
 0xde4   :  { %v3729_v9 = vsel %vm626_vm4, %v3714_v3, -inf  ;;  %v9981_v7 = vadd.f32 %v3708_v28, %v3701_v51 }
 0xde5   :  { %3730 = vmax.xlane.f32.xlu0 %v3729_v9 }
 0xde6   :  { %v7610_v30 = vpop.f32.mrb[128].mxu0  ;;  %v3732_v24 = vsel %vm626_vm4, %v9981_v7, -inf }
 0xde7   :  { %v4039_v47 = vpop.f32.mrb[129].mxu0  ;;  %3733 = vmax.xlane.f32.xlu1 %v3732_v24  ;;  %v4048_v58 = vadd.f32 %v7610_v30, %v6459_v61 }
 0xde8   :  { %v7611_v11 = vpop.f32.mrb[130].mxu0  ;;  %v4040_v12 = vadd.f32 %v6459_v61, %v4039_v47 }
 0xde9   :  { %v4051_v13 = vadd.f32 %v7611_v11, %v6459_v61  ;;  %3736 = vmax.xlane.f32.xlu0 %v3735_v26  ;;  %v4042_v32 = vpop.f32.mrb[131].mxu0  ;;  %v8200_v11 = vld [vmem:[%s10884_s21 + $0x30] sm:$0xff]  }
 0xdea   :  { %v4043_v39 = vadd.f32 %v6459_v61, %v4042_v32  ;;  %7592 = vmatprep.subr.bf16.mxu1 %v8200_v11 }
 0xdeb   :  { %v4161_v4 = vpack.c.bf16 %v4051_v13, %v4048_v58 }
 0xdec   :  { %v4160_v50 = vpack.c.bf16 %v4043_v39, %v4040_v12 }
 0xded   :  { %v4180_v41 = vsel %vm516_vm2, %v4161_v4, 0 }
 0xdee   :  { %v7614_v8 = vpop.f32.mrb[132].mxu0  ;;  %8160 = vmatprep.subr.msk.bf16.mxu0 %vm516_vm2, %v4160_v50  ;;  %v4177_v42 = vsel %vm516_vm2, %v4160_v50, 0 }
 0xdef   :  { %v4055_v29 = vpop.f32.mrb[133].mxu0  ;;  %7629 = vmatpush3.bf16.xpose.msra.mxu0 %v4177_v42  ;;  %v4064_v60 = vadd.f32 %v7614_v8, %v6459_v61 }
 0xdf0   :  { %v7615_v49 = vpop.f32.mrb[134].mxu0  ;;  %8161 = vmatprep.subr.msk.bf16.mxu0 %vm516_vm2, %v4161_v4  ;;  %v4056_v55 = vadd.f32 %v6459_v61, %v4055_v29 }
 0xdf1   :  { %v4058_v15 = vpop.f32.mrb[135].mxu0  ;;  %v4163_v63 = vpack.c.bf16 %v4064_v60, %v4064_v60 }
 0xdf2   :  { %v4059_v40 = vadd.f32 %v6459_v61, %v4058_v15 }
 0xdf3   :  { %v4186_v5 = vsel %vm516_vm2, %v4163_v63, 0 }
 0xdf4   :  { %v4162_v38 = vpack.c.bf16 %v4059_v40, %v4056_v55 }
 0xdf6   :  { %v4183_v43 = vsel %vm516_vm2, %v4162_v38, 0 }
 0xdf7   :  { %7631 = vmatpush3.bf16.xpose.msra.mxu0 %v4180_v41 }
 0xdf8   :  { %8162 = vmatprep.subr.msk.bf16.mxu0 %vm516_vm2, %v4162_v38 }
 0xdff   :  { %7633 = vmatpush3.bf16.xpose.msra.mxu0 %v4183_v43  ;;  %v8201_v43 = vld [vmem:[%s10884_s21 + $0x38] sm:$0xff]  }
 0xe00   :  { %8163 = vmatprep.subr.msk.bf16.mxu0 %vm516_vm2, %v4163_v63 }
 0xe07   :  { %7635 = vmatpush3.bf16.xpose.msra.mxu0 %v4186_v5 }
 0xe08   :  { %8068 = vmatprep.subr.bf16.mxu0 %v8445_v54 }
 0xe6a   :  { %v3719_v6 = vpop.xlane.xlu0 %3718 }
 0xe6b   :  { %v3738_v48 = vsub.f32 %v9952_v33, %v3719_v6 }
 0xe6c   :  { %v3722_v45 = vpop.xlane.xlu1 %3721 }
 0xe6d   :  { %v3745_v56 = vmul.f32 1.442695, %v3738_v48  ;;  %v3739_v37 = vsub.f32 %v9959_v35, %v3722_v45 }
 0xe6e   :  { %v3725_v53 = vpop.xlane.xlu0 %3724 }
 0xe6f   :  { %8318 = vpow2.f32 %v3745_v56  ;;  %v3747_v52 = vmul.f32 1.442695, %v3739_v37  ;;  %v3740_v27 = vsub.f32 %v9961_v18, %v3725_v53  ;;  %v8202_v37 = vld [vmem:[%s10884_s21 + $0x50] sm:$0xff]  }
 0xe70   :  { %v3728_v34 = vpop.xlane.xlu1 %3727 }
 0xe71   :  { %8320 = vpow2.f32 %v3747_v52  ;;  %v3749_v57 = vmul.f32 1.442695, %v3740_v27  ;;  %v3741_v46 = vsub.f32 %v9965_v2, %v3728_v34  ;;  %v8203_v52 = vld [vmem:[%s10884_s21 + $0x58] sm:$0xff]  }
 0xe72   :  { %v3731_v25 = vpop.xlane.xlu0 %3730 }
 0xe73   :  { %8322 = vpow2.f32 %v3749_v57  ;;  %v3751_v31 = vmul.f32 1.442695, %v3741_v46  ;;  %v3742_v17 = vsub.f32 %v3714_v3, %v3731_v25 }
 0xe74   :  { %v3734_v20 = vpop.xlane.xlu1 %3733 }
 0xe75   :  { %8324 = vpow2.f32 %v3751_v31  ;;  %v3753_v33 = vmul.f32 1.442695, %v3742_v17  ;;  %v3743_v36 = vsub.f32 %v9981_v7, %v3734_v20 }
 0xe76   :  { %v3737_v35 = vpop.xlane.xlu0 %3736 }
 0xe77   :  { %8326 = vpow2.f32 %v3753_v33  ;;  %v3755_v22 = vmul.f32 1.442695, %v3743_v36  ;;  %v3744_v19 = vsub.f32 %v9983_v23, %v3737_v35  ;;  %v6447_v33 = vld [vmem:[%s10859_s4 + $0x3] ss:$0 sm:$0xff] }
 0xe79   :  { %v8319_v18 = vpop.eup %8318  ;;  %8328 = vpow2.f32 %v3755_v22  ;;  %v3757_v16 = vmul.f32 1.442695, %v3744_v19 }
 0xe7a   :  { %v3759_v28 = vsel %vm626_vm4, %v8319_v18, 0.0 }
 0xe7b   :  { %v8321_v2 = vpop.eup %8320  ;;  %8330 = vpow2.f32 %v3757_v16  ;;  %3760 = vadd.xlane.f32.xlu1 %v3759_v28 }
 0xe7c   :  { %v3762_v14 = vsel %vm626_vm4, %v8321_v2, 0.0 }
 0xe7d   :  { %v8323_v51 = vpop.eup %8322  ;;  %3763 = vadd.xlane.f32.xlu0 %v3762_v14 }
 0xe7e   :  { %v3765_v59 = vsel %vm626_vm4, %v8323_v51, 0.0 }
 0xe7f   :  { %v8325_v3 = vpop.eup %8324  ;;  %3766 = vadd.xlane.f32.xlu1 %v3765_v59 }
 0xe80   :  { %v3768_v9 = vsel %vm626_vm4, %v8325_v3, 0.0 }
 0xe81   :  { %v8327_v7 = vpop.eup %8326  ;;  %3769 = vadd.xlane.f32.xlu0 %v3768_v9 }
 0xe82   :  { %v3771_v23 = vsel %vm626_vm4, %v8327_v7, 0.0 }
 0xe83   :  { %v8329_v30 = vpop.eup %8328  ;;  %3772 = vadd.xlane.f32.xlu1 %v3771_v23 }
 0xe84   :  { %v3774_v61 = vsel %vm626_vm4, %v8329_v30, 0.0 }
 0xe85   :  { %v8331_v24 = vpop.eup %8330  ;;  %3775 = vadd.xlane.f32.xlu0 %v3774_v61 }
 0xe86   :  { %v3777_v47 = vsel %vm645_vm5, %v8331_v24, 0.0 }
 0xe87   :  { %3778 = vadd.xlane.f32.xlu1 %v3777_v47 }
 0xf08   :  { %v3761_v26 = vpop.xlane.xlu1 %3760 }
 0xf09   :  { %8332 = vrcp.f32 %v3761_v26 }
 0xf0a   :  { %v3764_v58 = vpop.xlane.xlu0 %3763 }
 0xf0b   :  { %8334 = vrcp.f32 %v3764_v58 }
 0xf0c   :  { %v3767_v13 = vpop.xlane.xlu1 %3766 }
 0xf0d   :  { %8336 = vrcp.f32 %v3767_v13 }
 0xf0e   :  { %v3770_v32 = vpop.xlane.xlu0 %3769 }
 0xf0f   :  { %8338 = vrcp.f32 %v3770_v32 }
 0xf10   :  { %v3773_v12 = vpop.xlane.xlu1 %3772 }
 0xf11   :  { %8340 = vrcp.f32 %v3773_v12 }
 0xf12   :  { %v3776_v39 = vpop.xlane.xlu0 %3775 }
 0xf13   :  { %v8333_v4 = vpop.eup %8332  ;;  %8342 = vrcp.f32 %v3776_v39 }
 0xf14   :  { %v3779_v50 = vpop.xlane.xlu1 %3778  ;;  %v3787_v8 = vmul.f32 %v8333_v4, %v8319_v18 }
 0xf15   :  { %v8335_v42 = vpop.eup %8334  ;;  %8344 = vrcp.f32 %v3779_v50 }
 0xf16   :  { %v3788_v29 = vmul.f32 %v8335_v42, %v8321_v2  ;;  %6431 = vst.msk [vmem:[%s10861_s19 + $0x70] sm:$0xff] %vm626_vm4, %v3787_v8 }
 0xf17   :  { %v8337_v49 = vpop.eup %8336 }
 0xf18   :  { %v3789_v15 = vmul.f32 %v8337_v49, %v8323_v51  ;;  %6432 = vst.msk [vmem:[%s10861_s19 + $0x78] sm:$0xff] %vm626_vm4, %v3788_v29  ;;  %v3802_v55 = vpack.c.bf16 %v3788_v29, %v3787_v8 }
 0xf19   :  { %v8339_v40 = vpop.eup %8338 }
 0xf1a   :  { %6433 = vst.msk [vmem:[%s10861_s19 + $0x80] sm:$0xff] %vm626_vm4, %v3789_v15  ;;  %v3790_v38 = vmul.f32 %v8339_v40, %v8325_v3  ;;  %7584 = vmatprep.mubr.msk.bf16.mxu1 %vm626_vm4, %v3802_v55 }
 0xf1b   :  { %v8341_v41 = vpop.eup %8340 }
 0xf1c   :  { %6434 = vst.msk [vmem:[%s10861_s19 + $0x88] sm:$0xff] %vm626_vm4, %v3790_v38  ;;  %v3803_v60 = vpack.c.bf16 %v3790_v38, %v3789_v15  ;;  %v3791_v63 = vmul.f32 %v8341_v41, %v8327_v7 }
 0xf1d   :  { %v8343_v5 = vpop.eup %8342 }
 0xf1e   :  { %7585 = vmatmul.mubr.msk.bf16.vlgmr.msra.gmra.mrb[128].mxu1 %vm626_vm4, %v3803_v60  ;;  %v3792_v6 = vmul.f32 %v8343_v5, %v8329_v30  ;;  %6435 = vst.msk [vmem:[%s10861_s19 + $0x90] sm:$0xff] %vm626_vm4, %v3791_v63 }
 0xf1f   :  { %v8345_v48 = vpop.eup %8344  ;;  %7593 = vmatpush3.bf16.msra.mxu1 %v8200_v11  ;;  %v6471_v11 = vld [vmem:[%s10859_s4 + $0x5] ss:$0 sm:$0xff] }
 0xf20   :  { %6436 = vst.msk [vmem:[%s10861_s19 + $0x98] sm:$0xff] %vm626_vm4, %v3792_v6  ;;  %v3804_v45 = vpack.c.bf16 %v3792_v6, %v3791_v63  ;;  %v3793_v56 = vmul.f32 %v8345_v48, %v8331_v24  ;;  %7594 = vmatprep.subr.bf16.mxu1 %v8201_v43  ;;  %v6482_v6 = vld [vmem:[%s10860_s5 + $0x38] sm:$0xff] }
 0xf22   :  { %7588 = vmatprep.mubr.msk.bf16.mxu1 %vm626_vm4, %v3804_v45  ;;  %6437 = vst.msk [vmem:[%s10861_s19 + $0xa0] sm:$0x1] %vm645_vm5, %v3793_v56  ;;  %v3805_v53 = vpack.c.bf16 %v3793_v56, %v3793_v56 }
 0xf23   :  { %7595 = vmatpush3.bf16.msra.mxu1 %v8201_v43 }
 0xf24   :  { %7616 = vmatprep.subr.bf16.mxu1 %v8202_v37 }
 0xf26   :  { %7589 = vmatmul.mubr.msk.bf16.gmra.mrb[132].mxu1 %vm626_vm4, %v3805_v53  ;;  %v6483_v53 = vld [vmem:[%s10860_s5 + $0x40] sm:$0xff] }
 0xf27   :  { %7596 = vmatprep.mubr.msk.bf16.mxu1 %vm107_vm0, %v9733_v0 }
 0xf2e   :  { %7597 = vmatmul.mubr.msk.bf16.vlgmr.msra.gmra.mrb[136].mxu1 %vm107_vm0, %v9739_v1 }
 0xf2f   :  { %7600 = vmatprep.mubr.msk.bf16.mxu1 %vm107_vm0, %v9746_v44  ;;  %7617 = vmatpush3.bf16.msra.mxu1 %v8202_v37 }
 0xf30   :  { %7618 = vmatprep.subr.bf16.mxu1 %v8203_v52 }
 0xf33   :  { %7619 = vmatpush3.bf16.msra.mxu1 %v8203_v52 }
 0xf36   :  { %7601 = vmatmul.mubr.msk.bf16.gmra.mrb[140].mxu1 %vm107_vm0, %v9750_v10 }
 0xf37   :  { %7620 = vmatprep.mubr.msk.bf16.mxu1 %vm107_vm0, %v9733_v0 }
 0xf3e   :  { %7621 = vmatmul.mubr.msk.bf16.vlgmr.msra.gmra.mrb[144].mxu1 %vm107_vm0, %v9739_v1 }
 0xf3f   :  { %7624 = vmatprep.mubr.msk.bf16.mxu1 %vm107_vm0, %v9746_v44 }
 0xf46   :  { %7625 = vmatmul.mubr.msk.bf16.gmra.mrb[148].mxu1 %vm107_vm0, %v9750_v10 }
 0xff1   :  { %v10074_v27 = vpop.f32.mrb[128].mxu1 }
 0xff2   :  { %v10076_v34 = vpop.f32.mrb[129].mxu1 }
 0xff3   :  { %v10078_v57 = vpop.f32.mrb[130].mxu1 }
 0xff4   :  { %v3890_v46 = vpack.c.bf16 %v10078_v57, %v10074_v27  ;;  %v10082_v25 = vpop.f32.mrb[131].mxu1  ;;  %v8411_v57 = vld [vmem:[%s10883_s20 + $0x48] sm:$0xff] }
 0xff5   :  { %v3889_v0 = vpack.c.bf16 %v10082_v25, %v10076_v34 }
 0xff9   :  { %v10086_v1 = vpop.f32.mrb[132].mxu1 }
 0xffa   :  { %v10088_v44 = vpop.f32.mrb[133].mxu1 }
 0xffb   :  { %v7591_v31 = vpop.f32.mrb[134].mxu1 }
 0xffc   :  { %v10090_v10 = vpop.f32.mrb[135].mxu1 }
 0xffd   :  { %v3891_v17 = vpack.c.bf16 %v10090_v10, %v10088_v44 }
0x1001   :  { %v7598_v20 = vpop.f32.mrb[136].mxu1 }
0x1002   :  { %v3952_v36 = vpop.f32.mrb[137].mxu1  ;;  %v3961_v22 = vadd.f32 %v7598_v20, %v6447_v33 }
0x1003   :  { %v7599_v35 = vpop.f32.mrb[138].mxu1  ;;  %v3953_v16 = vadd.f32 %v6447_v33, %v3952_v36 }
0x1004   :  { %v3964_v19 = vadd.f32 %v7599_v35, %v6447_v33  ;;  %v3955_v18 = vpop.f32.mrb[139].mxu1 }
0x1005   :  { %v3956_v28 = vadd.f32 %v6447_v33, %v3955_v18 }
0x1006   :  { %v4157_v2 = vpack.c.bf16 %v3964_v19, %v3961_v22 }
0x1007   :  { %v4156_v14 = vpack.c.bf16 %v3956_v28, %v3953_v16 }
0x1009   :  { %v7602_v51 = vpop.f32.mrb[140].mxu1  ;;  %7636 = vmatprep.mubr.msk.bf16.mxu0 %vm516_vm2, %v4156_v14 }
0x100a   :  { %v3968_v59 = vpop.f32.mrb[141].mxu1  ;;  %7637 = vmatmul.mubr.msk.bf16.vlgmr.msra.gmra.mrb[136].mxu0 %vm516_vm2, %v4157_v2  ;;  %v3977_v9 = vadd.f32 %v7602_v51, %v6447_v33  ;;  %v6486_v2 = vld [vmem:[%s10860_s5 + $0x58] sm:$0xff] }
0x100b   :  { %v7603_v3 = vpop.f32.mrb[142].mxu1  ;;  %v3969_v23 = vadd.f32 %v6447_v33, %v3968_v59 }
0x100c   :  { %v3971_v7 = vpop.f32.mrb[143].mxu1  ;;  %v4159_v24 = vpack.c.bf16 %v3977_v9, %v3977_v9 }
0x100d   :  { %v3972_v30 = vadd.f32 %v6447_v33, %v3971_v7  ;;  %v6485_v33 = vld [vmem:[%s10860_s5 + $0x50] sm:$0xff]  ;;  %v6487_v7 = vld [vmem:[%s10860_s5 + $0x60] sm:$0xff] }
0x100f   :  { %v4158_v61 = vpack.c.bf16 %v3972_v30, %v3969_v23  ;;  %v6488_v23 = vld [vmem:[%s10860_s5 + $0x68] sm:$0x1] }
0x1011   :  { %v7622_v47 = vpop.f32.mrb[144].mxu1  ;;  %7640 = vmatprep.mubr.msk.bf16.mxu0 %vm516_vm2, %v4158_v61 }
0x1012   :  { %v4126_v26 = vpop.f32.mrb[145].mxu1  ;;  %7641 = vmatmul.mubr.msk.bf16.gmra.mrb[140].mxu0 %vm516_vm2, %v4159_v24  ;;  %v4135_v13 = vadd.f32 %v7622_v47, %v6471_v11 }
0x1013   :  { %v7623_v58 = vpop.f32.mrb[146].mxu1  ;;  %7694 = vmatprep.mubr.msk.f32.mxu0 %vm8446_vm6, %v8447_v62  ;;  %v4127_v39 = vadd.f32 %v6471_v11, %v4126_v26 }
0x1014   :  { %v4138_v32 = vadd.f32 %v7623_v58, %v6471_v11  ;;  %v4129_v12 = vpop.f32.mrb[147].mxu1 }
0x1015   :  { %v4130_v4 = vadd.f32 %v6471_v11, %v4129_v12 }
0x1016   :  { %v4363_v50 = vpack.c.bf16 %v4138_v32, %v4135_v13 }
0x1017   :  { %v4362_v8 = vpack.c.bf16 %v4130_v4, %v4127_v39 }
0x1019   :  { %v7626_v42 = vpop.f32.mrb[148].mxu1  ;;  %7644 = vmatprep.subr.bf16.mxu1 %v4362_v8 }
0x101a   :  { %v4151_v29 = vadd.f32 %v7626_v42, %v6471_v11  ;;  %v4142_v49 = vpop.f32.mrb[149].mxu1  ;;  %7645 = vmatpush3.bf16.msra.mxu1 %v4362_v8 }
0x101b   :  { %v7627_v15 = vpop.f32.mrb[150].mxu1  ;;  %7646 = vmatprep.subr.bf16.mxu1 %v4363_v50  ;;  %v4143_v38 = vadd.f32 %v6471_v11, %v4142_v49 }
0x101c   :  { %v4145_v55 = vpop.f32.mrb[151].mxu1  ;;  %v4365_v40 = vpack.c.bf16 %v4151_v29, %v4151_v29 }
0x101d   :  { %v4146_v41 = vadd.f32 %v6471_v11, %v4145_v55 }
0x101e   :  { %7647 = vmatpush3.bf16.msra.mxu1 %v4363_v50  ;;  %v4379_v63 = vand.u32 %v4365_v40, %v8702_v21  ;;  %v6484_v21 = vld [vmem:[%s10860_s5 + $0x48] sm:$0xff] }
0x101f   :  { %v4364_v60 = vpack.c.bf16 %v4146_v41, %v4143_v38 }
0x1021   :  { %7648 = vmatprep.subr.bf16.mxu1 %v4364_v60 }
0x1022   :  { %7649 = vmatpush3.bf16.msra.mxu1 %v4364_v60 }
0x1023   :  { %7650 = vmatprep.subr.bf16.mxu1 %v4379_v63 }
0x1026   :  { %7651 = vmatpush3.bf16.msra.mxu1 %v4379_v63 }
0x10dd   :  { %v7638_v43 = vpop.f32.mrb[136].mxu0 }
0x10de   :  { %v4222_v5 = vpop.f32.mrb[137].mxu0  ;;  %v4254_v48 = vmul.f32 0.25, %v7638_v43 }
0x10df   :  { %v4252_v45 = vmul.f32 0.25, %v4222_v5  ;;  %v7639_v56 = vpop.f32.mrb[138].mxu0 }
0x10e0   :  { %v4225_v37 = vpop.f32.mrb[139].mxu0  ;;  %v4255_v52 = vmul.f32 0.25, %v7639_v56  ;;  %v4268_v22 = vadd.f32 %v6484_v21, %v4254_v48 }
0x10e1   :  { %v4253_v31 = vmul.f32 0.25, %v4225_v37  ;;  %v4266_v20 = vadd.f32 %v6482_v6, %v4252_v45 }
0x10e2   :  { %v4269_v16 = vadd.f32 %v6485_v33, %v4255_v52  ;;  %v4279_v3 = vsel %vm626_vm4, %v4268_v22, -inf }
0x10e3   :  { %v4273_v36 = vsel %vm626_vm4, %v4266_v20, -inf  ;;  %v4267_v35 = vadd.f32 %v6483_v53, %v4253_v31 }
0x10e4   :  { %4274 = vmax.xlane.f32.xlu0 %v4273_v36  ;;  %v4282_v61 = vsel %vm626_vm4, %v4269_v16, -inf }
0x10e5   :  { %v7642_v19 = vpop.f32.mrb[140].mxu0  ;;  %v4276_v18 = vsel %vm626_vm4, %v4267_v35, -inf }
0x10e6   :  { %4277 = vmax.xlane.f32.xlu1 %v4276_v18  ;;  %v4238_v28 = vpop.f32.mrb[141].mxu0  ;;  %v4258_v14 = vmul.f32 0.25, %v7642_v19 }
0x10e7   :  { %v4256_v51 = vmul.f32 0.25, %v4238_v28  ;;  %v7643_v59 = vpop.f32.mrb[142].mxu0  ;;  %v8204_v28 = vld [vmem:[%s10862_s6 + $0x8] sm:$0xff]  }
0x10e8   :  { %4280 = vmax.xlane.f32.xlu0 %v4279_v3  ;;  %v4241_v9 = vpop.f32.mrb[143].mxu0  ;;  %v4272_v26 = vadd.f32 %v6488_v23, %v4258_v14  ;;  %7660 = vmatprep.subr.bf16.mxu1 %v8204_v28 }
0x10e9   :  { %v4257_v30 = vmul.f32 0.25, %v4241_v9  ;;  %v4270_v24 = vadd.f32 %v6486_v2, %v4256_v51 }
0x10ea   :  { %4283 = vmax.xlane.f32.xlu1 %v4282_v61  ;;  %v4291_v13 = vsel %vm645_vm5, %v4272_v26, -inf }
0x10eb   :  { %v4285_v47 = vsel %vm626_vm4, %v4270_v24, -inf  ;;  %v4271_v11 = vadd.f32 %v6487_v7, %v4257_v30 }
0x10ec   :  { %4286 = vmax.xlane.f32.xlu0 %v4285_v47 }
0x10ed   :  { %v4288_v58 = vsel %vm626_vm4, %v4271_v11, -inf }
0x10ee   :  { %4289 = vmax.xlane.f32.xlu1 %v4288_v58 }
0x10f0   :  { %4292 = vmax.xlane.f32.xlu0 %v4291_v13 }
0x1171   :  { %v4275_v32 = vpop.xlane.xlu0 %4274 }
0x1172   :  { %v4294_v12 = vsub.f32 %v4266_v20, %v4275_v32 }
0x1173   :  { %v4278_v39 = vpop.xlane.xlu1 %4277 }
0x1174   :  { %v4301_v4 = vmul.f32 1.442695, %v4294_v12  ;;  %v4295_v50 = vsub.f32 %v4267_v35, %v4278_v39 }
0x1175   :  { %v4281_v8 = vpop.xlane.xlu0 %4280 }
0x1176   :  { %8346 = vpow2.f32 %v4301_v4  ;;  %v4303_v42 = vmul.f32 1.442695, %v4295_v50  ;;  %v4296_v29 = vsub.f32 %v4268_v22, %v4281_v8 }
0x1177   :  { %v4284_v49 = vpop.xlane.xlu1 %4283 }
0x1178   :  { %8348 = vpow2.f32 %v4303_v42  ;;  %v4305_v15 = vmul.f32 1.442695, %v4296_v29  ;;  %v4297_v55 = vsub.f32 %v4269_v16, %v4284_v49 }
0x1179   :  { %v4287_v40 = vpop.xlane.xlu0 %4286 }
0x117a   :  { %8350 = vpow2.f32 %v4305_v15  ;;  %v4307_v38 = vmul.f32 1.442695, %v4297_v55  ;;  %v4298_v41 = vsub.f32 %v4270_v24, %v4287_v40  ;;  %v8205_v15 = vld [vmem:[%s10862_s6] sm:$0xff]  }
0x117b   :  { %v4290_v60 = vpop.xlane.xlu1 %4289 }
0x117c   :  { %8352 = vpow2.f32 %v4307_v38  ;;  %v4309_v63 = vmul.f32 1.442695, %v4298_v41  ;;  %v4299_v43 = vsub.f32 %v4271_v11, %v4290_v60 }
0x117d   :  { %v4293_v5 = vpop.xlane.xlu0 %4292 }
0x117e   :  { %8354 = vpow2.f32 %v4309_v63  ;;  %v4311_v6 = vmul.f32 1.442695, %v4299_v43  ;;  %v4300_v48 = vsub.f32 %v4272_v26, %v4293_v5 }
0x1180   :  { %v8347_v45 = vpop.eup %8346  ;;  %8356 = vpow2.f32 %v4311_v6  ;;  %v4313_v56 = vmul.f32 1.442695, %v4300_v48 }
0x1181   :  { %v4315_v37 = vsel %vm626_vm4, %v8347_v45, 0.0 }
0x1182   :  { %v8349_v53 = vpop.eup %8348  ;;  %8358 = vpow2.f32 %v4313_v56  ;;  %4316 = vadd.xlane.f32.xlu1 %v4315_v37  ;;  %v3892_v37 = vpack.c.bf16 %v10086_v1, %v10086_v1  ;;  %v8412_v1 = vld [vmem:[%s10883_s20 + $0x38] sm:$0xff] }
0x1183   :  { %v4318_v21 = vsel %vm626_vm4, %v8349_v53, 0.0 }
0x1184   :  { %v8351_v52 = vpop.eup %8350  ;;  %4319 = vadd.xlane.f32.xlu0 %v4318_v21  ;;  %v8413_v21 = vld [vmem:[%s10883_s20 + $0x50] sm:$0xff] }
0x1185   :  { %v4321_v31 = vsel %vm626_vm4, %v8351_v52, 0.0 }
0x1186   :  { %v8353_v20 = vpop.eup %8352  ;;  %4322 = vadd.xlane.f32.xlu1 %v4321_v31 }
0x1187   :  { %v4324_v33 = vsel %vm626_vm4, %v8353_v20, 0.0 }
0x1188   :  { %v8355_v36 = vpop.eup %8354  ;;  %4325 = vadd.xlane.f32.xlu0 %v4324_v33 }
0x1189   :  { %v4327_v35 = vsel %vm626_vm4, %v8355_v36, 0.0 }
0x118a   :  { %v8357_v22 = vpop.eup %8356  ;;  %4328 = vadd.xlane.f32.xlu1 %v4327_v35 }
0x118b   :  { %v4330_v19 = vsel %vm626_vm4, %v8357_v22, 0.0 }
0x118c   :  { %v8359_v18 = vpop.eup %8358  ;;  %4331 = vadd.xlane.f32.xlu0 %v4330_v19 }
0x118d   :  { %v4333_v16 = vsel %vm645_vm5, %v8359_v18, 0.0 }
0x118e   :  { %4334 = vadd.xlane.f32.xlu1 %v4333_v16 }
0x120f   :  { %v4317_v2 = vpop.xlane.xlu1 %4316 }
0x1210   :  { %8360 = vrcp.f32 %v4317_v2 }
0x1211   :  { %v4320_v14 = vpop.xlane.xlu0 %4319 }
0x1212   :  { %8362 = vrcp.f32 %v4320_v14 }
0x1213   :  { %v4323_v51 = vpop.xlane.xlu1 %4322 }
0x1214   :  { %8364 = vrcp.f32 %v4323_v51 }
0x1215   :  { %v4326_v59 = vpop.xlane.xlu0 %4325 }
0x1216   :  { %8366 = vrcp.f32 %v4326_v59 }
0x1217   :  { %v4329_v3 = vpop.xlane.xlu1 %4328 }
0x1218   :  { %8368 = vrcp.f32 %v4329_v3 }
0x1219   :  { %v4332_v9 = vpop.xlane.xlu0 %4331 }
0x121a   :  { %v8361_v7 = vpop.eup %8360  ;;  %8370 = vrcp.f32 %v4332_v9 }
0x121b   :  { %v4335_v23 = vpop.xlane.xlu1 %4334  ;;  %v4343_v30 = vmul.f32 %v8361_v7, %v8347_v45  ;;  %v8416_v7 = vld [vmem:[%s10883_s20 + $0x58] sm:$0xff] }
0x121c   :  { %v8363_v61 = vpop.eup %8362  ;;  %8372 = vrcp.f32 %v4335_v23 }
0x121d   :  { %v4344_v24 = vmul.f32 %v8363_v61, %v8349_v53  ;;  %6489 = vst.msk [vmem:[%s10861_s19 + $0xa8] sm:$0xff] %vm626_vm4, %v4343_v30  ;;  %v8417_v61 = vld [vmem:[%s10883_s20 + $0x60] sm:$0xff] }
0x121e   :  { %v8365_v47 = vpop.eup %8364 }
0x121f   :  { %v4345_v11 = vmul.f32 %v8365_v47, %v8351_v52  ;;  %6490 = vst.msk [vmem:[%s10861_s19 + $0xb0] sm:$0xff] %vm626_vm4, %v4344_v24  ;;  %v4358_v26 = vpack.c.bf16 %v4344_v24, %v4343_v30 }
0x1220   :  { %v8367_v58 = vpop.eup %8366 }
0x1221   :  { %6491 = vst.msk [vmem:[%s10861_s19 + $0xb8] sm:$0xff] %vm626_vm4, %v4345_v11  ;;  %v4346_v13 = vmul.f32 %v8367_v58, %v8353_v20  ;;  %7652 = vmatprep.mubr.msk.bf16.mxu1 %vm626_vm4, %v4358_v26  ;;  %v8414_v20 = vld [vmem:[%s10883_s20 + $0x40] sm:$0xff]  ;;  %v8418_v26 = vld [vmem:[%s10883_s20 + $0x68] sm:$0x1] }
0x1222   :  { %v8369_v32 = vpop.eup %8368 }
0x1223   :  { %6492 = vst.msk [vmem:[%s10861_s19 + $0xc0] sm:$0xff] %vm626_vm4, %v4346_v13  ;;  %v4359_v12 = vpack.c.bf16 %v4346_v13, %v4345_v11  ;;  %v4347_v39 = vmul.f32 %v8369_v32, %v8355_v36  ;;  %v8415_v36 = vld [vmem:[%s10863_s7] ss:$0 sm:$0xff] }
0x1224   :  { %v8371_v4 = vpop.eup %8370 }
0x1225   :  { %7653 = vmatmul.mubr.msk.bf16.vlgmr.msra.gmra.mrb[152].mxu1 %vm626_vm4, %v4359_v12  ;;  %v4348_v50 = vmul.f32 %v8371_v4, %v8357_v22  ;;  %6493 = vst.msk [vmem:[%s10861_s19 + $0xc8] sm:$0xff] %vm626_vm4, %v4347_v39  ;;  %v4636_v12 = vld [vmem:[%s10864_s8] sm:$0xff]  ;;  %v4637_v4 = vld [vmem:[%s10864_s8 + $0x8] sm:$0xff] }
0x1226   :  { %v8373_v8 = vpop.eup %8372  ;;  %7661 = vmatpush3.bf16.msra.mxu1 %v8204_v28 }
0x1227   :  { %6494 = vst.msk [vmem:[%s10861_s19 + $0xd0] sm:$0xff] %vm626_vm4, %v4348_v50  ;;  %v4360_v42 = vpack.c.bf16 %v4348_v50, %v4347_v39  ;;  %v4349_v29 = vmul.f32 %v8373_v8, %v8359_v18  ;;  %7670 = vmatprep.subr.bf16.mxu1 %v8205_v15  ;;  %v6535_v39 = vld [vmem:[%s10864_s8 + $0x70] sm:$0xff]  ;;  %v6536_v50 = vld [vmem:[%s10864_s8 + $0x78] sm:$0xff] }
0x1228   :  { %v4638_v8 = vld [vmem:[%s10864_s8 + $0x10] sm:$0xff] }
0x1229   :  { %7656 = vmatprep.mubr.msk.bf16.mxu1 %vm626_vm4, %v4360_v42  ;;  %6495 = vst.msk [vmem:[%s10861_s19 + $0xd8] sm:$0x1] %vm645_vm5, %v4349_v29  ;;  %v4361_v49 = vpack.c.bf16 %v4349_v29, %v4349_v29  ;;  %v6537_v42 = vld [vmem:[%s10864_s8 + $0x80] sm:$0xff]  ;;  %v4639_v29 = vld [vmem:[%s10864_s8 + $0x18] sm:$0xff] }
0x122d   :  { %7657 = vmatmul.mubr.msk.bf16.gmra.mrb[156].mxu1 %vm626_vm4, %v4361_v49  ;;  %v6538_v49 = vld [vmem:[%s10864_s8 + $0x88] sm:$0xff] }
0x12f8   :  { %v7654_v55 = vpop.f32.mrb[152].mxu1 }
0x12f9   :  { %v4415_v40 = vpop.f32.mrb[153].mxu1 }
0x12fa   :  { %v7655_v38 = vpop.f32.mrb[154].mxu1 }
0x12fb   :  { %v4446_v41 = vpack.c.bf16 %v7655_v38, %v7654_v55  ;;  %v4418_v60 = vpop.f32.mrb[155].mxu1  ;;  %v6539_v55 = vld [vmem:[%s10864_s8 + $0x90] sm:$0xff]  ;;  %v6540_v38 = vld [vmem:[%s10864_s8 + $0x98] sm:$0xff] }
0x12fc   :  { %v4445_v63 = vpack.c.bf16 %v4418_v60, %v4415_v40  ;;  %v4641_v40 = vld [vmem:[%s10864_s8 + $0x28] sm:$0xff]  ;;  %v6541_v60 = vld [vmem:[%s10864_s8 + $0xa0] sm:$0x1] }
0x12fe   :  { %7662 = vmatprep.mubr.msk.bf16.mxu1 %vm516_vm2, %v4445_v63  ;;  %v6520_v63 = vld [vmem:[%s10864_s8 + $0x38] sm:$0xff] }
0x12ff   :  { %7663 = vmatmul.mubr.msk.bf16.vlgmr.msra.gmra.mrb[160].mxu1 %vm516_vm2, %v4446_v41  ;;  %v4642_v41 = vld [vmem:[%s10864_s8 + $0x30] sm:$0x1] }
0x1300   :  { %v7658_v43 = vpop.f32.mrb[156].mxu1  ;;  %7671 = vmatpush3.bf16.msra.mxu1 %v8205_v15  ;;  %v4640_v15 = vld [vmem:[%s10864_s8 + $0x20] sm:$0xff] }
0x1301   :  { %v4431_v5 = vpop.f32.mrb[157].mxu1  ;;  %8086 = vmatprep.subr.bf16.mxu1 %v8445_v54  ;;  %v4448_v56 = vpack.c.bf16 %v7658_v43, %v7658_v43  ;;  %v6565_v43 = vld [vmem:[%s10864_s8 + $0x118] sm:$0xff] }
0x1302   :  { %v7659_v6 = vpop.f32.mrb[158].mxu1 }
0x1303   :  { %v4434_v48 = vpop.f32.mrb[159].mxu1  ;;  %v6566_v6 = vld [vmem:[%s10864_s8 + $0x120] sm:$0xff] }
0x1304   :  { %v4447_v45 = vpack.c.bf16 %v4434_v48, %v4431_v5  ;;  %v6521_v5 = vld [vmem:[%s10864_s8 + $0x40] sm:$0xff]  ;;  %v6522_v48 = vld [vmem:[%s10864_s8 + $0x48] sm:$0xff] }
0x1306   :  { %7666 = vmatprep.mubr.msk.bf16.mxu1 %vm516_vm2, %v4447_v45  ;;  %v6567_v45 = vld [vmem:[%s10864_s8 + $0x128] sm:$0xff] }
0x1307   :  { %7667 = vmatmul.mubr.msk.bf16.gmra.mrb[164].mxu1 %vm516_vm2, %v4448_v56  ;;  %v6523_v56 = vld [vmem:[%s10864_s8 + $0x50] sm:$0xff] }
0x1308   :  { %7672 = vmatprep.mubr.msk.bf16.mxu1 %vm516_vm2, %v3889_v0 }
0x130f   :  { %7673 = vmatmul.mubr.msk.bf16.vlgmr.msra.gmra.mrb[160].mxu1 %vm516_vm2, %v3890_v46 }
0x1310   :  { %7676 = vmatprep.mubr.msk.bf16.mxu1 %vm516_vm2, %v3891_v17 }
0x1317   :  { %7677 = vmatmul.mubr.msk.bf16.gmra.mrb[168].mxu1 %vm516_vm2, %v3892_v37  ;;  %v6568_v37 = vld [vmem:[%s10864_s8 + $0x130] sm:$0xff] }
0x1318   :  { %7764 = vmatprep.mubr.msk.f32.mxu1 %vm8446_vm6, %v8447_v62 }
0x13da   :  { %v7668_v34 = vpop.f32.mrb[164].mxu1 }
0x13db   :  { %v4519_v25 = vpop.f32.mrb[165].mxu1 }
0x13dc   :  { %v7669_v0 = vpop.f32.mrb[166].mxu1 }
0x13dd   :  { %v4522_v53 = vpop.f32.mrb[167].mxu1  ;;  %v6569_v0 = vld [vmem:[%s10864_s8 + $0x138] sm:$0xff] }
0x13e2   :  { %v7674_v27 = vpop.f32.mrb[160].mxu1 }
0x13e3   :  { %v4617_v46 = vadd.f32 %v8411_v57, %v7674_v27  ;;  %v4585_v44 = vpop.f32.mrb[161].mxu1  ;;  %v6570_v27 = vld [vmem:[%s10864_s8 + $0x140] sm:$0xff]  ;;  %v6526_v57 = vld [vmem:[%s10864_s8 + $0x68] sm:$0x1] }
0x13e4   :  { %v4615_v10 = vadd.f32 %v8412_v1, %v4585_v44  ;;  %v7675_v17 = vpop.f32.mrb[162].mxu1  ;;  %v6550_v44 = vld [vmem:[%s10864_s8 + $0xa8] sm:$0xff] }
0x13e5   :  { %v4618_v52 = vadd.f32 %v8413_v21, %v7675_v17  ;;  %v4588_v31 = vpop.f32.mrb[163].mxu1  ;;  %v10217_v35 = vadd.f32 %v8415_v36, %v4617_v46  ;;  %v6571_v46 = vld [vmem:[%s10864_s8 + $0x148] sm:$0x1]  ;;  %v6596_v17 = vld [vmem:[%s10864_s8 + $0x190] sm:$0xff]  ;;  %v6552_v21 = vld [vmem:[%s10864_s8 + $0xb8] sm:$0xff] }
0x13e6   :  { %v4616_v33 = vadd.f32 %v8414_v20, %v4588_v31  ;;  %v10221_v19 = vadd.f32 %v8415_v36, %v4615_v10  ;;  %v6595_v1 = vld [vmem:[%s10864_s8 + $0x188] sm:$0xff]  ;;  %v6551_v10 = vld [vmem:[%s10864_s8 + $0xb0] sm:$0xff]  ;;  %v6597_v31 = vld [vmem:[%s10864_s8 + $0x198] sm:$0xff] }
0x13e7   :  { %v10219_v22 = vadd.f32 %v8415_v36, %v4618_v52  ;;  %v8420_v52 = vld [vmem:[%s10868_s14 + $0x8] sm:$0xff]   ;;  %v6553_v20 = vld [vmem:[%s10864_s8 + $0xc0] sm:$0xff] }
0x13e8   :  { %v10223_v18 = vadd.f32 %v8415_v36, %v4616_v33  ;;  %v6598_v33 = vld [vmem:[%s10864_s8 + $0x1a0] sm:$0xff] }
0x13e9   :  { %v10227_v16 = vpack.c.bf16 %v10219_v22, %v10217_v35 }
0x13ea   :  { %v10231_v28 = vpack.c.bf16 %v10223_v18, %v10221_v19  ;;  %v7678_v2 = vpop.f32.mrb[168].mxu1 }
0x13eb   :  { %v4610_v14 = vadd.f32 %v7678_v2, %v7668_v34  ;;  %v4601_v51 = vpop.f32.mrb[169].mxu1  ;;  %v6524_v34 = vld [vmem:[%s10864_s8 + $0x58] sm:$0xff]  ;;  %v6599_v2 = vld [vmem:[%s10864_s8 + $0x1a8] sm:$0xff] }
0x13ec   :  { %v4602_v59 = vadd.f32 %v4601_v51, %v4519_v25  ;;  %v7679_v3 = vpop.f32.mrb[170].mxu1  ;;  %8070 = vmatpush3.bf16.msra.mxu0 %v10231_v28  ;;  %8088 = vmatpush3.bf16.msra.mxu1 %v10231_v28  ;;  %v8419_v25 = vld [vmem:[%s10868_s14] sm:$0xff]   ;;  %v6600_v51 = vld [vmem:[%s10864_s8 + $0x1b0] sm:$0xff] }
0x13ed   :  { %v4604_v9 = vpop.f32.mrb[171].mxu1  ;;  %8071 = vmatprep.subr.bf16.mxu0 %v8445_v54  ;;  %8089 = vmatprep.subr.bf16.mxu1 %v8445_v54  ;;  %v4621_v58 = vadd.f32 %v8418_v26, %v4610_v14  ;;  %v6555_v14 = vld [vmem:[%s10864_s8 + $0xd0] sm:$0xff]  ;;  %v6601_v3 = vld [vmem:[%s10864_s8 + $0x1b8] sm:$0x1]  ;;  %v6611_v26 = vld [vmem:[%s10864_s8 + $0x1c8] sm:$0xff] }
0x13ee   :  { %v4619_v23 = vadd.f32 %v8416_v7, %v4602_v59  ;;  %v4605_v30 = vadd.f32 %v4604_v9, %v4522_v53  ;;  %v6525_v53 = vld [vmem:[%s10864_s8 + $0x60] sm:$0xff]  ;;  %v6556_v59 = vld [vmem:[%s10864_s8 + $0xd8] sm:$0x1]  ;;  %v6580_v9 = vld [vmem:[%s10864_s8 + $0x150] sm:$0xff] }
0x13ef   :  { %v10262_v32 = vadd.f32 %v8415_v36, %v4621_v58  ;;  %v6581_v7 = vld [vmem:[%s10864_s8 + $0x158] sm:$0xff]  ;;  %v8422_v58 = vld [vmem:[%s10871_s16 + $0x8] sm:$0xff]  }
0x13f0   :  { %v4620_v24 = vadd.f32 %v8417_v61, %v4605_v30  ;;  %8073 = vmatpush3.bf16.msra.mxu0 %v10227_v16  ;;  %8091 = vmatpush3.bf16.msra.mxu1 %v10227_v16  ;;  %v10247_v47 = vadd.f32 %v8415_v36, %v4619_v23  ;;  %v8421_v23 = vld [vmem:[%s10871_s16] sm:$0xff]   ;;  %v6585_v30 = vld [vmem:[%s10864_s8 + $0x178] sm:$0xff] }
0x13f1   :  { %8074 = vmatprep.subr.bf16.mxu0 %v8445_v54  ;;  %8092 = vmatprep.subr.bf16.mxu1 %v8445_v54  ;;  %v6586_v61 = vld [vmem:[%s10864_s8 + $0x180] sm:$0x1] }
0x13f2   :  { %v10249_v11 = vadd.f32 %v8415_v36, %v4620_v24  ;;  %v6554_v36 = vld [vmem:[%s10864_s8 + $0xc8] sm:$0xff]  ;;  %v6610_v24 = vld [vmem:[%s10864_s8 + $0x1c0] sm:$0xff] }
0x13f4   :  { %v10256_v13 = vpack.c.bf16 %v10249_v11, %v10247_v47 }
0x13f6   :  { %8076 = vmatpush3.bf16.msra.mxu0 %v10256_v13  ;;  %8094 = vmatpush3.bf16.msra.mxu1 %v10256_v13 }
0x13f7   :  { %7692 = vmatprep.subr.mxu0 %v8447_v62  ;;  %7762 = vmatprep.subr.mxu1 %v8447_v62 }
0x13fa   :  { %7693 = vmatpush3.msk.msra.mxu0 %vm732_vm3, %v10262_v32  ;;  %7763 = vmatpush3.msk.msra.mxu1 %vm732_vm3, %v10262_v32 }
0x13fb   :  { %7695 = vmatmul.mubr.msk.f32.vlgmr.msra.gmra.mrb[94].mxu0 %vm626_vm4, %v4636_v12  ;;  %8077 = vmatprep.subr.bf16.mxu0 %v8445_v54  ;;  %v8423_v12 = vld [vmem:[%s10871_s16 + $0x10] sm:$0xff]  }
0x13fc   :  { %7765 = vmatmul.mubr.msk.f32.vlgmr.msra.gmra.mrb[110].mxu1 %vm626_vm4, %v6535_v39  ;;  %8104 = vmatprep.subr.bf16.mxu1 %v8445_v54  ;;  %v6613_v39 = vld [vmem:[%s10864_s8 + $0x1d8] sm:$0xff] }
0x13fd   :  { %8079 = vmatpush3.bf16.msra.mxu0 %v10231_v28  ;;  %8106 = vmatpush3.bf16.msra.mxu1 %v10231_v28 }
0x13fe   :  { %7697 = vmatprep.mubr.msk.f32.mxu0 %vm8446_vm6, %v8447_v62  ;;  %7767 = vmatprep.mubr.msk.f32.mxu1 %vm8446_vm6, %v8447_v62 }
0x13ff   :  { %7698 = vmatmul.mubr.msk.f32.gmra.mrb[144].mxu0 %vm626_vm4, %v4637_v4  ;;  %8080 = vmatprep.subr.bf16.mxu0 %v8445_v54  ;;  %v8424_v4 = vld [vmem:[%s10871_s16 + $0x18] sm:$0xff]  }
0x1400   :  { %7768 = vmatmul.mubr.msk.f32.gmra.mrb[172].mxu1 %vm626_vm4, %v6536_v50  ;;  %8107 = vmatprep.subr.bf16.mxu1 %v8445_v54  ;;  %v6614_v50 = vld [vmem:[%s10864_s8 + $0x1e0] sm:$0xff] }
0x1401   :  { %8082 = vmatpush3.bf16.msra.mxu0 %v10227_v16  ;;  %8109 = vmatpush3.bf16.msra.mxu1 %v10227_v16 }
0x1402   :  { %7700 = vmatprep.mubr.msk.f32.mxu0 %vm8446_vm6, %v8447_v62  ;;  %7770 = vmatprep.mubr.msk.f32.mxu1 %vm8446_vm6, %v8447_v62 }
0x1403   :  { %7701 = vmatmul.mubr.msk.f32.gmra.mrb[146].mxu0 %vm626_vm4, %v4638_v8  ;;  %8083 = vmatprep.subr.bf16.mxu0 %v8445_v54  ;;  %v8425_v8 = vld [vmem:[%s10871_s16 + $0x20] sm:$0xff]  }
0x1404   :  { %7771 = vmatmul.mubr.msk.f32.gmra.mrb[174].mxu1 %vm626_vm4, %v6537_v42  ;;  %8110 = vmatprep.subr.bf16.mxu1 %v8445_v54  ;;  %v6615_v42 = vld [vmem:[%s10864_s8 + $0x1e8] sm:$0xff] }
0x1405   :  { %8085 = vmatpush3.bf16.msra.mxu0 %v10256_v13  ;;  %8112 = vmatpush3.bf16.msra.mxu1 %v10256_v13 }
0x1406   :  { %7703 = vmatprep.mubr.msk.f32.mxu0 %vm8446_vm6, %v8447_v62  ;;  %7773 = vmatprep.mubr.msk.f32.mxu1 %vm8446_vm6, %v8447_v62 }
0x1407   :  { %7704 = vmatmul.mubr.msk.f32.gmra.mrb[148].mxu0 %vm626_vm4, %v4639_v29  ;;  %7727 = vmatprep.subr.mxu0 %v8447_v62  ;;  %v8426_v29 = vld [vmem:[%s10871_s16 + $0x28] sm:$0xff]  }
0x1408   :  { %7774 = vmatmul.mubr.msk.f32.gmra.mrb[176].mxu1 %vm626_vm4, %v6538_v49  ;;  %7832 = vmatprep.subr.mxu1 %v8447_v62  ;;  %v6616_v49 = vld [vmem:[%s10864_s8 + $0x1f0] sm:$0x1] }
0x1409   :  { %7728 = vmatpush3.msk.msra.mxu0 %vm732_vm3, %v10262_v32  ;;  %7833 = vmatpush3.msk.msra.mxu1 %vm732_vm3, %v10262_v32 }
0x140a   :  { %7706 = vmatprep.mubr.msk.f32.mxu0 %vm8446_vm6, %v8447_v62  ;;  %7776 = vmatprep.mubr.msk.f32.mxu1 %vm8446_vm6, %v8447_v62 }
0x140b   :  { %7707 = vmatmul.mubr.msk.f32.gmra.mrb[150].mxu0 %vm626_vm4, %v4640_v15  ;;  %8095 = vmatprep.subr.bf16.mxu0 %v8445_v54  ;;  %v8427_v15 = vld [vmem:[%s10871_s16 + $0x30] sm:$0xff]  }
0x140c   :  { %7777 = vmatmul.mubr.msk.f32.gmra.mrb[178].mxu1 %vm626_vm4, %v6539_v55  ;;  %7709 = vmatprep.mubr.msk.f32.mxu0 %vm8446_vm6, %v8447_v62  ;;  %v8428_v55 = vld [vmem:[%s10871_s16 + $0x38] sm:$0xff]  }
0x140d   :  { %7779 = vmatprep.mubr.msk.f32.mxu1 %vm8446_vm6, %v8447_v62  ;;  %8122 = vmatprep.subr.bf16.mxu1 %v8445_v54 }
0x140f   :  { %7710 = vmatmul.mubr.msk.f32.gmra.mrb[152].mxu0 %vm626_vm4, %v4641_v40  ;;  %v10687_v40 = vld [vmem:[%s10865_s9 + $0x4] ss:$0 sm:$0xff] }
0x1410   :  { %7780 = vmatmul.mubr.msk.f32.gmra.mrb[180].mxu1 %vm626_vm4, %v6540_v38  ;;  %7712 = vmatprep.mubr.msk.f32.mxu0 %vm8446_vm6, %v8447_v62  ;;  %v4629_v38 = vmul.f32 %v10687_v40, %v10221_v19 }
0x1411   :  { %7782 = vmatprep.mubr.msk.f32.mxu1 %vm8446_vm6, %v8447_v62 }
0x1413   :  { %7713 = vmatmul.mubr.msk.f32.gmra.mrb[154].mxu0 %vm626_vm4, %v4642_v41  ;;  %v10694_v41 = vld [vmem:[%s10865_s9] ss:$0 sm:$0xff] }
0x1414   :  { %7783 = vmatmul.mubr.msk.f32.gmra.mrb[182].mxu1 %vm626_vm4, %v6541_v60  ;;  %7729 = vmatprep.mubr.msk.f32.mxu0 %vm8446_vm6, %v8447_v62 }
0x1415   :  { %7834 = vmatprep.mubr.msk.f32.mxu1 %vm8446_vm6, %v8447_v62 }
0x1417   :  { %7730 = vmatmul.mubr.msk.f32.vlgmr.msra.gmra.mrb[156].mxu0 %vm626_vm4, %v6520_v63 }
0x1418   :  { %8097 = vmatpush3.bf16.msra.mxu0 %v10231_v28  ;;  %7835 = vmatmul.mubr.msk.f32.vlgmr.msra.gmra.mrb[184].mxu1 %vm626_vm4, %v6565_v43 }
0x1419   :  { %8124 = vmatpush3.bf16.msra.mxu1 %v10231_v28  ;;  %7732 = vmatprep.mubr.msk.f32.mxu0 %vm8446_vm6, %v8447_v62 }
0x141a   :  { %8098 = vmatprep.subr.bf16.mxu0 %v8445_v54  ;;  %8125 = vmatprep.subr.bf16.mxu1 %v8445_v54 }
0x141b   :  { %7733 = vmatmul.mubr.msk.f32.gmra.mrb[158].mxu0 %vm626_vm4, %v6521_v5  ;;  %7837 = vmatprep.mubr.msk.f32.mxu1 %vm8446_vm6, %v8447_v62 }
0x141c   :  { %8100 = vmatpush3.bf16.msra.mxu0 %v10227_v16  ;;  %7735 = vmatprep.mubr.msk.f32.mxu0 %vm8446_vm6, %v8447_v62 }
0x141d   :  { %8127 = vmatpush3.bf16.msra.mxu1 %v10227_v16  ;;  %8101 = vmatprep.subr.bf16.mxu0 %v8445_v54 }
0x141e   :  { %8128 = vmatprep.subr.bf16.mxu1 %v8445_v54  ;;  %7838 = vmatmul.mubr.msk.f32.gmra.mrb[186].mxu1 %vm626_vm4, %v6566_v6 }
0x141f   :  { %7736 = vmatmul.mubr.msk.f32.gmra.mrb[160].mxu0 %vm626_vm4, %v6522_v48  ;;  %7840 = vmatprep.mubr.msk.f32.mxu1 %vm8446_vm6, %v8447_v62 }
0x1420   :  { %8103 = vmatpush3.bf16.msra.mxu0 %v10256_v13  ;;  %7738 = vmatprep.mubr.msk.f32.mxu0 %vm8446_vm6, %v8447_v62 }
0x1421   :  { %8130 = vmatpush3.bf16.msra.mxu1 %v10256_v13  ;;  %7797 = vmatprep.subr.mxu0 %v8447_v62 }
0x1422   :  { %7902 = vmatprep.subr.mxu1 %v8447_v62  ;;  %7841 = vmatmul.mubr.msk.f32.gmra.mrb[188].mxu1 %vm626_vm4, %v6567_v45  ;;  %v4630_v45 = vmul.f32 %v10687_v40, %v10223_v18  ;;  %v4632_v18 = vmul.f32 %v10687_v40, %v10219_v22  ;;  %v4634_v22 = vmul.f32 %v10687_v40, %v10249_v11  ;;  %v8432_v11 = vld [vmem:[%s10865_s9 + $0x2] ss:$0 sm:$0xff] }
0x1423   :  { %7739 = vmatmul.mubr.msk.f32.gmra.mrb[162].mxu0 %vm626_vm4, %v6523_v56  ;;  %7843 = vmatprep.mubr.msk.f32.mxu1 %vm8446_vm6, %v8447_v62 }
0x1424   :  { %7798 = vmatpush3.msk.msra.mxu0 %vm732_vm3, %v10262_v32  ;;  %7741 = vmatprep.mubr.msk.f32.mxu0 %vm8446_vm6, %v8447_v62 }
0x1425   :  { %7903 = vmatpush3.msk.msra.mxu1 %vm732_vm3, %v10262_v32  ;;  %8113 = vmatprep.subr.bf16.mxu0 %v8445_v54 }
0x1426   :  { %7844 = vmatmul.mubr.msk.f32.gmra.mrb[190].mxu1 %vm626_vm4, %v6568_v37  ;;  %7960 = vmatprep.subr.bf16.mxu1 %v8419_v25 }
0x1427   :  { %7742 = vmatmul.mubr.msk.f32.gmra.mrb[164].mxu0 %vm626_vm4, %v6524_v34  ;;  %7846 = vmatprep.mubr.msk.f32.mxu1 %vm8446_vm6, %v8447_v62 }
0x1428   :  { %7744 = vmatprep.mubr.msk.f32.mxu0 %vm8446_vm6, %v8447_v62 }
0x142a   :  { %7847 = vmatmul.mubr.msk.f32.gmra.mrb[192].mxu1 %vm626_vm4, %v6569_v0 }
0x142b   :  { %7745 = vmatmul.mubr.msk.f32.gmra.mrb[166].mxu0 %vm626_vm4, %v6525_v53  ;;  %7849 = vmatprep.mubr.msk.f32.mxu1 %vm8446_vm6, %v8447_v62  ;;  %v4631_v53 = vmul.f32 %v10687_v40, %v10217_v35  ;;  %v4633_v35 = vmul.f32 %v10687_v40, %v10247_v47 }
0x142c   :  { %7747 = vmatprep.mubr.msk.f32.mxu0 %vm8446_vm6, %v8447_v62 }
0x142e   :  { %7850 = vmatmul.mubr.msk.f32.gmra.mrb[194].mxu1 %vm626_vm4, %v6570_v27 }
0x142f   :  { %7748 = vmatmul.mubr.msk.f32.gmra.mrb[168].mxu0 %vm626_vm4, %v6526_v57  ;;  %7852 = vmatprep.mubr.msk.f32.mxu1 %vm8446_vm6, %v8447_v62 }
0x1430   :  { %7799 = vmatprep.mubr.msk.f32.mxu0 %vm8446_vm6, %v8447_v62 }
0x1432   :  { %7853 = vmatmul.mubr.msk.f32.gmra.mrb[196].mxu1 %vm626_vm4, %v6571_v46 }
0x1433   :  { %7800 = vmatmul.mubr.msk.f32.vlgmr.msra.gmra.mrb[170].mxu0 %vm626_vm4, %v6550_v44  ;;  %7904 = vmatprep.mubr.msk.f32.mxu1 %vm8446_vm6, %v8447_v62 }
0x1434   :  { %8115 = vmatpush3.bf16.msra.mxu0 %v10231_v28  ;;  %7802 = vmatprep.mubr.msk.f32.mxu0 %vm8446_vm6, %v8447_v62 }
0x1435   :  { %8116 = vmatprep.subr.bf16.mxu0 %v8445_v54 }
0x1436   :  { %7905 = vmatmul.mubr.msk.f32.vlgmr.msra.gmra.mrb[198].mxu1 %vm626_vm4, %v6595_v1 }
0x1437   :  { %7803 = vmatmul.mubr.msk.f32.gmra.mrb[172].mxu0 %vm626_vm4, %v6551_v10  ;;  %7907 = vmatprep.mubr.msk.f32.mxu1 %vm8446_vm6, %v8447_v62 }
0x1438   :  { %8118 = vmatpush3.bf16.msra.mxu0 %v10227_v16  ;;  %7805 = vmatprep.mubr.msk.f32.mxu0 %vm8446_vm6, %v8447_v62 }
0x1439   :  { %8119 = vmatprep.subr.bf16.mxu0 %v8445_v54  ;;  %7961 = vmatpush3.bf16.msra.mxu1 %v8419_v25 }
0x143a   :  { %7908 = vmatmul.mubr.msk.f32.gmra.mrb[200].mxu1 %vm626_vm4, %v6596_v17  ;;  %7962 = vmatprep.subr.bf16.mxu1 %v8420_v52 }
0x143b   :  { %7806 = vmatmul.mubr.msk.f32.gmra.mrb[174].mxu0 %vm626_vm4, %v6552_v21  ;;  %7910 = vmatprep.mubr.msk.f32.mxu1 %vm8446_vm6, %v8447_v62 }
0x143c   :  { %8121 = vmatpush3.bf16.msra.mxu0 %v10256_v13  ;;  %7808 = vmatprep.mubr.msk.f32.mxu0 %vm8446_vm6, %v8447_v62 }
0x143d   :  { %7867 = vmatprep.subr.mxu0 %v8447_v62  ;;  %7963 = vmatpush3.bf16.msra.mxu1 %v8420_v52 }
0x143e   :  { %7911 = vmatmul.mubr.msk.f32.gmra.mrb[202].mxu1 %vm626_vm4, %v6597_v31 }
0x143f   :  { %7809 = vmatmul.mubr.msk.f32.gmra.mrb[176].mxu0 %vm626_vm4, %v6553_v20  ;;  %7913 = vmatprep.mubr.msk.f32.mxu1 %vm8446_vm6, %v8447_v62 }
0x1440   :  { %7868 = vmatpush3.msk.msra.mxu0 %vm732_vm3, %v10262_v32  ;;  %7811 = vmatprep.mubr.msk.f32.mxu0 %vm8446_vm6, %v8447_v62 }
0x1441   :  { %8131 = vmatprep.subr.bf16.mxu0 %v8445_v54 }
0x1442   :  { %7914 = vmatmul.mubr.msk.f32.gmra.mrb[204].mxu1 %vm626_vm4, %v6598_v33 }
0x1443   :  { %7812 = vmatmul.mubr.msk.f32.gmra.mrb[178].mxu0 %vm626_vm4, %v6554_v36  ;;  %7916 = vmatprep.mubr.msk.f32.mxu1 %vm8446_vm6, %v8447_v62 }
0x1444   :  { %7814 = vmatprep.mubr.msk.f32.mxu0 %vm8446_vm6, %v8447_v62 }
0x1446   :  { %7917 = vmatmul.mubr.msk.f32.gmra.mrb[206].mxu1 %vm626_vm4, %v6599_v2 }
0x1447   :  { %7815 = vmatmul.mubr.msk.f32.gmra.mrb[180].mxu0 %vm626_vm4, %v6555_v14  ;;  %7919 = vmatprep.mubr.msk.f32.mxu1 %vm8446_vm6, %v8447_v62 }
0x1448   :  { %7817 = vmatprep.mubr.msk.f32.mxu0 %vm8446_vm6, %v8447_v62 }
0x144a   :  { %7920 = vmatmul.mubr.msk.f32.gmra.mrb[208].mxu1 %vm626_vm4, %v6600_v51 }
0x144b   :  { %7818 = vmatmul.mubr.msk.f32.gmra.mrb[182].mxu0 %vm626_vm4, %v6556_v59  ;;  %7922 = vmatprep.mubr.msk.f32.mxu1 %vm8446_vm6, %v8447_v62 }
0x144c   :  { %7869 = vmatprep.mubr.msk.f32.mxu0 %vm8446_vm6, %v8447_v62 }
0x144e   :  { %7923 = vmatmul.mubr.msk.f32.gmra.mrb[210].mxu1 %vm626_vm4, %v6601_v3 }
0x144f   :  { %7870 = vmatmul.mubr.msk.f32.vlgmr.msra.gmra.mrb[184].mxu0 %vm626_vm4, %v6580_v9 }
0x1450   :  { %8133 = vmatpush3.bf16.msra.mxu0 %v10231_v28  ;;  %7872 = vmatprep.mubr.msk.f32.mxu0 %vm8446_vm6, %v8447_v62  ;;  %v6582_v28 = vld [vmem:[%s10864_s8 + $0x160] sm:$0xff] }
0x1451   :  { %8134 = vmatprep.subr.bf16.mxu0 %v8445_v54 }
0x1453   :  { %7873 = vmatmul.mubr.msk.f32.gmra.mrb[186].mxu0 %vm626_vm4, %v6581_v7 }
0x1454   :  { %8136 = vmatpush3.bf16.msra.mxu0 %v10227_v16  ;;  %7875 = vmatprep.mubr.msk.f32.mxu0 %vm8446_vm6, %v8447_v62  ;;  %v6583_v16 = vld [vmem:[%s10864_s8 + $0x168] sm:$0xff] }
0x1455   :  { %8137 = vmatprep.subr.bf16.mxu0 %v8445_v54  ;;  %v6584_v54 = vld [vmem:[%s10864_s8 + $0x170] sm:$0xff] }
0x1457   :  { %7876 = vmatmul.mubr.msk.f32.gmra.mrb[188].mxu0 %vm626_vm4, %v6582_v28 }
0x1458   :  { %8139 = vmatpush3.bf16.msra.mxu0 %v10256_v13  ;;  %7878 = vmatprep.mubr.msk.f32.mxu0 %vm8446_vm6, %v8447_v62  ;;  %v6612_v13 = vld [vmem:[%s10864_s8 + $0x1d0] sm:$0xff] }
0x1459   :  { %7937 = vmatprep.subr.mxu0 %v8447_v62 }
0x145b   :  { %7879 = vmatmul.mubr.msk.f32.gmra.mrb[190].mxu0 %vm626_vm4, %v6583_v16 }
0x145c   :  { %7938 = vmatpush3.msk.msra.mxu0 %vm732_vm3, %v10262_v32  ;;  %7881 = vmatprep.mubr.msk.f32.mxu0 %vm8446_vm6, %v8447_v62 }
0x145d   :  { %7972 = vmatprep.subr.bf16.mxu0 %v8421_v23 }
0x145f   :  { %7882 = vmatmul.mubr.msk.f32.gmra.mrb[192].mxu0 %vm626_vm4, %v6584_v54 }
0x1460   :  { %7884 = vmatprep.mubr.msk.f32.mxu0 %vm8446_vm6, %v8447_v62 }
0x1463   :  { %7885 = vmatmul.mubr.msk.f32.gmra.mrb[194].mxu0 %vm626_vm4, %v6585_v30 }
0x1464   :  { %7887 = vmatprep.mubr.msk.f32.mxu0 %vm8446_vm6, %v8447_v62 }
0x1467   :  { %7888 = vmatmul.mubr.msk.f32.gmra.mrb[196].mxu0 %vm626_vm4, %v6586_v61 }
0x1468   :  { %7939 = vmatprep.mubr.msk.f32.mxu0 %vm8446_vm6, %v8447_v62 }
0x146b   :  { %7940 = vmatmul.mubr.msk.f32.vlgmr.msra.gmra.mrb[198].mxu0 %vm626_vm4, %v6610_v24 }
0x146c   :  { %7942 = vmatprep.mubr.msk.f32.mxu0 %vm8446_vm6, %v8447_v62  ;;  %7973 = vmatpush3.bf16.msra.mxu0 %v8421_v23 }
0x146d   :  { %7974 = vmatprep.subr.bf16.mxu0 %v8422_v58 }
0x146f   :  { %7943 = vmatmul.mubr.msk.f32.gmra.mrb[200].mxu0 %vm626_vm4, %v6611_v26  ;;  %v8431_v26 = vld [vmem:[%s10865_s9 + $0x1] ss:$0 sm:$0xff] }
0x1470   :  { %7945 = vmatprep.mubr.msk.f32.mxu0 %vm8446_vm6, %v8447_v62  ;;  %7975 = vmatpush3.bf16.msra.mxu0 %v8422_v58 }
0x1471   :  { %7976 = vmatprep.subr.bf16.mxu0 %v8423_v12 }
0x1473   :  { %7946 = vmatmul.mubr.msk.f32.gmra.mrb[202].mxu0 %vm626_vm4, %v6612_v13 }
0x1474   :  { %7948 = vmatprep.mubr.msk.f32.mxu0 %vm8446_vm6, %v8447_v62  ;;  %7977 = vmatpush3.bf16.msra.mxu0 %v8423_v12 }
0x1475   :  { %7978 = vmatprep.subr.bf16.mxu0 %v8424_v4 }
0x1477   :  { %7949 = vmatmul.mubr.msk.f32.gmra.mrb[204].mxu0 %vm626_vm4, %v6613_v39 }
0x1478   :  { %7951 = vmatprep.mubr.msk.f32.mxu0 %vm8446_vm6, %v8447_v62  ;;  %7979 = vmatpush3.bf16.msra.mxu0 %v8424_v4 }
0x1479   :  { %7980 = vmatprep.subr.bf16.mxu0 %v8425_v8 }
0x147b   :  { %7952 = vmatmul.mubr.msk.f32.gmra.mrb[206].mxu0 %vm626_vm4, %v6614_v50 }
0x147c   :  { %7954 = vmatprep.mubr.msk.f32.mxu0 %vm8446_vm6, %v8447_v62  ;;  %7981 = vmatpush3.bf16.msra.mxu0 %v8425_v8 }
0x147d   :  { %7982 = vmatprep.subr.bf16.mxu0 %v8426_v29 }
0x147f   :  { %7955 = vmatmul.mubr.msk.f32.gmra.mrb[208].mxu0 %vm626_vm4, %v6615_v42 }
0x1480   :  { %7957 = vmatprep.mubr.msk.f32.mxu0 %vm8446_vm6, %v8447_v62  ;;  %7983 = vmatpush3.bf16.msra.mxu0 %v8426_v29 }
0x1481   :  { %7984 = vmatprep.subr.bf16.mxu0 %v8427_v15 }
0x1483   :  { %7958 = vmatmul.mubr.msk.f32.gmra.mrb[210].mxu0 %vm626_vm4, %v6616_v49 }
0x1484   :  { %7985 = vmatpush3.bf16.msra.mxu0 %v8427_v15 }
0x1485   :  { %7986 = vmatprep.subr.bf16.mxu0 %v8428_v55 }
0x1488   :  { %7987 = vmatpush3.bf16.msra.mxu0 %v8428_v55 }
0x14ce   :  { %v4733_v62 = vpop.f32.mrb[94].mxu0 }
0x14cf   :  { %v4767_v60 = vmul.f32 %v10694_v41, %v4733_v62  ;;  %v7696_v63 = vpop.f32.mrb[95].mxu0  ;;  %v5017_v43 = vpop.f32.mrb[110].mxu1 }
0x14d0   :  { %v7766_v5 = vpop.f32.mrb[111].mxu1  ;;  %v5051_v13 = vmul.f32 %v8432_v11, %v5017_v43 }
0x14d1   :  { %v4774_v6 = vadd.f32 %v4767_v60, %v4629_v38 }
0x14d2   :  { %v4738_v48 = vpop.f32.mrb[144].mxu0 }
0x14d3   :  { %v4768_v56 = vmul.f32 %v10694_v41, %v4738_v48  ;;  %v7699_v37 = vpop.f32.mrb[145].mxu0  ;;  %v5022_v34 = vpop.f32.mrb[172].mxu1 }
0x14d4   :  { %v7769_v19 = vpop.f32.mrb[173].mxu1  ;;  %v5052_v49 = vmul.f32 %v8432_v11, %v5022_v34 }
0x14d5   :  { %v4775_v25 = vadd.f32 %v4768_v56, %v4630_v45 }
0x14d6   :  { %v4743_v0 = vpop.f32.mrb[146].mxu0 }
0x14d7   :  { %v4769_v27 = vmul.f32 %v10694_v41, %v4743_v0  ;;  %v7702_v57 = vpop.f32.mrb[147].mxu0  ;;  %v5027_v46 = vpop.f32.mrb[174].mxu1 }
0x14d8   :  { %v7772_v44 = vpop.f32.mrb[175].mxu1  ;;  %v5053_v48 = vmul.f32 %v8432_v11, %v5027_v46 }
0x14d9   :  { %v4776_v1 = vadd.f32 %v4769_v27, %v4631_v53 }
0x14da   :  { %v4748_v10 = vpop.f32.mrb[148].mxu0 }
0x14db   :  { %v4770_v17 = vmul.f32 %v10694_v41, %v4748_v10  ;;  %v7705_v21 = vpop.f32.mrb[149].mxu0  ;;  %v5032_v52 = vpop.f32.mrb[176].mxu1 }
0x14dc   :  { %v7775_v31 = vpop.f32.mrb[177].mxu1 }
0x14dd   :  { %v4777_v20 = vadd.f32 %v4770_v17, %v4632_v18 }
0x14de   :  { %v4753_v33 = vpop.f32.mrb[150].mxu0 }
0x14df   :  { %v4771_v36 = vmul.f32 %v10694_v41, %v4753_v33  ;;  %v7708_v2 = vpop.f32.mrb[151].mxu0  ;;  %v5037_v14 = vpop.f32.mrb[178].mxu1 }
0x14e0   :  { %v7778_v51 = vpop.f32.mrb[179].mxu1  ;;  %v5055_v17 = vmul.f32 %v8432_v11, %v5037_v14 }
0x14e1   :  { %v4778_v59 = vadd.f32 %v4771_v36, %v4633_v35 }
0x14e2   :  { %v4758_v3 = vpop.f32.mrb[152].mxu0 }
0x14e3   :  { %v4772_v9 = vmul.f32 %v10694_v41, %v4758_v3  ;;  %v7711_v7 = vpop.f32.mrb[153].mxu0  ;;  %v5042_v28 = vpop.f32.mrb[180].mxu1 }
0x14e4   :  { %v7781_v16 = vpop.f32.mrb[181].mxu1  ;;  %v5056_v51 = vmul.f32 %v8432_v11, %v5042_v28  ;;  %v8433_v28 = vld [vmem:[%s10865_s9 + $0x3] ss:$0 sm:$0xff] }
0x14e5   :  { %v4779_v54 = vadd.f32 %v4772_v9, %v4634_v22 }
0x14e6   :  { %v4763_v23 = vpop.f32.mrb[154].mxu0 }
0x14e7   :  { %v7714_v30 = vpop.f32.mrb[155].mxu0  ;;  %v5047_v61 = vpop.f32.mrb[182].mxu1 }
0x14e8   :  { %v7784_v47 = vpop.f32.mrb[183].mxu1 }
0x14ea   :  { %v4875_v24 = vpop.f32.mrb[156].mxu0 }
0x14eb   :  { %v4909_v58 = vmul.f32 %v8431_v26, %v4875_v24  ;;  %v7731_v12 = vpop.f32.mrb[157].mxu0  ;;  %v5301_v39 = vpop.f32.mrb[184].mxu1 }
0x14ec   :  { %v7836_v4 = vpop.f32.mrb[185].mxu1 }
0x14ed   :  { %v4916_v50 = vadd.f32 %v4909_v58, %v4774_v6  ;;  %v5054_v6 = vmul.f32 %v8432_v11, %v5032_v52  ;;  %v4635_v52 = vmul.f32 %v10687_v40, %v10262_v32  ;;  %v8434_v32 = vld [vmem:[%s10865_s9 + $0x5] ss:$0 sm:$0xff] }
0x14ee   :  { %v4880_v8 = vpop.f32.mrb[158].mxu0  ;;  %v5335_v40 = vmul.f32 %v8434_v32, %v5301_v39 }
0x14ef   :  { %v5058_v42 = vadd.f32 %v5051_v13, %v4916_v50  ;;  %v4910_v29 = vmul.f32 %v8431_v26, %v4880_v8  ;;  %v7734_v15 = vpop.f32.mrb[159].mxu0 }
0x14f1   :  { %v4917_v55 = vadd.f32 %v4910_v29, %v4775_v25  ;;  %v5306_v62 = vpop.f32.mrb[186].mxu1 }
0x14f2   :  { %v4885_v38 = vpop.f32.mrb[160].mxu0  ;;  %v7839_v60 = vpop.f32.mrb[187].mxu1  ;;  %v5336_v29 = vmul.f32 %v8434_v32, %v5306_v62 }
0x14f3   :  { %v5059_v63 = vadd.f32 %v5052_v49, %v4917_v55  ;;  %v4911_v5 = vmul.f32 %v8431_v26, %v4885_v38  ;;  %v7737_v45 = vpop.f32.mrb[161].mxu0 }
0x14f5   :  { %v4918_v56 = vadd.f32 %v4911_v5, %v4776_v1  ;;  %v5311_v37 = vpop.f32.mrb[188].mxu1  ;;  %v4773_v1 = vmul.f32 %v10694_v41, %v4763_v23 }
0x14f6   :  { %v4890_v43 = vpop.f32.mrb[162].mxu0  ;;  %v7842_v19 = vpop.f32.mrb[189].mxu1  ;;  %v5337_v45 = vmul.f32 %v8434_v32, %v5311_v37 }
0x14f7   :  { %v5060_v0 = vadd.f32 %v5053_v48, %v4918_v56  ;;  %v4912_v53 = vmul.f32 %v8431_v26, %v4890_v43  ;;  %v7740_v27 = vpop.f32.mrb[163].mxu0  ;;  %v4780_v16 = vadd.f32 %v4773_v1, %v4635_v52 }
0x14f9   :  { %v4919_v57 = vadd.f32 %v4912_v53, %v4777_v20  ;;  %v5316_v44 = vpop.f32.mrb[190].mxu1 }
0x14fa   :  { %v4895_v34 = vpop.f32.mrb[164].mxu0  ;;  %v7845_v10 = vpop.f32.mrb[191].mxu1  ;;  %v5338_v27 = vmul.f32 %v8434_v32, %v5316_v44 }
0x14fb   :  { %v5061_v25 = vadd.f32 %v5054_v6, %v4919_v57  ;;  %v4913_v18 = vmul.f32 %v8431_v26, %v4895_v34  ;;  %v7743_v21 = vpop.f32.mrb[165].mxu0 }
0x14fd   :  { %v4920_v31 = vadd.f32 %v4913_v18, %v4778_v59  ;;  %v5321_v33 = vpop.f32.mrb[192].mxu1  ;;  %v5057_v59 = vmul.f32 %v8432_v11, %v5047_v61 }
0x14fe   :  { %v4900_v46 = vpop.f32.mrb[166].mxu0  ;;  %v7848_v35 = vpop.f32.mrb[193].mxu1  ;;  %v5339_v21 = vmul.f32 %v8434_v32, %v5321_v33 }
0x14ff   :  { %v5062_v36 = vadd.f32 %v5055_v17, %v4920_v31  ;;  %v4914_v2 = vmul.f32 %v8431_v26, %v4900_v46  ;;  %v7746_v3 = vpop.f32.mrb[167].mxu0 }
0x1501   :  { %v4921_v20 = vadd.f32 %v4914_v2, %v4779_v54  ;;  %v5326_v22 = vpop.f32.mrb[194].mxu1 }
0x1502   :  { %v4905_v9 = vpop.f32.mrb[168].mxu0  ;;  %v7851_v7 = vpop.f32.mrb[195].mxu1 }
0x1503   :  { %v5063_v14 = vadd.f32 %v5056_v51, %v4921_v20  ;;  %v4915_v30 = vmul.f32 %v8431_v26, %v4905_v9  ;;  %v7749_v47 = vpop.f32.mrb[169].mxu0  ;;  %v5340_v51 = vmul.f32 %v8434_v32, %v5326_v22  ;;  %v8436_v22 = vld [vmem:[%s10865_s9 + $0x7] ss:$0 sm:$0xff] }
0x1505   :  { %v4922_v24 = vadd.f32 %v4915_v30, %v4780_v16  ;;  %v5331_v58 = vpop.f32.mrb[196].mxu1 }
0x1506   :  { %v5159_v13 = vpop.f32.mrb[170].mxu0  ;;  %v7854_v41 = vpop.f32.mrb[197].mxu1  ;;  %v5341_v16 = vmul.f32 %v8434_v32, %v5331_v58 }
0x1507   :  { %v5064_v23 = vadd.f32 %v5057_v59, %v4922_v24  ;;  %v5193_v12 = vmul.f32 %v8433_v28, %v5159_v13  ;;  %v7801_v54 = vpop.f32.mrb[171].mxu0  ;;  %v8435_v13 = vld [vmem:[%s10865_s9 + $0x6] ss:$0 sm:$0xff] }
0x1509   :  { %v5200_v4 = vadd.f32 %v5193_v12, %v5058_v42  ;;  %v5585_v26 = vpop.f32.mrb[198].mxu1 }
0x150a   :  { %v5164_v61 = vpop.f32.mrb[172].mxu0  ;;  %v7906_v11 = vpop.f32.mrb[199].mxu1 }
0x150b   :  { %v5342_v50 = vadd.f32 %v5335_v40, %v5200_v4  ;;  %v5194_v8 = vmul.f32 %v8433_v28, %v5164_v61  ;;  %v7804_v49 = vpop.f32.mrb[173].mxu0 }
0x150d   :  { %v5201_v15 = vadd.f32 %v5194_v8, %v5059_v63  ;;  %v5590_v55 = vpop.f32.mrb[200].mxu1 }
0x150e   :  { %v5169_v38 = vpop.f32.mrb[174].mxu0  ;;  %v7909_v60 = vpop.f32.mrb[201].mxu1 }
0x150f   :  { %v5343_v5 = vadd.f32 %v5336_v29, %v5201_v15  ;;  %v5195_v48 = vmul.f32 %v8433_v28, %v5169_v38  ;;  %v7807_v56 = vpop.f32.mrb[175].mxu0 }
0x1511   :  { %v5202_v43 = vadd.f32 %v5195_v48, %v5060_v0  ;;  %v5595_v19 = vpop.f32.mrb[202].mxu1 }
0x1512   :  { %v5174_v39 = vpop.f32.mrb[176].mxu0  ;;  %v7912_v53 = vpop.f32.mrb[203].mxu1  ;;  %v5621_v29 = vmul.f32 %v8436_v22, %v5595_v19 }
0x1513   :  { %v5344_v42 = vadd.f32 %v5337_v45, %v5202_v43  ;;  %v5196_v6 = vmul.f32 %v8433_v28, %v5174_v39  ;;  %v7810_v57 = vpop.f32.mrb[177].mxu0 }
0x1515   :  { %v5203_v34 = vadd.f32 %v5196_v6, %v5061_v25  ;;  %v5600_v10 = vpop.f32.mrb[204].mxu1 }
0x1516   :  { %v5179_v62 = vpop.f32.mrb[178].mxu0  ;;  %v7915_v18 = vpop.f32.mrb[205].mxu1  ;;  %v5622_v45 = vmul.f32 %v8436_v22, %v5600_v10 }
0x1517   :  { %v5345_v63 = vadd.f32 %v5338_v27, %v5203_v34  ;;  %v5197_v17 = vmul.f32 %v8433_v28, %v5179_v62  ;;  %v7813_v31 = vpop.f32.mrb[179].mxu0 }
0x1519   :  { %v5204_v46 = vadd.f32 %v5197_v17, %v5062_v36  ;;  %v5605_v35 = vpop.f32.mrb[206].mxu1 }
0x151a   :  { %v5184_v37 = vpop.f32.mrb[180].mxu0  ;;  %v7918_v1 = vpop.f32.mrb[207].mxu1  ;;  %v5623_v53 = vmul.f32 %v8436_v22, %v5605_v35  ;;  %v8437_v35 = vld [vmem:[%s10865_s9 + $0x8] ss:$0 sm:$0xff] }
0x151b   :  { %v5346_v0 = vadd.f32 %v5339_v21, %v5204_v46  ;;  %v5198_v2 = vmul.f32 %v8433_v28, %v5184_v37  ;;  %v7816_v3 = vpop.f32.mrb[181].mxu0 }
0x151d   :  { %v5205_v52 = vadd.f32 %v5198_v2, %v5063_v14  ;;  %v5610_v20 = vpop.f32.mrb[208].mxu1  ;;  %v5619_v14 = vmul.f32 %v8436_v22, %v5585_v26 }
0x151e   :  { %v5189_v44 = vpop.f32.mrb[182].mxu0  ;;  %v7921_v9 = vpop.f32.mrb[209].mxu1  ;;  %v5624_v34 = vmul.f32 %v8436_v22, %v5610_v20 }
0x151f   :  { %v5347_v25 = vadd.f32 %v5340_v51, %v5205_v52  ;;  %v5199_v7 = vmul.f32 %v8433_v28, %v5189_v44  ;;  %v7819_v30 = vpop.f32.mrb[183].mxu0  ;;  %v8438_v51 = vld [vmem:[%s10866_s10] ss:$0 sm:$0xff] }
0x1520   :  { %v8439_v9 = vld [vmem:[%s10867_s11] ss:$0 sm:$0xff] }
0x1521   :  { %v5206_v59 = vadd.f32 %v5199_v7, %v5064_v23  ;;  %v5615_v47 = vpop.f32.mrb[210].mxu1  ;;  %v5620_v23 = vmul.f32 %v8436_v22, %v5590_v55 }
0x1522   :  { %v5443_v33 = vpop.f32.mrb[184].mxu0  ;;  %v7924_v24 = vpop.f32.mrb[211].mxu1  ;;  %v5625_v21 = vmul.f32 %v8436_v22, %v5615_v47 }
0x1523   :  { %v5348_v36 = vadd.f32 %v5341_v16, %v5206_v59  ;;  %v5477_v41 = vmul.f32 %v8435_v13, %v5443_v33  ;;  %v7871_v12 = vpop.f32.mrb[185].mxu0 }
0x1525   :  { %v5484_v40 = vadd.f32 %v5477_v41, %v5342_v50 }
0x1526   :  { %v5448_v28 = vpop.f32.mrb[186].mxu0 }
0x1527   :  { %v5626_v58 = vadd.f32 %v5619_v14, %v5484_v40  ;;  %v5478_v32 = vmul.f32 %v8435_v13, %v5448_v28  ;;  %v7874_v54 = vpop.f32.mrb[187].mxu0 }
0x1529   :  { %v5485_v4 = vadd.f32 %v5478_v32, %v5343_v5 }
0x152a   :  { %v5453_v61 = vpop.f32.mrb[188].mxu0 }
0x152b   :  { %v5627_v11 = vadd.f32 %v5620_v23, %v5485_v4  ;;  %v5479_v8 = vmul.f32 %v8435_v13, %v5453_v61  ;;  %v7877_v49 = vpop.f32.mrb[189].mxu0 }
0x152d   :  { %v5486_v15 = vadd.f32 %v5479_v8, %v5344_v42 }
0x152e   :  { %v5458_v38 = vpop.f32.mrb[190].mxu0 }
0x152f   :  { %v5628_v60 = vadd.f32 %v5621_v29, %v5486_v15  ;;  %v5480_v48 = vmul.f32 %v8435_v13, %v5458_v38  ;;  %v7880_v56 = vpop.f32.mrb[191].mxu0 }
0x1531   :  { %v5487_v26 = vadd.f32 %v5480_v48, %v5345_v63 }
0x1532   :  { %v5463_v43 = vpop.f32.mrb[192].mxu0 }
0x1533   :  { %v5629_v50 = vadd.f32 %v5622_v45, %v5487_v26  ;;  %v5481_v39 = vmul.f32 %v8435_v13, %v5463_v43  ;;  %v7883_v6 = vpop.f32.mrb[193].mxu0 }
0x1535   :  { %v5488_v55 = vadd.f32 %v5481_v39, %v5346_v0 }
0x1536   :  { %v5468_v27 = vpop.f32.mrb[194].mxu0 }
0x1537   :  { %v5630_v5 = vadd.f32 %v5623_v53, %v5488_v55  ;;  %v5482_v57 = vmul.f32 %v8435_v13, %v5468_v27  ;;  %v7886_v62 = vpop.f32.mrb[195].mxu0 }
0x1539   :  { %v5489_v19 = vadd.f32 %v5482_v57, %v5347_v25 }
0x153a   :  { %v5473_v18 = vpop.f32.mrb[196].mxu0 }
0x153b   :  { %v5631_v42 = vadd.f32 %v5624_v34, %v5489_v19  ;;  %v5483_v17 = vmul.f32 %v8435_v13, %v5473_v18  ;;  %v7889_v31 = vpop.f32.mrb[197].mxu0 }
0x153d   :  { %v5490_v10 = vadd.f32 %v5483_v17, %v5348_v36 }
0x153e   :  { %v5727_v46 = vpop.f32.mrb[198].mxu0 }
0x153f   :  { %v5632_v63 = vadd.f32 %v5625_v21, %v5490_v10  ;;  %v5761_v37 = vmul.f32 %v8437_v35, %v5727_v46  ;;  %v7941_v1 = vpop.f32.mrb[199].mxu0 }
0x1541   :  { %v5768_v0 = vadd.f32 %v5761_v37, %v5626_v58 }
0x1542   :  { %v5732_v2 = vpop.f32.mrb[200].mxu0 }
0x1543   :  { %v5775_v3 = vmul.f32 %v8438_v51, %v5768_v0  ;;  %v5762_v52 = vmul.f32 %v8437_v35, %v5732_v2  ;;  %v7944_v20 = vpop.f32.mrb[201].mxu0 }
0x1545   :  { %v5769_v44 = vadd.f32 %v5762_v52, %v5627_v11  ;;  %v10742_v25 = vadd.f32 %v8439_v9, %v5775_v3 }
0x1546   :  { %v5737_v7 = vpop.f32.mrb[202].mxu0 }
0x1547   :  { %v5776_v16 = vmul.f32 %v8438_v51, %v5769_v44  ;;  %v5763_v30 = vmul.f32 %v8437_v35, %v5737_v7  ;;  %v5789_v59 = vsel %vm107_vm0, %v10742_v25, 0.0  ;;  %v7947_v47 = vpop.f32.mrb[203].mxu0 }
0x1548   :  { %5790 = vadd.xlane.f32.xlu0 %v5789_v59 }
0x1549   :  { %v5770_v33 = vadd.f32 %v5763_v30, %v5628_v60  ;;  %v10746_v24 = vadd.f32 %v8439_v9, %v5776_v16 }
0x154a   :  { %v5742_v36 = vpop.f32.mrb[204].mxu0 }
0x154b   :  { %v5777_v13 = vmul.f32 %v8438_v51, %v5770_v33  ;;  %v5764_v41 = vmul.f32 %v8437_v35, %v5742_v36  ;;  %v5792_v22 = vsel %vm107_vm0, %v10746_v24, 0.0  ;;  %v7950_v14 = vpop.f32.mrb[205].mxu0 }
0x154c   :  { %5793 = vadd.xlane.f32.xlu1 %v5792_v22 }
0x154d   :  { %v5771_v12 = vadd.f32 %v5764_v41, %v5629_v50  ;;  %v10750_v40 = vadd.f32 %v8439_v9, %v5777_v13 }
0x154e   :  { %v5747_v28 = vpop.f32.mrb[206].mxu0 }
0x154f   :  { %v5778_v58 = vmul.f32 %v8438_v51, %v5771_v12  ;;  %v5765_v32 = vmul.f32 %v8437_v35, %v5747_v28  ;;  %v5795_v23 = vsel %vm107_vm0, %v10750_v40, 0.0  ;;  %v7953_v54 = vpop.f32.mrb[207].mxu0 }
0x1550   :  { %5796 = vadd.xlane.f32.xlu0 %v5795_v23 }
0x1551   :  { %v5772_v4 = vadd.f32 %v5765_v32, %v5630_v5  ;;  %v10754_v61 = vadd.f32 %v8439_v9, %v5778_v58 }
0x1552   :  { %v5752_v11 = vpop.f32.mrb[208].mxu0 }
0x1553   :  { %v5779_v8 = vmul.f32 %v8438_v51, %v5772_v4  ;;  %v5766_v29 = vmul.f32 %v8437_v35, %v5752_v11  ;;  %v5798_v49 = vsel %vm107_vm0, %v10754_v61, 0.0  ;;  %v7956_v15 = vpop.f32.mrb[209].mxu0 }
0x1554   :  { %5799 = vadd.xlane.f32.xlu1 %v5798_v49 }
0x1555   :  { %v5773_v38 = vadd.f32 %v5766_v29, %v5631_v42  ;;  %v10758_v60 = vadd.f32 %v8439_v9, %v5779_v8 }
0x1556   :  { %v5757_v48 = vpop.f32.mrb[210].mxu0 }
0x1557   :  { %v5780_v45 = vmul.f32 %v8438_v51, %v5773_v38  ;;  %v5767_v56 = vmul.f32 %v8437_v35, %v5757_v48  ;;  %v5801_v26 = vsel %vm107_vm0, %v10758_v60, 0.0  ;;  %v7959_v43 = vpop.f32.mrb[211].mxu0 }
0x1558   :  { %5802 = vadd.xlane.f32.xlu0 %v5801_v26 }
0x1559   :  { %v5774_v50 = vadd.f32 %v5767_v56, %v5632_v63  ;;  %v10762_v39 = vadd.f32 %v8439_v9, %v5780_v45 }
0x155b   :  { %v5781_v53 = vmul.f32 %v8438_v51, %v5774_v50  ;;  %v5804_v6 = vsel %vm107_vm0, %v10762_v39, 0.0 }
0x155c   :  { %5805 = vadd.xlane.f32.xlu1 %v5804_v6  ;;  %v8440_v6 = vld [vmem:[%s10869_s12] ss:$0 sm:$0xff] }
0x155d   :  { %v10766_v55 = vadd.f32 %v8439_v9, %v5781_v53 }
0x155f   :  { %v5807_v27 = vsel %vm126_vm1, %v10766_v55, 0.0 }
0x1560   :  { %5808 = vadd.xlane.f32.xlu0 %v5807_v27 }
0x15d5   :  { %v5791_v5 = vpop.xlane.xlu0 %5790 }
0x15d6   :  { %v5810_v57 = vmul.f32 0.03125, %v5791_v5 }
0x15d8   :  { %v5817_v34 = vsub.f32 %v10742_v25, %v5810_v57 }
0x15d9   :  { %v5794_v62 = vpop.xlane.xlu1 %5793 }
0x15da   :  { %v5811_v19 = vmul.f32 0.03125, %v5794_v62  ;;  %v5824_v18 = vmul.f32 %v5817_v34, %v5817_v34 }
0x15dc   :  { %v5818_v42 = vsub.f32 %v10746_v24, %v5811_v19  ;;  %v5831_v17 = vsel %vm107_vm0, %v5824_v18, 0.0 }
0x15dd   :  { %v5797_v21 = vpop.xlane.xlu0 %5796  ;;  %5832 = vadd.xlane.f32.xlu1 %v5831_v17 }
0x15de   :  { %v5812_v31 = vmul.f32 0.03125, %v5797_v21  ;;  %v5825_v10 = vmul.f32 %v5818_v42, %v5818_v42 }
0x15e0   :  { %v5819_v46 = vsub.f32 %v10750_v40, %v5812_v31  ;;  %v5834_v63 = vsel %vm107_vm0, %v5825_v10, 0.0 }
0x15e1   :  { %v5800_v35 = vpop.xlane.xlu1 %5799  ;;  %5835 = vadd.xlane.f32.xlu0 %v5834_v63 }
0x15e2   :  { %v5813_v37 = vmul.f32 0.03125, %v5800_v35  ;;  %v5826_v1 = vmul.f32 %v5819_v46, %v5819_v46 }
0x15e4   :  { %v10776_v0 = vsub.f32 %v10754_v61, %v5813_v37  ;;  %v5837_v2 = vsel %vm107_vm0, %v5826_v1, 0.0 }
0x15e5   :  { %5838 = vadd.xlane.f32.xlu1 %v5837_v2  ;;  %v5803_v51 = vpop.xlane.xlu0 %5802 }
0x15e6   :  { %v5814_v3 = vmul.f32 0.03125, %v5803_v51  ;;  %v5827_v52 = vmul.f32 %v10776_v0, %v10776_v0 }
0x15e8   :  { %v10782_v20 = vsub.f32 %v10758_v60, %v5814_v3  ;;  %v5840_v44 = vsel %vm107_vm0, %v5827_v52, 0.0 }
0x15e9   :  { %v5806_v9 = vpop.xlane.xlu1 %5805  ;;  %5841 = vadd.xlane.f32.xlu0 %v5840_v44 }
0x15ea   :  { %v5815_v7 = vmul.f32 0.03125, %v5806_v9  ;;  %v5828_v16 = vmul.f32 %v10782_v20, %v10782_v20 }
0x15ec   :  { %v10788_v30 = vsub.f32 %v10762_v39, %v5815_v7  ;;  %v5843_v59 = vsel %vm107_vm0, %v5828_v16, 0.0 }
0x15ed   :  { %5844 = vadd.xlane.f32.xlu1 %v5843_v59  ;;  %v5809_v47 = vpop.xlane.xlu0 %5808 }
0x15ee   :  { %v5816_v33 = vmul.f32 0.03125, %v5809_v47  ;;  %v5829_v36 = vmul.f32 %v10788_v30, %v10788_v30 }
0x15f0   :  { %v10794_v13 = vsub.f32 %v10766_v55, %v5816_v33  ;;  %v5846_v41 = vsel %vm107_vm0, %v5829_v36, 0.0 }
0x15f1   :  { %5847 = vadd.xlane.f32.xlu0 %v5846_v41 }
0x15f2   :  { %v5830_v22 = vmul.f32 %v10794_v13, %v10794_v13 }
0x15f4   :  { %v5849_v14 = vsel %vm126_vm1, %v5830_v22, 0.0 }
0x15f5   :  { %5850 = vadd.xlane.f32.xlu1 %v5849_v14 }
0x166a   :  { %v5833_v12 = vpop.xlane.xlu1 %5832 }
0x166b   :  { %v5852_v28 = vmul.f32 0.03125, %v5833_v12 }
0x166d   :  { %v5859_v58 = vadd.f32 1e-05, %v5852_v28 }
0x166e   :  { %v5836_v32 = vpop.xlane.xlu0 %5835 }
0x166f   :  { %8374 = vrsqrt.f32 %v5859_v58  ;;  %v5853_v23 = vmul.f32 0.03125, %v5836_v32 }
0x1671   :  { %v5860_v54 = vadd.f32 1e-05, %v5853_v23 }
0x1672   :  { %v5839_v4 = vpop.xlane.xlu1 %5838 }
0x1673   :  { %8376 = vrsqrt.f32 %v5860_v54  ;;  %v5854_v11 = vmul.f32 0.03125, %v5839_v4 }
0x1675   :  { %v5861_v8 = vadd.f32 1e-05, %v5854_v11 }
0x1676   :  { %v5842_v29 = vpop.xlane.xlu0 %5841 }
0x1677   :  { %8378 = vrsqrt.f32 %v5861_v8  ;;  %v5855_v49 = vmul.f32 0.03125, %v5842_v29 }
0x1679   :  { %v8375_v15 = vpop.eup %8374  ;;  %v5862_v38 = vadd.f32 1e-05, %v5855_v49 }
0x167a   :  { %v5873_v48 = vmul.f32 %v8375_v15, %v5817_v34  ;;  %v5845_v45 = vpop.xlane.xlu1 %5844  ;;  %v8441_v34 = vld [vmem:[%s10870_s13] ss:$0 sm:$0xff] }
0x167b   :  { %8380 = vrsqrt.f32 %v5862_v38  ;;  %v5856_v56 = vmul.f32 0.03125, %v5845_v45 }
0x167c   :  { %v5880_v27 = vmul.f32 %v8440_v6, %v5873_v48 }
0x167d   :  { %v8377_v26 = vpop.eup %8376  ;;  %v5863_v43 = vadd.f32 1e-05, %v5856_v56 }
0x167e   :  { %v5874_v50 = vmul.f32 %v8377_v26, %v5818_v42  ;;  %v5848_v53 = vpop.xlane.xlu0 %5847  ;;  %v5887_v21 = vadd.f32 %v8441_v34, %v5880_v27 }
0x167f   :  { %8382 = vrsqrt.f32 %v5863_v43  ;;  %v5857_v5 = vmul.f32 0.03125, %v5848_v53 }
0x1680   :  { %v5881_v57 = vmul.f32 %v8440_v6, %v5874_v50 }
0x1681   :  { %v8379_v62 = vpop.eup %8378  ;;  %v5864_v19 = vadd.f32 1e-05, %v5857_v5 }
0x1682   :  { %v5875_v18 = vmul.f32 %v8379_v62, %v5819_v46  ;;  %v5851_v17 = vpop.xlane.xlu1 %5850  ;;  %v5888_v31 = vadd.f32 %v8441_v34, %v5881_v57 }
0x1683   :  { %8384 = vrsqrt.f32 %v5864_v19  ;;  %v5858_v42 = vmul.f32 0.03125, %v5851_v17 }
0x1684   :  { %v5894_v10 = vpack.c.bf16 %v5888_v31, %v5887_v21  ;;  %v5882_v37 = vmul.f32 %v8440_v6, %v5875_v18 }
0x1685   :  { %v8381_v63 = vpop.eup %8380  ;;  %v5865_v35 = vadd.f32 1e-05, %v5858_v42 }
0x1686   :  { %v5876_v1 = vmul.f32 %v8381_v63, %v10776_v0  ;;  %7964 = vmatprep.mubr.msk.bf16.mxu1 %vm107_vm0, %v5894_v10  ;;  %v5889_v51 = vadd.f32 %v8441_v34, %v5882_v37 }
0x1687   :  { %8386 = vrsqrt.f32 %v5865_v35 }
0x1688   :  { %v5883_v2 = vmul.f32 %v8440_v6, %v5876_v1 }
0x1689   :  { %v8383_v46 = vpop.eup %8382 }
0x168a   :  { %v5890_v3 = vadd.f32 %v8441_v34, %v5883_v2  ;;  %v5877_v52 = vmul.f32 %v8383_v46, %v10782_v20 }
0x168c   :  { %v5895_v44 = vpack.c.bf16 %v5890_v3, %v5889_v51  ;;  %v5884_v16 = vmul.f32 %v8440_v6, %v5877_v52 }
0x168d   :  { %v8385_v9 = vpop.eup %8384 }
0x168e   :  { %v5878_v7 = vmul.f32 %v8385_v9, %v10788_v30  ;;  %7965 = vmatmul.mubr.msk.bf16.vlgmr.msra.gmra.mrb[212].mxu1 %vm107_vm0, %v5895_v44  ;;  %v5891_v33 = vadd.f32 %v8441_v34, %v5884_v16  ;;  %v8442_v30 = vld [vmem:[%s10872_s15] ss:$0 sm:$0xff] }
0x1690   :  { %v5885_v59 = vmul.f32 %v8440_v6, %v5878_v7 }
0x1691   :  { %v8387_v47 = vpop.eup %8386 }
0x1692   :  { %v5879_v0 = vmul.f32 %v8387_v47, %v10794_v13  ;;  %v5892_v36 = vadd.f32 %v8441_v34, %v5885_v59 }
0x1694   :  { %v5896_v41 = vpack.c.bf16 %v5892_v36, %v5891_v33  ;;  %v5886_v22 = vmul.f32 %v8440_v6, %v5879_v0 }
0x1696   :  { %7968 = vmatprep.mubr.msk.bf16.mxu1 %vm107_vm0, %v5896_v41  ;;  %v5893_v14 = vadd.f32 %v8441_v34, %v5886_v22 }
0x1698   :  { %v5897_v12 = vpack.c.bf16 %v5893_v14, %v5893_v14 }
0x169a   :  { %7969 = vmatmul.mubr.msk.bf16.gmra.mrb[216].mxu1 %vm107_vm0, %v5897_v12 }
0x1761   :  { %v7966_v20 = vpop.f32.mrb[212].mxu1 }
0x1762   :  { %v5953_v28 = vadd.f32 %v8442_v30, %v7966_v20  ;;  %v5944_v58 = vpop.f32.mrb[213].mxu1 }
0x1763   :  { %v5945_v32 = vadd.f32 %v8442_v30, %v5944_v58  ;;  %v7967_v23 = vpop.f32.mrb[214].mxu1 }
0x1764   :  { %v5983_v13 = vmul.f32 0.044715, %v5953_v28  ;;  %v5956_v54 = vadd.f32 %v8442_v30, %v7967_v23  ;;  %v5947_v4 = vpop.f32.mrb[215].mxu1  ;;  %v5976_v22 = vmul.f32 0.5, %v5953_v28 }
0x1765   :  { %v5981_v11 = vmul.f32 0.044715, %v5945_v32  ;;  %v5948_v8 = vadd.f32 %v8442_v30, %v5947_v4  ;;  %v5974_v23 = vmul.f32 0.5, %v5945_v32 }
0x1766   :  { %v5990_v29 = vmul.f32 %v5983_v13, %v5953_v28  ;;  %v5984_v49 = vmul.f32 0.044715, %v5956_v54  ;;  %v5977_v20 = vmul.f32 0.5, %v5956_v54 }
0x1767   :  { %v5988_v15 = vmul.f32 %v5981_v11, %v5945_v32  ;;  %v5982_v38 = vmul.f32 0.044715, %v5948_v8  ;;  %v5975_v13 = vmul.f32 0.5, %v5948_v8 }
0x1768   :  { %v5997_v48 = vmul.f32 %v5990_v29, %v5953_v28  ;;  %v5991_v45 = vmul.f32 %v5984_v49, %v5956_v54 }
0x1769   :  { %v5995_v56 = vmul.f32 %v5988_v15, %v5945_v32  ;;  %v5989_v26 = vmul.f32 %v5982_v38, %v5948_v8 }
0x176a   :  { %v6004_v43 = vadd.f32 %v5997_v48, %v5953_v28  ;;  %v5998_v50 = vmul.f32 %v5991_v45, %v5956_v54 }
0x176b   :  { %v5996_v53 = vmul.f32 %v5989_v26, %v5948_v8  ;;  %v6002_v6 = vadd.f32 %v5995_v56, %v5945_v32 }
0x176c   :  { %v6011_v27 = vmul.f32 0.7978846, %v6004_v43  ;;  %v6005_v5 = vadd.f32 %v5998_v50, %v5956_v54 }
0x176d   :  { %v7970_v57 = vpop.f32.mrb[216].mxu1  ;;  %v6003_v62 = vadd.f32 %v5996_v53, %v5948_v8  ;;  %v6009_v19 = vmul.f32 0.7978846, %v6002_v6 }
0x176e   :  { %8388 = vtanh.f32 %v6011_v27  ;;  %v6012_v18 = vmul.f32 0.7978846, %v6005_v5  ;;  %v5969_v17 = vadd.f32 %v8442_v30, %v7970_v57  ;;  %v5960_v34 = vpop.f32.mrb[217].mxu1 }
0x176f   :  { %v5961_v21 = vadd.f32 %v8442_v30, %v5960_v34  ;;  %v7971_v31 = vpop.f32.mrb[218].mxu1  ;;  %v6010_v42 = vmul.f32 0.7978846, %v6003_v62  ;;  %8390 = vtanh.f32 %v6009_v19 }
0x1770   :  { %8392 = vtanh.f32 %v6012_v18  ;;  %v5987_v10 = vmul.f32 0.044715, %v5969_v17  ;;  %v5963_v63 = vpop.f32.mrb[219].mxu1  ;;  %v5980_v43 = vmul.f32 0.5, %v5969_v17 }
0x1771   :  { %v5985_v35 = vmul.f32 0.044715, %v5961_v21  ;;  %v5964_v37 = vadd.f32 %v8442_v30, %v5963_v63  ;;  %8394 = vtanh.f32 %v6010_v42  ;;  %v5978_v50 = vmul.f32 0.5, %v5961_v21 }
0x1772   :  { %v5994_v1 = vmul.f32 %v5987_v10, %v5969_v17 }
0x1773   :  { %v5992_v2 = vmul.f32 %v5985_v35, %v5961_v21  ;;  %v5986_v46 = vmul.f32 0.044715, %v5964_v37  ;;  %v5979_v53 = vmul.f32 0.5, %v5964_v37 }
0x1774   :  { %v6001_v51 = vmul.f32 %v5994_v1, %v5969_v17 }
0x1775   :  { %v5999_v3 = vmul.f32 %v5992_v2, %v5961_v21  ;;  %v5993_v52 = vmul.f32 %v5986_v46, %v5964_v37 }
0x1776   :  { %v6008_v44 = vadd.f32 %v6001_v51, %v5969_v17  ;;  %v8443_v17 = vld [vmem:[%s10873_s17] ss:$0 sm:$0xff] }
0x1777   :  { %v6000_v9 = vmul.f32 %v5993_v52, %v5964_v37  ;;  %v6006_v7 = vadd.f32 %v5999_v3, %v5961_v21 }
0x1778   :  { %v8389_v16 = vpop.eup %8388  ;;  %v6015_v59 = vmul.f32 0.7978846, %v6008_v44 }
0x1779   :  { %v8391_v47 = vpop.eup %8390  ;;  %v6025_v0 = vadd.f32 1.0, %v8389_v16  ;;  %v6007_v33 = vadd.f32 %v6000_v9, %v5964_v37  ;;  %v6013_v36 = vmul.f32 0.7978846, %v6006_v7 }
0x177a   :  { %v8393_v41 = vpop.eup %8392  ;;  %v6023_v14 = vadd.f32 1.0, %v8391_v47  ;;  %8396 = vtanh.f32 %v6015_v59 }
0x177b   :  { %v8395_v12 = vpop.eup %8394  ;;  %v6026_v30 = vadd.f32 1.0, %v8393_v41  ;;  %v6014_v58 = vmul.f32 0.7978846, %v6007_v33  ;;  %8398 = vtanh.f32 %v6013_v36  ;;  %v6032_v11 = vmul.f32 %v6025_v0, %v5976_v22 }
0x177c   :  { %v6024_v4 = vadd.f32 1.0, %v8395_v12  ;;  %v6030_v49 = vmul.f32 %v6023_v14, %v5974_v23 }
0x177d   :  { %v6033_v29 = vmul.f32 %v6026_v30, %v5977_v20  ;;  %8400 = vtanh.f32 %v6014_v58 }
0x177e   :  { %v6031_v15 = vmul.f32 %v6024_v4, %v5975_v13 }
0x177f   :  { %v6038_v38 = vpack.c.bf16 %v6033_v29, %v6032_v11 }
0x1780   :  { %v6037_v48 = vpack.c.bf16 %v6031_v15, %v6030_v49 }
0x1782   :  { %7988 = vmatprep.mubr.bf16.mxu0 %v6037_v48 }
0x1783   :  { %7989 = vmatmul.mubr.bf16.vlgmr.msra.gmra.mrb[212].mxu0 %v6038_v38 }
0x1784   :  { %v8397_v28 = vpop.eup %8396 }
0x1785   :  { %v8399_v45 = vpop.eup %8398  ;;  %v6029_v56 = vadd.f32 1.0, %v8397_v28 }
0x1786   :  { %v6027_v26 = vadd.f32 1.0, %v8399_v45 }
0x1787   :  { %v8401_v54 = vpop.eup %8400  ;;  %v6036_v8 = vmul.f32 %v6029_v56, %v5980_v43 }
0x1788   :  { %v6028_v32 = vadd.f32 1.0, %v8401_v54  ;;  %v6034_v6 = vmul.f32 %v6027_v26, %v5978_v50 }
0x1789   :  { %v6040_v57 = vpack.c.bf16 %v6036_v8, %v6036_v8 }
0x178a   :  { %v6035_v27 = vmul.f32 %v6028_v32, %v5979_v53 }
0x178c   :  { %v6039_v5 = vpack.c.bf16 %v6035_v27, %v6034_v6 }
0x178e   :  { %7992 = vmatprep.mubr.bf16.mxu0 %v6039_v5 }
0x178f   :  { %7993 = vmatmul.mubr.bf16.gmra.mrb[216].mxu0 %v6040_v57 }
0x1856   :  { %v7990_v62 = vpop.f32.mrb[212].mxu0 }
0x1857   :  { %v6107_v19 = vadd.f32 %v7990_v62, %v10750_v40  ;;  %v6075_v18 = vpop.f32.mrb[213].mxu0 }
0x1858   :  { %v6105_v34 = vadd.f32 %v6075_v18, %v10742_v25  ;;  %v7991_v31 = vpop.f32.mrb[214].mxu0 }
0x1859   :  { %v6114_v21 = vadd.f32 %v8443_v17, %v6107_v19  ;;  %v6108_v42 = vadd.f32 %v7991_v31, %v10754_v61  ;;  %v6078_v10 = vpop.f32.mrb[215].mxu0 }
0x185a   :  { %v6112_v63 = vadd.f32 %v8443_v17, %v6105_v34  ;;  %v6106_v35 = vadd.f32 %v6078_v10, %v10746_v24 }
0x185b   :  { %6631 = vst.msk [vmem:[%s10874_s18 + $0x48] sm:$0xff] %vm107_vm0, %v6114_v21  ;;  %v6115_v40 = vadd.f32 %v8443_v17, %v6108_v42 }
0x185c   :  { %6629 = vst.msk [vmem:[%s10874_s18 + $0x38] sm:$0xff] %vm107_vm0, %v6112_v63  ;;  %v6113_v25 = vadd.f32 %v8443_v17, %v6106_v35 }
0x185d   :  { %6632 = vst.msk [vmem:[%s10874_s18 + $0x50] sm:$0xff] %vm107_vm0, %v6115_v40 }
0x185e   :  { %6630 = vst.msk [vmem:[%s10874_s18 + $0x40] sm:$0xff] %vm107_vm0, %v6113_v25 }
0x1862   :  { %v7994_v24 = vpop.f32.mrb[216].mxu0 }
0x1863   :  { %v6111_v61 = vadd.f32 %v7994_v24, %v10766_v55  ;;  %v6091_v37 = vpop.f32.mrb[217].mxu0 }
0x1864   :  { %v6109_v1 = vadd.f32 %v6091_v37, %v10758_v60  ;;  %v7995_v2 = vpop.f32.mrb[218].mxu0 }
0x1865   :  { %v6118_v46 = vadd.f32 %v8443_v17, %v6111_v61  ;;  %v6094_v51 = vpop.f32.mrb[219].mxu0 }
0x1866   :  { %v6116_v3 = vadd.f32 %v8443_v17, %v6109_v1  ;;  %v6110_v52 = vadd.f32 %v6094_v51, %v10762_v39 }
0x1867   :  { %6635 = vst.msk [vmem:[%s10874_s18 + $0x68] sm:$0x1] %vm126_vm1, %v6118_v46 }
0x1868   :  { %6633 = vst.msk [vmem:[%s10874_s18 + $0x58] sm:$0xff] %vm107_vm0, %v6116_v3  ;;  %v6117_v55 = vadd.f32 %v8443_v17, %v6110_v52 }
0x186a   :  { %6634 = vst.msk [vmem:[%s10874_s18 + $0x60] sm:$0xff] %vm107_vm0, %v6117_v55 }

</bundles_post_ra>
